<compile_context>
chip_gen: v6e
topology: v6e:2x2x1
jax: 0.10.0
libtpu: 0.0.40
codegen_flags: <defaults>
</compile_context>

<pallas_src>
import functools

import jax
import jax.numpy as jnp
from jax.experimental import pallas as pl

EPS = 1e-5      # nn.LayerNorm default eps
LANE = 128      # every packed sub-array starts on a 128-lane boundary


def _round_up(x, m):
    return ((x + m - 1) // m) * m


# ---------------------------------------------------------------------------
# Fused kernel: whole Decoder_T forward in a single invocation (no grid)
# ---------------------------------------------------------------------------

def _make_fused_kernel(*, nhead, num_layers, B, T, S, L, E, wmeta, bmeta):
    H = nhead
    d = E // H
    scale = 1.0 / float(d) ** 0.5

    def kernel(z_ref, mem_ref, w_ref, b_ref, o_ref):
        # -------- packed-slab accessors (static, 128-lane aligned offsets) ----
        def W(name):                        # bf16 (rows, cols) weight block
            off, r, c = wmeta[name]
            return w_ref[0:r, off:off + c]

        def bias(name):                     # f32 (1, cols) bias / LN param
            off, c = bmeta[name]
            return b_ref[:, off:off + c]

        def matmul(x, name):                # bf16 operands, f32 accumulation
            return jnp.dot(x.astype(jnp.bfloat16), W(name),
                           preferred_element_type=jnp.float32)

        def layernorm(x, g, b):
            mu = jnp.mean(x, axis=-1, keepdims=True)
            var = jnp.mean(x * x, axis=-1, keepdims=True) - mu * mu
            return (x - mu) * jax.lax.rsqrt(var + EPS) * bias(g) + bias(b)

        def attention(q2d, k2d, v2d):
            # q2d:(T,E)  k2d/v2d:(Tk,E); heads are contiguous d-wide column
            # blocks (torch MultiheadAttention layout). Returns (T,E) = concat
            # of heads; the single out-projection is applied by the caller.
            heads = []
            for h in range(H):
                lo = h * d
                q = q2d[:, lo:lo + d].astype(jnp.bfloat16)
                k = k2d[:, lo:lo + d].astype(jnp.bfloat16)
                v = v2d[:, lo:lo + d].astype(jnp.bfloat16)
                s = jax.lax.dot_general(
                    q, k, (((1,), (1,)), ((), ())),
                    preferred_element_type=jnp.float32) * scale
                p = jnp.exp(s - jnp.max(s, axis=-1, keepdims=True))
                p = p * pl.reciprocal(jnp.sum(p, axis=-1, keepdims=True),
                                      approx=True)
                heads.append(jnp.dot(p.astype(jnp.bfloat16), v,
                                     preferred_element_type=jnp.float32))
            return jnp.concatenate(heads, axis=-1)

        # ---- stack the batch along sublanes: rows [b*T:(b+1)*T] = batch b ----
        z2 = z_ref[...]                                    # (T, B*L)
        m2 = mem_ref[...]                                  # (S, B*E)
        z = jnp.concatenate([z2[:, b * L:(b + 1) * L] for b in range(B)], axis=0)
        mem = jnp.concatenate([m2[:, b * E:(b + 1) * E] for b in range(B)], axis=0)

        # latent -> decoder input (one matmul for the whole batch)
        x = matmul(z, 'lat2dec') + bias('lat2dec_b')       # (B*T, E)

        for i in range(num_layers):
            pre = f'l{i}_'

            # ---- self attention (packed QKV, one shared out-projection) ----
            qkv = matmul(x, pre + 'qkv') + bias(pre + 'qkv_b')        # (B*T, 3E)
            sa = jnp.concatenate(
                [attention(qkv[b * T:(b + 1) * T, 0:E],
                           qkv[b * T:(b + 1) * T, E:2 * E],
                           qkv[b * T:(b + 1) * T, 2 * E:3 * E])
                 for b in range(B)], axis=0)
            sa = matmul(sa, pre + 'wo_s') + bias(pre + 'wo_s_b')
            x = layernorm(x + sa, pre + 'g1', pre + 'be1')

            # ---- cross attention (memory K/V computed once per layer) ----
            qc = matmul(x, pre + 'wq_c') + bias(pre + 'wq_c_b')       # (B*T, E)
            kv = matmul(mem, pre + 'wkv_c') + bias(pre + 'wkv_c_b')   # (B*S, 2E)
            ca = jnp.concatenate(
                [attention(qc[b * T:(b + 1) * T, :],
                           kv[b * S:(b + 1) * S, 0:E],
                           kv[b * S:(b + 1) * S, E:2 * E])
                 for b in range(B)], axis=0)
            ca = matmul(ca, pre + 'wo_c') + bias(pre + 'wo_c_b')
            x = layernorm(x + ca, pre + 'g2', pre + 'be2')

            # ---- feed-forward (linear -> relu -> linear) ----
            h1 = jnp.maximum(matmul(x, pre + 'ff1') + bias(pre + 'ff1_b'), 0.0)
            ff = matmul(h1, pre + 'ff2') + bias(pre + 'ff2_b')
            x = layernorm(x + ff, pre + 'g3', pre + 'be3')

        # ---- output head; re-pack to the native (T, B*input_dim) layout ----
        y = matmul(x, 'out') + bias('out_b')                          # (B*T, OD)
        o_ref[...] = jnp.concatenate(
            [y[b * T:(b + 1) * T, :] for b in range(B)], axis=1)

    return kernel


# ---------------------------------------------------------------------------
# Forward wrapper
# ---------------------------------------------------------------------------

def decoder_t_forward(w_slab, b_slab, sigma, z, enc_output, *,
                      nhead, input_dim, num_layers, wmeta, bmeta):
    """Decoder_T.forward(z, enc_output) -> (recon, sigma).

    z:          (T, B, latent_dim)
    enc_output: (S, B, embedding_dim)
    """
    T, B, L = z.shape
    S, _, E = enc_output.shape

    kernel = _make_fused_kernel(nhead=nhead, num_layers=num_layers,
                                B=B, T=T, S=S, L=L, E=E,
                                wmeta=wmeta, bmeta=bmeta)

    # (T,B,C)->(T,B*C) reshapes are row-major bitcasts (no data movement): the
    # kernel consumes / produces the module's native seq-major layout directly.
    out2d = pl.pallas_call(
        kernel,
        out_shape=jax.ShapeDtypeStruct((T, B * input_dim), jnp.float32),
    )(z.reshape(T, B * L), enc_output.reshape(S, B * E), w_slab, b_slab)

    recon = out2d.reshape(T, B, input_dim)
    return recon, sigma


# ---------------------------------------------------------------------------
# Parameter preparation: transpose / pack / pad ONCE into two lane-dense slabs
# ---------------------------------------------------------------------------

def prepare_params(params):
    lat_w = jnp.asarray(params['lat2dec_w'], jnp.float32)   # (E, L) torch (out,in)
    out_w = jnp.asarray(params['out_w'], jnp.float32)       # (OD, E)
    E, L = lat_w.shape
    layers = params['layers']
    F = layers[0]['ff_w1'].shape[0]
    rmax = max(L, E, F)

    w_parts, wmeta, wcur = [], {}, 0
    b_parts, bmeta, bcur = [], {}, 0

    def add_w(name, mat):                    # mat already in x @ W layout
        nonlocal wcur
        mat = jnp.asarray(mat, jnp.float32)
        r, c = mat.shape
        cp = _round_up(c, LANE)
        w_parts.append(jnp.zeros((rmax, cp), jnp.float32).at[:r, :c].set(mat))
        wmeta[name] = (wcur, r, c)
        wcur += cp

    def add_b(name, vec):
        nonlocal bcur
        vec = jnp.asarray(vec, jnp.float32).reshape(1, -1)
        c = vec.shape[1]
        cp = _round_up(c, LANE)
        b_parts.append(jnp.pad(vec, ((0, 0), (0, cp - c))))
        bmeta[name] = (bcur, c)
        bcur += cp

    add_w('lat2dec', lat_w.T)
    add_b('lat2dec_b', params['lat2dec_b'])
    for i, lp in enumerate(layers):
        pre = f'l{i}_'
        sa, ca = lp['self_attn'], lp['cross_attn']
        add_w(pre + 'qkv', sa['in_proj_weight'].T)          # packed QKV (E, 3E)
        add_b(pre + 'qkv_b', sa['in_proj_bias'])
        add_w(pre + 'wo_s', sa['out_proj_weight'].T)
        add_b(pre + 'wo_s_b', sa['out_proj_bias'])
        add_w(pre + 'wq_c', ca['in_proj_weight'][:E].T)     # cross Q   (E, E)
        add_b(pre + 'wq_c_b', ca['in_proj_bias'][:E])
        add_w(pre + 'wkv_c', ca['in_proj_weight'][E:].T)    # cross KV  (E, 2E)
        add_b(pre + 'wkv_c_b', ca['in_proj_bias'][E:])
        add_w(pre + 'wo_c', ca['out_proj_weight'].T)
        add_b(pre + 'wo_c_b', ca['out_proj_bias'])
        add_w(pre + 'ff1', lp['ff_w1'].T)                   # (E, F)
        add_b(pre + 'ff1_b', lp['ff_b1'])
        add_w(pre + 'ff2', lp['ff_w2'].T)                   # (F, E)
        add_b(pre + 'ff2_b', lp['ff_b2'])
        add_b(pre + 'g1', lp['norm1_w']); add_b(pre + 'be1', lp['norm1_b'])
        add_b(pre + 'g2', lp['norm2_w']); add_b(pre + 'be2', lp['norm2_b'])
        add_b(pre + 'g3', lp['norm3_w']); add_b(pre + 'be3', lp['norm3_b'])
    add_w('out', out_w.T)
    add_b('out_b', params['out_b'])

    w_slab = jnp.concatenate(w_parts, axis=1).astype(jnp.bfloat16)  # (rmax, 16*128)
    b_slab = jnp.concatenate(b_parts, axis=1)                       # (1, 28*128) f32
    return w_slab, b_slab, wmeta, bmeta, len(layers), params['sigma']


# ---------------------------------------------------------------------------
# Deterministic parameter construction (shapes follow Decoder_T.__init__)
# ---------------------------------------------------------------------------

def init_params(key, input_dim, latent_dim, embedding_dim, nhead, dim_feedforward):
    keys = iter(jax.random.split(key, 128))

    def nrm(shape, scale=0.05):
        return scale * jax.random.normal(next(keys), shape, dtype=jnp.float32)

    def mha_params():
        return dict(
            in_proj_weight=nrm((3 * embedding_dim, embedding_dim)),
            in_proj_bias=nrm((3 * embedding_dim,)),
            out_proj_weight=nrm((embedding_dim, embedding_dim)),
            out_proj_bias=nrm((embedding_dim,)),
        )

    def layer_params():
        return dict(
            self_attn=mha_params(),
            cross_attn=mha_params(),
            ff_w1=nrm((dim_feedforward, embedding_dim)),   # PyTorch (out,in)
            ff_b1=nrm((dim_feedforward,)),
            ff_w2=nrm((embedding_dim, dim_feedforward)),
            ff_b2=nrm((embedding_dim,)),
            norm1_w=jnp.ones((embedding_dim,), jnp.float32),
            norm1_b=jnp.zeros((embedding_dim,), jnp.float32),
            norm2_w=jnp.ones((embedding_dim,), jnp.float32),
            norm2_b=jnp.zeros((embedding_dim,), jnp.float32),
            norm3_w=jnp.ones((embedding_dim,), jnp.float32),
            norm3_b=jnp.zeros((embedding_dim,), jnp.float32),
        )

    return dict(
        lat2dec_w=nrm((embedding_dim, latent_dim)),        # PyTorch (out,in)
        lat2dec_b=nrm((embedding_dim,)),
        layers=[layer_params(), layer_params()],
        out_w=nrm((input_dim, embedding_dim)),
        out_b=nrm((input_dim,)),
        sigma=0.1 * jnp.ones((input_dim,), jnp.float32),   # Parameter(ones * 0.1)
    )


# ---------------------------------------------------------------------------
# Pure-JAX reference (mirrors nn.TransformerDecoder, eval mode) for sanity check
# ---------------------------------------------------------------------------

def _reference_forward(params, z, enc_output, nhead):
    def linear(x, w, b):
        return jnp.matmul(x, w.T) + b

    def layernorm(x, g, b):
        mu = jnp.mean(x, axis=-1, keepdims=True)
        var = jnp.mean((x - mu) ** 2, axis=-1, keepdims=True)
        return (x - mu) * jax.lax.rsqrt(var + EPS) * g + b

    def mha(q_in, k_in, v_in, p):
        Tq, B, E = q_in.shape
        Tk = k_in.shape[0]
        d = E // nhead
        w_in, b_in = p['in_proj_weight'], p['in_proj_bias']
        q = linear(q_in, w_in[:E], b_in[:E])
        k = linear(k_in, w_in[E:2 * E], b_in[E:2 * E])
        v = linear(v_in, w_in[2 * E:], b_in[2 * E:])
        split = lambda x, Tx: x.reshape(Tx, B * nhead, d).transpose(1, 0, 2)
        qh, kh, vh = split(q, Tq), split(k, Tk), split(v, Tk)
        s = jnp.einsum('bqd,bkd->bqk', qh, kh) / (d ** 0.5)
        a = jax.nn.softmax(s, axis=-1)
        o = jnp.einsum('bqk,bkd->bqd', a, vh)
        o = o.transpose(1, 0, 2).reshape(Tq, B, E)
        return linear(o, p['out_proj_weight'], p['out_proj_bias'])

    x = linear(z, params['lat2dec_w'], params['lat2dec_b'])
    for lp in params['layers']:
        x = layernorm(x + mha(x, x, x, lp['self_attn']),
                      lp['norm1_w'], lp['norm1_b'])
        x = layernorm(x + mha(x, enc_output, enc_output, lp['cross_attn']),
                      lp['norm2_w'], lp['norm2_b'])
        h = jnp.maximum(linear(x, lp['ff_w1'], lp['ff_b1']), 0.0)
        x = layernorm(x + linear(h, lp['ff_w2'], lp['ff_b2']),
                      lp['norm3_w'], lp['norm3_b'])
    return linear(x, params['out_w'], params['out_b'])


# ---------------------------------------------------------------------------

if __name__ == "__main__":
    input_dim = 20
    latent_dim = 16
    embedding_dim = 32
    nhead = 4
    dim_feedforward = 64
    T, S, B = 8, 8, 2                                  # tgt seq, memory seq, batch

    key = jax.random.PRNGKey(0)
    kp, kz, ke = jax.random.split(key, 3)
    params = init_params(kp, input_dim, latent_dim, embedding_dim, nhead,
                         dim_feedforward)
    z = jax.random.normal(kz, (T, B, latent_dim), jnp.float32)
    enc_output = jax.random.normal(ke, (S, B, embedding_dim), jnp.float32)

    w_slab, b_slab, wmeta, bmeta, num_layers, sigma = prepare_params(params)

    fwd = jax.jit(functools.partial(
        decoder_t_forward, nhead=nhead, input_dim=input_dim,
        num_layers=num_layers, wmeta=wmeta, bmeta=bmeta))
    out, sig = fwd(w_slab, b_slab, sigma, z, enc_output)
    jax.block_until_ready((out, sig))

    assert out.shape == (T, B, input_dim)
    assert sig.shape == (input_dim,)

    # sanity check against a pure-JAX reference of the PyTorch module (eval mode)
    with jax.default_matmul_precision("highest"):
        ref = _reference_forward(params, z, enc_output, nhead)
    max_err = float(jnp.max(jnp.abs(out - ref)))
    assert max_err < 2e-2, f"kernel/reference mismatch, max abs err = {max_err}"

    print("KERNEL_OK")
</pallas_src>

<mosaic_0001>
module attributes {stable_mosaic.version = 11 : i64} {
  func.func @kernel(%arg0: memref<8x32xf32, #tpu.memory_space<vmem>>, %arg1: memref<8x64xf32, #tpu.memory_space<vmem>>, %arg2: memref<64x2048xbf16, #tpu.memory_space<vmem>>, %arg3: memref<1x3584xf32, #tpu.memory_space<vmem>>, %arg4: memref<8x40xf32, #tpu.memory_space<vmem>>) attributes {dimension_semantics = [], scalar_prefetch = 0 : i64, scratch_operands = 0 : i64, tpu.core_type = #tpu.core_type<tc>} {
    %c0 = arith.constant 0 : index
    %c0_0 = arith.constant 0 : index
    %0 = vector.load %arg0[%c0, %c0_0] : memref<8x32xf32, #tpu.memory_space<vmem>>, vector<8x32xf32>
    %c0_1 = arith.constant 0 : index
    %c0_2 = arith.constant 0 : index
    %1 = vector.load %arg1[%c0_1, %c0_2] : memref<8x64xf32, #tpu.memory_space<vmem>>, vector<8x64xf32>
    %2 = vector.extract_strided_slice %0 {offsets = [0, 0], sizes = [8, 16], strides = [1, 1]} : vector<8x32xf32> to vector<8x16xf32>
    %3 = vector.extract_strided_slice %0 {offsets = [0, 16], sizes = [8, 16], strides = [1, 1]} : vector<8x32xf32> to vector<8x16xf32>
    %4 = tpu.concatenate %2, %3 in 0 : vector<8x16xf32>, vector<8x16xf32> -> vector<16x16xf32>
    %5 = vector.extract_strided_slice %1 {offsets = [0, 0], sizes = [8, 32], strides = [1, 1]} : vector<8x64xf32> to vector<8x32xf32>
    %6 = vector.extract_strided_slice %1 {offsets = [0, 32], sizes = [8, 32], strides = [1, 1]} : vector<8x64xf32> to vector<8x32xf32>
    %7 = tpu.concatenate %5, %6 in 0 : vector<8x32xf32>, vector<8x32xf32> -> vector<16x32xf32>
    %8 = arith.truncf %4 : vector<16x16xf32> to vector<16x16xbf16>
    %c0_3 = arith.constant 0 : index
    %c0_4 = arith.constant 0 : index
    %9 = vector.load %arg2[%c0_3, %c0_4] : memref<64x2048xbf16, #tpu.memory_space<vmem>>, vector<16x32xbf16>
    %cst = arith.constant dense<0.000000e+00> : vector<16x32xf32>
    %10 = tpu.matmul %8, %9, %cst {dimension_numbers = #tpu.dot_dimension_numbers<[1], [0], [0], [1], [0, 0, 1, 1], [], []>} : vector<16x16xbf16>, vector<16x32xbf16>, vector<16x32xf32> -> vector<16x32xf32>
    %c0_5 = arith.constant 0 : index
    %c0_6 = arith.constant 0 : index
    %11 = vector.load %arg3[%c0_5, %c0_6] : memref<1x3584xf32, #tpu.memory_space<vmem>>, vector<1x32xf32>
    %12 = vector.broadcast %11 : vector<1x32xf32> to vector<16x32xf32>
    %13 = arith.addf %10, %12 : vector<16x32xf32>
    %14 = arith.truncf %13 : vector<16x32xf32> to vector<16x32xbf16>
    %c0_7 = arith.constant 0 : index
    %c128 = arith.constant 128 : index
    %15 = vector.load %arg2[%c0_7, %c128] : memref<64x2048xbf16, #tpu.memory_space<vmem>>, vector<32x96xbf16>
    %cst_8 = arith.constant dense<0.000000e+00> : vector<16x96xf32>
    %16 = tpu.matmul %14, %15, %cst_8 {dimension_numbers = #tpu.dot_dimension_numbers<[1], [0], [0], [1], [0, 0, 1, 1], [], []>} : vector<16x32xbf16>, vector<32x96xbf16>, vector<16x96xf32> -> vector<16x96xf32>
    %c0_9 = arith.constant 0 : index
    %c128_10 = arith.constant 128 : index
    %17 = vector.load %arg3[%c0_9, %c128_10] : memref<1x3584xf32, #tpu.memory_space<vmem>>, vector<1x96xf32>
    %18 = vector.broadcast %17 : vector<1x96xf32> to vector<16x96xf32>
    %19 = arith.addf %16, %18 : vector<16x96xf32>
    %20 = vector.extract_strided_slice %19 {offsets = [0, 0], sizes = [8, 32], strides = [1, 1]} : vector<16x96xf32> to vector<8x32xf32>
    %21 = vector.extract_strided_slice %19 {offsets = [0, 32], sizes = [8, 32], strides = [1, 1]} : vector<16x96xf32> to vector<8x32xf32>
    %22 = vector.extract_strided_slice %19 {offsets = [0, 64], sizes = [8, 32], strides = [1, 1]} : vector<16x96xf32> to vector<8x32xf32>
    %23 = vector.extract_strided_slice %20 {offsets = [0, 0], sizes = [8, 8], strides = [1, 1]} : vector<8x32xf32> to vector<8x8xf32>
    %24 = arith.truncf %23 : vector<8x8xf32> to vector<8x8xbf16>
    %25 = vector.extract_strided_slice %21 {offsets = [0, 0], sizes = [8, 8], strides = [1, 1]} : vector<8x32xf32> to vector<8x8xf32>
    %26 = arith.truncf %25 : vector<8x8xf32> to vector<8x8xbf16>
    %27 = vector.extract_strided_slice %22 {offsets = [0, 0], sizes = [8, 8], strides = [1, 1]} : vector<8x32xf32> to vector<8x8xf32>
    %28 = arith.truncf %27 : vector<8x8xf32> to vector<8x8xbf16>
    %cst_11 = arith.constant dense<0.000000e+00> : vector<8x8xf32>
    %29 = tpu.matmul %24, %26, %cst_11 {dimension_numbers = #tpu.dot_dimension_numbers<[1], [1], [0], [0], [0, 0, 1, 0], [], []>} : vector<8x8xbf16>, vector<8x8xbf16>, vector<8x8xf32> -> vector<8x8xf32>
    %cst_12 = arith.constant 0.353553385 : f32
    %30 = vector.broadcast %cst_12 : f32 to vector<8x8xf32>
    %31 = arith.mulf %29, %30 : vector<8x8xf32>
    %cst_13 = arith.constant dense<0xFF800000> : vector<8xf32>
    %32 = vector.multi_reduction <maximumf>, %31, %cst_13 [1] : vector<8x8xf32> to vector<8xf32>
    %33 = vector.shape_cast %32 : vector<8xf32> to vector<8x1xf32>
    %34 = vector.broadcast %33 : vector<8x1xf32> to vector<8x8xf32>
    %35 = arith.subf %31, %34 : vector<8x8xf32>
    %36 = math.exp %35 : vector<8x8xf32>
    %cst_14 = arith.constant dense<0.000000e+00> : vector<8xf32>
    %37 = vector.multi_reduction <add>, %36, %cst_14 [1] : vector<8x8xf32> to vector<8xf32>
    %38 = vector.shape_cast %37 : vector<8xf32> to vector<8x1xf32>
    %39 = tpu.reciprocal %38 {approx = true} : vector<8x1xf32> -> vector<8x1xf32>
    %40 = vector.broadcast %39 : vector<8x1xf32> to vector<8x8xf32>
    %41 = arith.mulf %36, %40 : vector<8x8xf32>
    %42 = arith.truncf %41 : vector<8x8xf32> to vector<8x8xbf16>
    %cst_15 = arith.constant dense<0.000000e+00> : vector<8x8xf32>
    %43 = tpu.matmul %42, %28, %cst_15 {dimension_numbers = #tpu.dot_dimension_numbers<[1], [0], [0], [1], [0, 0, 1, 1], [], []>} : vector<8x8xbf16>, vector<8x8xbf16>, vector<8x8xf32> -> vector<8x8xf32>
    %44 = vector.extract_strided_slice %20 {offsets = [0, 8], sizes = [8, 8], strides = [1, 1]} : vector<8x32xf32> to vector<8x8xf32>
    %45 = arith.truncf %44 : vector<8x8xf32> to vector<8x8xbf16>
    %46 = vector.extract_strided_slice %21 {offsets = [0, 8], sizes = [8, 8], strides = [1, 1]} : vector<8x32xf32> to vector<8x8xf32>
    %47 = arith.truncf %46 : vector<8x8xf32> to vector<8x8xbf16>
    %48 = vector.extract_strided_slice %22 {offsets = [0, 8], sizes = [8, 8], strides = [1, 1]} : vector<8x32xf32> to vector<8x8xf32>
    %49 = arith.truncf %48 : vector<8x8xf32> to vector<8x8xbf16>
    %cst_16 = arith.constant dense<0.000000e+00> : vector<8x8xf32>
    %50 = tpu.matmul %45, %47, %cst_16 {dimension_numbers = #tpu.dot_dimension_numbers<[1], [1], [0], [0], [0, 0, 1, 0], [], []>} : vector<8x8xbf16>, vector<8x8xbf16>, vector<8x8xf32> -> vector<8x8xf32>
    %cst_17 = arith.constant 0.353553385 : f32
    %51 = vector.broadcast %cst_17 : f32 to vector<8x8xf32>
    %52 = arith.mulf %50, %51 : vector<8x8xf32>
    %cst_18 = arith.constant dense<0xFF800000> : vector<8xf32>
    %53 = vector.multi_reduction <maximumf>, %52, %cst_18 [1] : vector<8x8xf32> to vector<8xf32>
    %54 = vector.shape_cast %53 : vector<8xf32> to vector<8x1xf32>
    %55 = vector.broadcast %54 : vector<8x1xf32> to vector<8x8xf32>
    %56 = arith.subf %52, %55 : vector<8x8xf32>
    %57 = math.exp %56 : vector<8x8xf32>
    %cst_19 = arith.constant dense<0.000000e+00> : vector<8xf32>
    %58 = vector.multi_reduction <add>, %57, %cst_19 [1] : vector<8x8xf32> to vector<8xf32>
    %59 = vector.shape_cast %58 : vector<8xf32> to vector<8x1xf32>
    %60 = tpu.reciprocal %59 {approx = true} : vector<8x1xf32> -> vector<8x1xf32>
    %61 = vector.broadcast %60 : vector<8x1xf32> to vector<8x8xf32>
    %62 = arith.mulf %57, %61 : vector<8x8xf32>
    %63 = arith.truncf %62 : vector<8x8xf32> to vector<8x8xbf16>
    %cst_20 = arith.constant dense<0.000000e+00> : vector<8x8xf32>
    %64 = tpu.matmul %63, %49, %cst_20 {dimension_numbers = #tpu.dot_dimension_numbers<[1], [0], [0], [1], [0, 0, 1, 1], [], []>} : vector<8x8xbf16>, vector<8x8xbf16>, vector<8x8xf32> -> vector<8x8xf32>
    %65 = vector.extract_strided_slice %20 {offsets = [0, 16], sizes = [8, 8], strides = [1, 1]} : vector<8x32xf32> to vector<8x8xf32>
    %66 = arith.truncf %65 : vector<8x8xf32> to vector<8x8xbf16>
    %67 = vector.extract_strided_slice %21 {offsets = [0, 16], sizes = [8, 8], strides = [1, 1]} : vector<8x32xf32> to vector<8x8xf32>
    %68 = arith.truncf %67 : vector<8x8xf32> to vector<8x8xbf16>
    %69 = vector.extract_strided_slice %22 {offsets = [0, 16], sizes = [8, 8], strides = [1, 1]} : vector<8x32xf32> to vector<8x8xf32>
    %70 = arith.truncf %69 : vector<8x8xf32> to vector<8x8xbf16>
    %cst_21 = arith.constant dense<0.000000e+00> : vector<8x8xf32>
    %71 = tpu.matmul %66, %68, %cst_21 {dimension_numbers = #tpu.dot_dimension_numbers<[1], [1], [0], [0], [0, 0, 1, 0], [], []>} : vector<8x8xbf16>, vector<8x8xbf16>, vector<8x8xf32> -> vector<8x8xf32>
    %cst_22 = arith.constant 0.353553385 : f32
    %72 = vector.broadcast %cst_22 : f32 to vector<8x8xf32>
    %73 = arith.mulf %71, %72 : vector<8x8xf32>
    %cst_23 = arith.constant dense<0xFF800000> : vector<8xf32>
    %74 = vector.multi_reduction <maximumf>, %73, %cst_23 [1] : vector<8x8xf32> to vector<8xf32>
    %75 = vector.shape_cast %74 : vector<8xf32> to vector<8x1xf32>
    %76 = vector.broadcast %75 : vector<8x1xf32> to vector<8x8xf32>
    %77 = arith.subf %73, %76 : vector<8x8xf32>
    %78 = math.exp %77 : vector<8x8xf32>
    %cst_24 = arith.constant dense<0.000000e+00> : vector<8xf32>
    %79 = vector.multi_reduction <add>, %78, %cst_24 [1] : vector<8x8xf32> to vector<8xf32>
    %80 = vector.shape_cast %79 : vector<8xf32> to vector<8x1xf32>
    %81 = tpu.reciprocal %80 {approx = true} : vector<8x1xf32> -> vector<8x1xf32>
    %82 = vector.broadcast %81 : vector<8x1xf32> to vector<8x8xf32>
    %83 = arith.mulf %78, %82 : vector<8x8xf32>
    %84 = arith.truncf %83 : vector<8x8xf32> to vector<8x8xbf16>
    %cst_25 = arith.constant dense<0.000000e+00> : vector<8x8xf32>
    %85 = tpu.matmul %84, %70, %cst_25 {dimension_numbers = #tpu.dot_dimension_numbers<[1], [0], [0], [1], [0, 0, 1, 1], [], []>} : vector<8x8xbf16>, vector<8x8xbf16>, vector<8x8xf32> -> vector<8x8xf32>
    %86 = vector.extract_strided_slice %20 {offsets = [0, 24], sizes = [8, 8], strides = [1, 1]} : vector<8x32xf32> to vector<8x8xf32>
    %87 = arith.truncf %86 : vector<8x8xf32> to vector<8x8xbf16>
    %88 = vector.extract_strided_slice %21 {offsets = [0, 24], sizes = [8, 8], strides = [1, 1]} : vector<8x32xf32> to vector<8x8xf32>
    %89 = arith.truncf %88 : vector<8x8xf32> to vector<8x8xbf16>
    %90 = vector.extract_strided_slice %22 {offsets = [0, 24], sizes = [8, 8], strides = [1, 1]} : vector<8x32xf32> to vector<8x8xf32>
    %91 = arith.truncf %90 : vector<8x8xf32> to vector<8x8xbf16>
    %cst_26 = arith.constant dense<0.000000e+00> : vector<8x8xf32>
    %92 = tpu.matmul %87, %89, %cst_26 {dimension_numbers = #tpu.dot_dimension_numbers<[1], [1], [0], [0], [0, 0, 1, 0], [], []>} : vector<8x8xbf16>, vector<8x8xbf16>, vector<8x8xf32> -> vector<8x8xf32>
    %cst_27 = arith.constant 0.353553385 : f32
    %93 = vector.broadcast %cst_27 : f32 to vector<8x8xf32>
    %94 = arith.mulf %92, %93 : vector<8x8xf32>
    %cst_28 = arith.constant dense<0xFF800000> : vector<8xf32>
    %95 = vector.multi_reduction <maximumf>, %94, %cst_28 [1] : vector<8x8xf32> to vector<8xf32>
    %96 = vector.shape_cast %95 : vector<8xf32> to vector<8x1xf32>
    %97 = vector.broadcast %96 : vector<8x1xf32> to vector<8x8xf32>
    %98 = arith.subf %94, %97 : vector<8x8xf32>
    %99 = math.exp %98 : vector<8x8xf32>
    %cst_29 = arith.constant dense<0.000000e+00> : vector<8xf32>
    %100 = vector.multi_reduction <add>, %99, %cst_29 [1] : vector<8x8xf32> to vector<8xf32>
    %101 = vector.shape_cast %100 : vector<8xf32> to vector<8x1xf32>
    %102 = tpu.reciprocal %101 {approx = true} : vector<8x1xf32> -> vector<8x1xf32>
    %103 = vector.broadcast %102 : vector<8x1xf32> to vector<8x8xf32>
    %104 = arith.mulf %99, %103 : vector<8x8xf32>
    %105 = arith.truncf %104 : vector<8x8xf32> to vector<8x8xbf16>
    %cst_30 = arith.constant dense<0.000000e+00> : vector<8x8xf32>
    %106 = tpu.matmul %105, %91, %cst_30 {dimension_numbers = #tpu.dot_dimension_numbers<[1], [0], [0], [1], [0, 0, 1, 1], [], []>} : vector<8x8xbf16>, vector<8x8xbf16>, vector<8x8xf32> -> vector<8x8xf32>
    %107 = tpu.concatenate %43, %64, %85, %106 in 1 : vector<8x8xf32>, vector<8x8xf32>, vector<8x8xf32>, vector<8x8xf32> -> vector<8x32xf32>
    %108 = vector.extract_strided_slice %19 {offsets = [8, 0], sizes = [8, 32], strides = [1, 1]} : vector<16x96xf32> to vector<8x32xf32>
    %109 = vector.extract_strided_slice %19 {offsets = [8, 32], sizes = [8, 32], strides = [1, 1]} : vector<16x96xf32> to vector<8x32xf32>
    %110 = vector.extract_strided_slice %19 {offsets = [8, 64], sizes = [8, 32], strides = [1, 1]} : vector<16x96xf32> to vector<8x32xf32>
    %111 = vector.extract_strided_slice %108 {offsets = [0, 0], sizes = [8, 8], strides = [1, 1]} : vector<8x32xf32> to vector<8x8xf32>
    %112 = arith.truncf %111 : vector<8x8xf32> to vector<8x8xbf16>
    %113 = vector.extract_strided_slice %109 {offsets = [0, 0], sizes = [8, 8], strides = [1, 1]} : vector<8x32xf32> to vector<8x8xf32>
    %114 = arith.truncf %113 : vector<8x8xf32> to vector<8x8xbf16>
    %115 = vector.extract_strided_slice %110 {offsets = [0, 0], sizes = [8, 8], strides = [1, 1]} : vector<8x32xf32> to vector<8x8xf32>
    %116 = arith.truncf %115 : vector<8x8xf32> to vector<8x8xbf16>
    %cst_31 = arith.constant dense<0.000000e+00> : vector<8x8xf32>
    %117 = tpu.matmul %112, %114, %cst_31 {dimension_numbers = #tpu.dot_dimension_numbers<[1], [1], [0], [0], [0, 0, 1, 0], [], []>} : vector<8x8xbf16>, vector<8x8xbf16>, vector<8x8xf32> -> vector<8x8xf32>
    %cst_32 = arith.constant 0.353553385 : f32
    %118 = vector.broadcast %cst_32 : f32 to vector<8x8xf32>
    %119 = arith.mulf %117, %118 : vector<8x8xf32>
    %cst_33 = arith.constant dense<0xFF800000> : vector<8xf32>
    %120 = vector.multi_reduction <maximumf>, %119, %cst_33 [1] : vector<8x8xf32> to vector<8xf32>
    %121 = vector.shape_cast %120 : vector<8xf32> to vector<8x1xf32>
    %122 = vector.broadcast %121 : vector<8x1xf32> to vector<8x8xf32>
    %123 = arith.subf %119, %122 : vector<8x8xf32>
    %124 = math.exp %123 : vector<8x8xf32>
    %cst_34 = arith.constant dense<0.000000e+00> : vector<8xf32>
    %125 = vector.multi_reduction <add>, %124, %cst_34 [1] : vector<8x8xf32> to vector<8xf32>
    %126 = vector.shape_cast %125 : vector<8xf32> to vector<8x1xf32>
    %127 = tpu.reciprocal %126 {approx = true} : vector<8x1xf32> -> vector<8x1xf32>
    %128 = vector.broadcast %127 : vector<8x1xf32> to vector<8x8xf32>
    %129 = arith.mulf %124, %128 : vector<8x8xf32>
    %130 = arith.truncf %129 : vector<8x8xf32> to vector<8x8xbf16>
    %cst_35 = arith.constant dense<0.000000e+00> : vector<8x8xf32>
    %131 = tpu.matmul %130, %116, %cst_35 {dimension_numbers = #tpu.dot_dimension_numbers<[1], [0], [0], [1], [0, 0, 1, 1], [], []>} : vector<8x8xbf16>, vector<8x8xbf16>, vector<8x8xf32> -> vector<8x8xf32>
    %132 = vector.extract_strided_slice %108 {offsets = [0, 8], sizes = [8, 8], strides = [1, 1]} : vector<8x32xf32> to vector<8x8xf32>
    %133 = arith.truncf %132 : vector<8x8xf32> to vector<8x8xbf16>
    %134 = vector.extract_strided_slice %109 {offsets = [0, 8], sizes = [8, 8], strides = [1, 1]} : vector<8x32xf32> to vector<8x8xf32>
    %135 = arith.truncf %134 : vector<8x8xf32> to vector<8x8xbf16>
    %136 = vector.extract_strided_slice %110 {offsets = [0, 8], sizes = [8, 8], strides = [1, 1]} : vector<8x32xf32> to vector<8x8xf32>
    %137 = arith.truncf %136 : vector<8x8xf32> to vector<8x8xbf16>
    %cst_36 = arith.constant dense<0.000000e+00> : vector<8x8xf32>
    %138 = tpu.matmul %133, %135, %cst_36 {dimension_numbers = #tpu.dot_dimension_numbers<[1], [1], [0], [0], [0, 0, 1, 0], [], []>} : vector<8x8xbf16>, vector<8x8xbf16>, vector<8x8xf32> -> vector<8x8xf32>
    %cst_37 = arith.constant 0.353553385 : f32
    %139 = vector.broadcast %cst_37 : f32 to vector<8x8xf32>
    %140 = arith.mulf %138, %139 : vector<8x8xf32>
    %cst_38 = arith.constant dense<0xFF800000> : vector<8xf32>
    %141 = vector.multi_reduction <maximumf>, %140, %cst_38 [1] : vector<8x8xf32> to vector<8xf32>
    %142 = vector.shape_cast %141 : vector<8xf32> to vector<8x1xf32>
    %143 = vector.broadcast %142 : vector<8x1xf32> to vector<8x8xf32>
    %144 = arith.subf %140, %143 : vector<8x8xf32>
    %145 = math.exp %144 : vector<8x8xf32>
    %cst_39 = arith.constant dense<0.000000e+00> : vector<8xf32>
    %146 = vector.multi_reduction <add>, %145, %cst_39 [1] : vector<8x8xf32> to vector<8xf32>
    %147 = vector.shape_cast %146 : vector<8xf32> to vector<8x1xf32>
    %148 = tpu.reciprocal %147 {approx = true} : vector<8x1xf32> -> vector<8x1xf32>
    %149 = vector.broadcast %148 : vector<8x1xf32> to vector<8x8xf32>
    %150 = arith.mulf %145, %149 : vector<8x8xf32>
    %151 = arith.truncf %150 : vector<8x8xf32> to vector<8x8xbf16>
    %cst_40 = arith.constant dense<0.000000e+00> : vector<8x8xf32>
    %152 = tpu.matmul %151, %137, %cst_40 {dimension_numbers = #tpu.dot_dimension_numbers<[1], [0], [0], [1], [0, 0, 1, 1], [], []>} : vector<8x8xbf16>, vector<8x8xbf16>, vector<8x8xf32> -> vector<8x8xf32>
    %153 = vector.extract_strided_slice %108 {offsets = [0, 16], sizes = [8, 8], strides = [1, 1]} : vector<8x32xf32> to vector<8x8xf32>
    %154 = arith.truncf %153 : vector<8x8xf32> to vector<8x8xbf16>
    %155 = vector.extract_strided_slice %109 {offsets = [0, 16], sizes = [8, 8], strides = [1, 1]} : vector<8x32xf32> to vector<8x8xf32>
    %156 = arith.truncf %155 : vector<8x8xf32> to vector<8x8xbf16>
    %157 = vector.extract_strided_slice %110 {offsets = [0, 16], sizes = [8, 8], strides = [1, 1]} : vector<8x32xf32> to vector<8x8xf32>
    %158 = arith.truncf %157 : vector<8x8xf32> to vector<8x8xbf16>
    %cst_41 = arith.constant dense<0.000000e+00> : vector<8x8xf32>
    %159 = tpu.matmul %154, %156, %cst_41 {dimension_numbers = #tpu.dot_dimension_numbers<[1], [1], [0], [0], [0, 0, 1, 0], [], []>} : vector<8x8xbf16>, vector<8x8xbf16>, vector<8x8xf32> -> vector<8x8xf32>
    %cst_42 = arith.constant 0.353553385 : f32
    %160 = vector.broadcast %cst_42 : f32 to vector<8x8xf32>
    %161 = arith.mulf %159, %160 : vector<8x8xf32>
    %cst_43 = arith.constant dense<0xFF800000> : vector<8xf32>
    %162 = vector.multi_reduction <maximumf>, %161, %cst_43 [1] : vector<8x8xf32> to vector<8xf32>
    %163 = vector.shape_cast %162 : vector<8xf32> to vector<8x1xf32>
    %164 = vector.broadcast %163 : vector<8x1xf32> to vector<8x8xf32>
    %165 = arith.subf %161, %164 : vector<8x8xf32>
    %166 = math.exp %165 : vector<8x8xf32>
    %cst_44 = arith.constant dense<0.000000e+00> : vector<8xf32>
    %167 = vector.multi_reduction <add>, %166, %cst_44 [1] : vector<8x8xf32> to vector<8xf32>
    %168 = vector.shape_cast %167 : vector<8xf32> to vector<8x1xf32>
    %169 = tpu.reciprocal %168 {approx = true} : vector<8x1xf32> -> vector<8x1xf32>
    %170 = vector.broadcast %169 : vector<8x1xf32> to vector<8x8xf32>
    %171 = arith.mulf %166, %170 : vector<8x8xf32>
    %172 = arith.truncf %171 : vector<8x8xf32> to vector<8x8xbf16>
    %cst_45 = arith.constant dense<0.000000e+00> : vector<8x8xf32>
    %173 = tpu.matmul %172, %158, %cst_45 {dimension_numbers = #tpu.dot_dimension_numbers<[1], [0], [0], [1], [0, 0, 1, 1], [], []>} : vector<8x8xbf16>, vector<8x8xbf16>, vector<8x8xf32> -> vector<8x8xf32>
    %174 = vector.extract_strided_slice %108 {offsets = [0, 24], sizes = [8, 8], strides = [1, 1]} : vector<8x32xf32> to vector<8x8xf32>
    %175 = arith.truncf %174 : vector<8x8xf32> to vector<8x8xbf16>
    %176 = vector.extract_strided_slice %109 {offsets = [0, 24], sizes = [8, 8], strides = [1, 1]} : vector<8x32xf32> to vector<8x8xf32>
    %177 = arith.truncf %176 : vector<8x8xf32> to vector<8x8xbf16>
    %178 = vector.extract_strided_slice %110 {offsets = [0, 24], sizes = [8, 8], strides = [1, 1]} : vector<8x32xf32> to vector<8x8xf32>
    %179 = arith.truncf %178 : vector<8x8xf32> to vector<8x8xbf16>
    %cst_46 = arith.constant dense<0.000000e+00> : vector<8x8xf32>
    %180 = tpu.matmul %175, %177, %cst_46 {dimension_numbers = #tpu.dot_dimension_numbers<[1], [1], [0], [0], [0, 0, 1, 0], [], []>} : vector<8x8xbf16>, vector<8x8xbf16>, vector<8x8xf32> -> vector<8x8xf32>
    %cst_47 = arith.constant 0.353553385 : f32
    %181 = vector.broadcast %cst_47 : f32 to vector<8x8xf32>
    %182 = arith.mulf %180, %181 : vector<8x8xf32>
    %cst_48 = arith.constant dense<0xFF800000> : vector<8xf32>
    %183 = vector.multi_reduction <maximumf>, %182, %cst_48 [1] : vector<8x8xf32> to vector<8xf32>
    %184 = vector.shape_cast %183 : vector<8xf32> to vector<8x1xf32>
    %185 = vector.broadcast %184 : vector<8x1xf32> to vector<8x8xf32>
    %186 = arith.subf %182, %185 : vector<8x8xf32>
    %187 = math.exp %186 : vector<8x8xf32>
    %cst_49 = arith.constant dense<0.000000e+00> : vector<8xf32>
    %188 = vector.multi_reduction <add>, %187, %cst_49 [1] : vector<8x8xf32> to vector<8xf32>
    %189 = vector.shape_cast %188 : vector<8xf32> to vector<8x1xf32>
    %190 = tpu.reciprocal %189 {approx = true} : vector<8x1xf32> -> vector<8x1xf32>
    %191 = vector.broadcast %190 : vector<8x1xf32> to vector<8x8xf32>
    %192 = arith.mulf %187, %191 : vector<8x8xf32>
    %193 = arith.truncf %192 : vector<8x8xf32> to vector<8x8xbf16>
    %cst_50 = arith.constant dense<0.000000e+00> : vector<8x8xf32>
    %194 = tpu.matmul %193, %179, %cst_50 {dimension_numbers = #tpu.dot_dimension_numbers<[1], [0], [0], [1], [0, 0, 1, 1], [], []>} : vector<8x8xbf16>, vector<8x8xbf16>, vector<8x8xf32> -> vector<8x8xf32>
    %195 = tpu.concatenate %131, %152, %173, %194 in 1 : vector<8x8xf32>, vector<8x8xf32>, vector<8x8xf32>, vector<8x8xf32> -> vector<8x32xf32>
    %196 = tpu.concatenate %107, %195 in 0 : vector<8x32xf32>, vector<8x32xf32> -> vector<16x32xf32>
    %197 = arith.truncf %196 : vector<16x32xf32> to vector<16x32xbf16>
    %c0_51 = arith.constant 0 : index
    %c256 = arith.constant 256 : index
    %198 = vector.load %arg2[%c0_51, %c256] : memref<64x2048xbf16, #tpu.memory_space<vmem>>, vector<32x32xbf16>
    %cst_52 = arith.constant dense<0.000000e+00> : vector<16x32xf32>
    %199 = tpu.matmul %197, %198, %cst_52 {dimension_numbers = #tpu.dot_dimension_numbers<[1], [0], [0], [1], [0, 0, 1, 1], [], []>} : vector<16x32xbf16>, vector<32x32xbf16>, vector<16x32xf32> -> vector<16x32xf32>
    %c0_53 = arith.constant 0 : index
    %c256_54 = arith.constant 256 : index
    %200 = vector.load %arg3[%c0_53, %c256_54] : memref<1x3584xf32, #tpu.memory_space<vmem>>, vector<1x32xf32>
    %201 = vector.broadcast %200 : vector<1x32xf32> to vector<16x32xf32>
    %202 = arith.addf %199, %201 : vector<16x32xf32>
    %203 = arith.addf %13, %202 : vector<16x32xf32>
    %cst_55 = arith.constant dense<0.000000e+00> : vector<16xf32>
    %204 = vector.multi_reduction <add>, %203, %cst_55 [1] : vector<16x32xf32> to vector<16xf32>
    %205 = vector.shape_cast %204 : vector<16xf32> to vector<16x1xf32>
    %cst_56 = arith.constant 3.200000e+01 : f32
    %206 = vector.broadcast %cst_56 : f32 to vector<16x1xf32>
    %207 = arith.divf %205, %206 : vector<16x1xf32>
    %208 = arith.mulf %203, %203 : vector<16x32xf32>
    %cst_57 = arith.constant dense<0.000000e+00> : vector<16xf32>
    %209 = vector.multi_reduction <add>, %208, %cst_57 [1] : vector<16x32xf32> to vector<16xf32>
    %210 = vector.shape_cast %209 : vector<16xf32> to vector<16x1xf32>
    %cst_58 = arith.constant 3.200000e+01 : f32
    %211 = vector.broadcast %cst_58 : f32 to vector<16x1xf32>
    %212 = arith.divf %210, %211 : vector<16x1xf32>
    %213 = arith.mulf %207, %207 : vector<16x1xf32>
    %214 = arith.subf %212, %213 : vector<16x1xf32>
    %215 = vector.broadcast %207 : vector<16x1xf32> to vector<16x32xf32>
    %216 = arith.subf %203, %215 : vector<16x32xf32>
    %cst_59 = arith.constant 9.99999974E-6 : f32
    %217 = vector.broadcast %cst_59 : f32 to vector<16x1xf32>
    %218 = arith.addf %214, %217 : vector<16x1xf32>
    %219 = math.rsqrt %218 : vector<16x1xf32>
    %220 = vector.broadcast %219 : vector<16x1xf32> to vector<16x32xf32>
    %221 = arith.mulf %216, %220 : vector<16x32xf32>
    %c0_60 = arith.constant 0 : index
    %c1024 = arith.constant 1024 : index
    %222 = vector.load %arg3[%c0_60, %c1024] : memref<1x3584xf32, #tpu.memory_space<vmem>>, vector<1x32xf32>
    %223 = vector.broadcast %222 : vector<1x32xf32> to vector<16x32xf32>
    %224 = arith.mulf %221, %223 : vector<16x32xf32>
    %c0_61 = arith.constant 0 : index
    %c1152 = arith.constant 1152 : index
    %225 = vector.load %arg3[%c0_61, %c1152] : memref<1x3584xf32, #tpu.memory_space<vmem>>, vector<1x32xf32>
    %226 = vector.broadcast %225 : vector<1x32xf32> to vector<16x32xf32>
    %227 = arith.addf %224, %226 : vector<16x32xf32>
    %228 = arith.truncf %227 : vector<16x32xf32> to vector<16x32xbf16>
    %c0_62 = arith.constant 0 : index
    %c384 = arith.constant 384 : index
    %229 = vector.load %arg2[%c0_62, %c384] : memref<64x2048xbf16, #tpu.memory_space<vmem>>, vector<32x32xbf16>
    %cst_63 = arith.constant dense<0.000000e+00> : vector<16x32xf32>
    %230 = tpu.matmul %228, %229, %cst_63 {dimension_numbers = #tpu.dot_dimension_numbers<[1], [0], [0], [1], [0, 0, 1, 1], [], []>} : vector<16x32xbf16>, vector<32x32xbf16>, vector<16x32xf32> -> vector<16x32xf32>
    %c0_64 = arith.constant 0 : index
    %c384_65 = arith.constant 384 : index
    %231 = vector.load %arg3[%c0_64, %c384_65] : memref<1x3584xf32, #tpu.memory_space<vmem>>, vector<1x32xf32>
    %232 = vector.broadcast %231 : vector<1x32xf32> to vector<16x32xf32>
    %233 = arith.addf %230, %232 : vector<16x32xf32>
    %234 = arith.truncf %7 : vector<16x32xf32> to vector<16x32xbf16>
    %c0_66 = arith.constant 0 : index
    %c512 = arith.constant 512 : index
    %235 = vector.load %arg2[%c0_66, %c512] : memref<64x2048xbf16, #tpu.memory_space<vmem>>, vector<32x64xbf16>
    %cst_67 = arith.constant dense<0.000000e+00> : vector<16x64xf32>
    %236 = tpu.matmul %234, %235, %cst_67 {dimension_numbers = #tpu.dot_dimension_numbers<[1], [0], [0], [1], [0, 0, 1, 1], [], []>} : vector<16x32xbf16>, vector<32x64xbf16>, vector<16x64xf32> -> vector<16x64xf32>
    %c0_68 = arith.constant 0 : index
    %c512_69 = arith.constant 512 : index
    %237 = vector.load %arg3[%c0_68, %c512_69] : memref<1x3584xf32, #tpu.memory_space<vmem>>, vector<1x64xf32>
    %238 = vector.broadcast %237 : vector<1x64xf32> to vector<16x64xf32>
    %239 = arith.addf %236, %238 : vector<16x64xf32>
    %240 = vector.extract_strided_slice %233 {offsets = [0, 0], sizes = [8, 32], strides = [1, 1]} : vector<16x32xf32> to vector<8x32xf32>
    %241 = vector.extract_strided_slice %239 {offsets = [0, 0], sizes = [8, 32], strides = [1, 1]} : vector<16x64xf32> to vector<8x32xf32>
    %242 = vector.extract_strided_slice %239 {offsets = [0, 32], sizes = [8, 32], strides = [1, 1]} : vector<16x64xf32> to vector<8x32xf32>
    %243 = vector.extract_strided_slice %240 {offsets = [0, 0], sizes = [8, 8], strides = [1, 1]} : vector<8x32xf32> to vector<8x8xf32>
    %244 = arith.truncf %243 : vector<8x8xf32> to vector<8x8xbf16>
    %245 = vector.extract_strided_slice %241 {offsets = [0, 0], sizes = [8, 8], strides = [1, 1]} : vector<8x32xf32> to vector<8x8xf32>
    %246 = arith.truncf %245 : vector<8x8xf32> to vector<8x8xbf16>
    %247 = vector.extract_strided_slice %242 {offsets = [0, 0], sizes = [8, 8], strides = [1, 1]} : vector<8x32xf32> to vector<8x8xf32>
    %248 = arith.truncf %247 : vector<8x8xf32> to vector<8x8xbf16>
    %cst_70 = arith.constant dense<0.000000e+00> : vector<8x8xf32>
    %249 = tpu.matmul %244, %246, %cst_70 {dimension_numbers = #tpu.dot_dimension_numbers<[1], [1], [0], [0], [0, 0, 1, 0], [], []>} : vector<8x8xbf16>, vector<8x8xbf16>, vector<8x8xf32> -> vector<8x8xf32>
    %cst_71 = arith.constant 0.353553385 : f32
    %250 = vector.broadcast %cst_71 : f32 to vector<8x8xf32>
    %251 = arith.mulf %249, %250 : vector<8x8xf32>
    %cst_72 = arith.constant dense<0xFF800000> : vector<8xf32>
    %252 = vector.multi_reduction <maximumf>, %251, %cst_72 [1] : vector<8x8xf32> to vector<8xf32>
    %253 = vector.shape_cast %252 : vector<8xf32> to vector<8x1xf32>
    %254 = vector.broadcast %253 : vector<8x1xf32> to vector<8x8xf32>
    %255 = arith.subf %251, %254 : vector<8x8xf32>
    %256 = math.exp %255 : vector<8x8xf32>
    %cst_73 = arith.constant dense<0.000000e+00> : vector<8xf32>
    %257 = vector.multi_reduction <add>, %256, %cst_73 [1] : vector<8x8xf32> to vector<8xf32>
    %258 = vector.shape_cast %257 : vector<8xf32> to vector<8x1xf32>
    %259 = tpu.reciprocal %258 {approx = true} : vector<8x1xf32> -> vector<8x1xf32>
    %260 = vector.broadcast %259 : vector<8x1xf32> to vector<8x8xf32>
    %261 = arith.mulf %256, %260 : vector<8x8xf32>
    %262 = arith.truncf %261 : vector<8x8xf32> to vector<8x8xbf16>
    %cst_74 = arith.constant dense<0.000000e+00> : vector<8x8xf32>
    %263 = tpu.matmul %262, %248, %cst_74 {dimension_numbers = #tpu.dot_dimension_numbers<[1], [0], [0], [1], [0, 0, 1, 1], [], []>} : vector<8x8xbf16>, vector<8x8xbf16>, vector<8x8xf32> -> vector<8x8xf32>
    %264 = vector.extract_strided_slice %240 {offsets = [0, 8], sizes = [8, 8], strides = [1, 1]} : vector<8x32xf32> to vector<8x8xf32>
    %265 = arith.truncf %264 : vector<8x8xf32> to vector<8x8xbf16>
    %266 = vector.extract_strided_slice %241 {offsets = [0, 8], sizes = [8, 8], strides = [1, 1]} : vector<8x32xf32> to vector<8x8xf32>
    %267 = arith.truncf %266 : vector<8x8xf32> to vector<8x8xbf16>
    %268 = vector.extract_strided_slice %242 {offsets = [0, 8], sizes = [8, 8], strides = [1, 1]} : vector<8x32xf32> to vector<8x8xf32>
    %269 = arith.truncf %268 : vector<8x8xf32> to vector<8x8xbf16>
    %cst_75 = arith.constant dense<0.000000e+00> : vector<8x8xf32>
    %270 = tpu.matmul %265, %267, %cst_75 {dimension_numbers = #tpu.dot_dimension_numbers<[1], [1], [0], [0], [0, 0, 1, 0], [], []>} : vector<8x8xbf16>, vector<8x8xbf16>, vector<8x8xf32> -> vector<8x8xf32>
    %cst_76 = arith.constant 0.353553385 : f32
    %271 = vector.broadcast %cst_76 : f32 to vector<8x8xf32>
    %272 = arith.mulf %270, %271 : vector<8x8xf32>
    %cst_77 = arith.constant dense<0xFF800000> : vector<8xf32>
    %273 = vector.multi_reduction <maximumf>, %272, %cst_77 [1] : vector<8x8xf32> to vector<8xf32>
    %274 = vector.shape_cast %273 : vector<8xf32> to vector<8x1xf32>
    %275 = vector.broadcast %274 : vector<8x1xf32> to vector<8x8xf32>
    %276 = arith.subf %272, %275 : vector<8x8xf32>
    %277 = math.exp %276 : vector<8x8xf32>
    %cst_78 = arith.constant dense<0.000000e+00> : vector<8xf32>
    %278 = vector.multi_reduction <add>, %277, %cst_78 [1] : vector<8x8xf32> to vector<8xf32>
    %279 = vector.shape_cast %278 : vector<8xf32> to vector<8x1xf32>
    %280 = tpu.reciprocal %279 {approx = true} : vector<8x1xf32> -> vector<8x1xf32>
    %281 = vector.broadcast %280 : vector<8x1xf32> to vector<8x8xf32>
    %282 = arith.mulf %277, %281 : vector<8x8xf32>
    %283 = arith.truncf %282 : vector<8x8xf32> to vector<8x8xbf16>
    %cst_79 = arith.constant dense<0.000000e+00> : vector<8x8xf32>
    %284 = tpu.matmul %283, %269, %cst_79 {dimension_numbers = #tpu.dot_dimension_numbers<[1], [0], [0], [1], [0, 0, 1, 1], [], []>} : vector<8x8xbf16>, vector<8x8xbf16>, vector<8x8xf32> -> vector<8x8xf32>
    %285 = vector.extract_strided_slice %240 {offsets = [0, 16], sizes = [8, 8], strides = [1, 1]} : vector<8x32xf32> to vector<8x8xf32>
    %286 = arith.truncf %285 : vector<8x8xf32> to vector<8x8xbf16>
    %287 = vector.extract_strided_slice %241 {offsets = [0, 16], sizes = [8, 8], strides = [1, 1]} : vector<8x32xf32> to vector<8x8xf32>
    %288 = arith.truncf %287 : vector<8x8xf32> to vector<8x8xbf16>
    %289 = vector.extract_strided_slice %242 {offsets = [0, 16], sizes = [8, 8], strides = [1, 1]} : vector<8x32xf32> to vector<8x8xf32>
    %290 = arith.truncf %289 : vector<8x8xf32> to vector<8x8xbf16>
    %cst_80 = arith.constant dense<0.000000e+00> : vector<8x8xf32>
    %291 = tpu.matmul %286, %288, %cst_80 {dimension_numbers = #tpu.dot_dimension_numbers<[1], [1], [0], [0], [0, 0, 1, 0], [], []>} : vector<8x8xbf16>, vector<8x8xbf16>, vector<8x8xf32> -> vector<8x8xf32>
    %cst_81 = arith.constant 0.353553385 : f32
    %292 = vector.broadcast %cst_81 : f32 to vector<8x8xf32>
    %293 = arith.mulf %291, %292 : vector<8x8xf32>
    %cst_82 = arith.constant dense<0xFF800000> : vector<8xf32>
    %294 = vector.multi_reduction <maximumf>, %293, %cst_82 [1] : vector<8x8xf32> to vector<8xf32>
    %295 = vector.shape_cast %294 : vector<8xf32> to vector<8x1xf32>
    %296 = vector.broadcast %295 : vector<8x1xf32> to vector<8x8xf32>
    %297 = arith.subf %293, %296 : vector<8x8xf32>
    %298 = math.exp %297 : vector<8x8xf32>
    %cst_83 = arith.constant dense<0.000000e+00> : vector<8xf32>
    %299 = vector.multi_reduction <add>, %298, %cst_83 [1] : vector<8x8xf32> to vector<8xf32>
    %300 = vector.shape_cast %299 : vector<8xf32> to vector<8x1xf32>
    %301 = tpu.reciprocal %300 {approx = true} : vector<8x1xf32> -> vector<8x1xf32>
    %302 = vector.broadcast %301 : vector<8x1xf32> to vector<8x8xf32>
    %303 = arith.mulf %298, %302 : vector<8x8xf32>
    %304 = arith.truncf %303 : vector<8x8xf32> to vector<8x8xbf16>
    %cst_84 = arith.constant dense<0.000000e+00> : vector<8x8xf32>
    %305 = tpu.matmul %304, %290, %cst_84 {dimension_numbers = #tpu.dot_dimension_numbers<[1], [0], [0], [1], [0, 0, 1, 1], [], []>} : vector<8x8xbf16>, vector<8x8xbf16>, vector<8x8xf32> -> vector<8x8xf32>
    %306 = vector.extract_strided_slice %240 {offsets = [0, 24], sizes = [8, 8], strides = [1, 1]} : vector<8x32xf32> to vector<8x8xf32>
    %307 = arith.truncf %306 : vector<8x8xf32> to vector<8x8xbf16>
    %308 = vector.extract_strided_slice %241 {offsets = [0, 24], sizes = [8, 8], strides = [1, 1]} : vector<8x32xf32> to vector<8x8xf32>
    %309 = arith.truncf %308 : vector<8x8xf32> to vector<8x8xbf16>
    %310 = vector.extract_strided_slice %242 {offsets = [0, 24], sizes = [8, 8], strides = [1, 1]} : vector<8x32xf32> to vector<8x8xf32>
    %311 = arith.truncf %310 : vector<8x8xf32> to vector<8x8xbf16>
    %cst_85 = arith.constant dense<0.000000e+00> : vector<8x8xf32>
    %312 = tpu.matmul %307, %309, %cst_85 {dimension_numbers = #tpu.dot_dimension_numbers<[1], [1], [0], [0], [0, 0, 1, 0], [], []>} : vector<8x8xbf16>, vector<8x8xbf16>, vector<8x8xf32> -> vector<8x8xf32>
    %cst_86 = arith.constant 0.353553385 : f32
    %313 = vector.broadcast %cst_86 : f32 to vector<8x8xf32>
    %314 = arith.mulf %312, %313 : vector<8x8xf32>
    %cst_87 = arith.constant dense<0xFF800000> : vector<8xf32>
    %315 = vector.multi_reduction <maximumf>, %314, %cst_87 [1] : vector<8x8xf32> to vector<8xf32>
    %316 = vector.shape_cast %315 : vector<8xf32> to vector<8x1xf32>
    %317 = vector.broadcast %316 : vector<8x1xf32> to vector<8x8xf32>
    %318 = arith.subf %314, %317 : vector<8x8xf32>
    %319 = math.exp %318 : vector<8x8xf32>
    %cst_88 = arith.constant dense<0.000000e+00> : vector<8xf32>
    %320 = vector.multi_reduction <add>, %319, %cst_88 [1] : vector<8x8xf32> to vector<8xf32>
    %321 = vector.shape_cast %320 : vector<8xf32> to vector<8x1xf32>
    %322 = tpu.reciprocal %321 {approx = true} : vector<8x1xf32> -> vector<8x1xf32>
    %323 = vector.broadcast %322 : vector<8x1xf32> to vector<8x8xf32>
    %324 = arith.mulf %319, %323 : vector<8x8xf32>
    %325 = arith.truncf %324 : vector<8x8xf32> to vector<8x8xbf16>
    %cst_89 = arith.constant dense<0.000000e+00> : vector<8x8xf32>
    %326 = tpu.matmul %325, %311, %cst_89 {dimension_numbers = #tpu.dot_dimension_numbers<[1], [0], [0], [1], [0, 0, 1, 1], [], []>} : vector<8x8xbf16>, vector<8x8xbf16>, vector<8x8xf32> -> vector<8x8xf32>
    %327 = tpu.concatenate %263, %284, %305, %326 in 1 : vector<8x8xf32>, vector<8x8xf32>, vector<8x8xf32>, vector<8x8xf32> -> vector<8x32xf32>
    %328 = vector.extract_strided_slice %233 {offsets = [8, 0], sizes = [8, 32], strides = [1, 1]} : vector<16x32xf32> to vector<8x32xf32>
    %329 = vector.extract_strided_slice %239 {offsets = [8, 0], sizes = [8, 32], strides = [1, 1]} : vector<16x64xf32> to vector<8x32xf32>
    %330 = vector.extract_strided_slice %239 {offsets = [8, 32], sizes = [8, 32], strides = [1, 1]} : vector<16x64xf32> to vector<8x32xf32>
    %331 = vector.extract_strided_slice %328 {offsets = [0, 0], sizes = [8, 8], strides = [1, 1]} : vector<8x32xf32> to vector<8x8xf32>
    %332 = arith.truncf %331 : vector<8x8xf32> to vector<8x8xbf16>
    %333 = vector.extract_strided_slice %329 {offsets = [0, 0], sizes = [8, 8], strides = [1, 1]} : vector<8x32xf32> to vector<8x8xf32>
    %334 = arith.truncf %333 : vector<8x8xf32> to vector<8x8xbf16>
    %335 = vector.extract_strided_slice %330 {offsets = [0, 0], sizes = [8, 8], strides = [1, 1]} : vector<8x32xf32> to vector<8x8xf32>
    %336 = arith.truncf %335 : vector<8x8xf32> to vector<8x8xbf16>
    %cst_90 = arith.constant dense<0.000000e+00> : vector<8x8xf32>
    %337 = tpu.matmul %332, %334, %cst_90 {dimension_numbers = #tpu.dot_dimension_numbers<[1], [1], [0], [0], [0, 0, 1, 0], [], []>} : vector<8x8xbf16>, vector<8x8xbf16>, vector<8x8xf32> -> vector<8x8xf32>
    %cst_91 = arith.constant 0.353553385 : f32
    %338 = vector.broadcast %cst_91 : f32 to vector<8x8xf32>
    %339 = arith.mulf %337, %338 : vector<8x8xf32>
    %cst_92 = arith.constant dense<0xFF800000> : vector<8xf32>
    %340 = vector.multi_reduction <maximumf>, %339, %cst_92 [1] : vector<8x8xf32> to vector<8xf32>
    %341 = vector.shape_cast %340 : vector<8xf32> to vector<8x1xf32>
    %342 = vector.broadcast %341 : vector<8x1xf32> to vector<8x8xf32>
    %343 = arith.subf %339, %342 : vector<8x8xf32>
    %344 = math.exp %343 : vector<8x8xf32>
    %cst_93 = arith.constant dense<0.000000e+00> : vector<8xf32>
    %345 = vector.multi_reduction <add>, %344, %cst_93 [1] : vector<8x8xf32> to vector<8xf32>
    %346 = vector.shape_cast %345 : vector<8xf32> to vector<8x1xf32>
    %347 = tpu.reciprocal %346 {approx = true} : vector<8x1xf32> -> vector<8x1xf32>
    %348 = vector.broadcast %347 : vector<8x1xf32> to vector<8x8xf32>
    %349 = arith.mulf %344, %348 : vector<8x8xf32>
    %350 = arith.truncf %349 : vector<8x8xf32> to vector<8x8xbf16>
    %cst_94 = arith.constant dense<0.000000e+00> : vector<8x8xf32>
    %351 = tpu.matmul %350, %336, %cst_94 {dimension_numbers = #tpu.dot_dimension_numbers<[1], [0], [0], [1], [0, 0, 1, 1], [], []>} : vector<8x8xbf16>, vector<8x8xbf16>, vector<8x8xf32> -> vector<8x8xf32>
    %352 = vector.extract_strided_slice %328 {offsets = [0, 8], sizes = [8, 8], strides = [1, 1]} : vector<8x32xf32> to vector<8x8xf32>
    %353 = arith.truncf %352 : vector<8x8xf32> to vector<8x8xbf16>
    %354 = vector.extract_strided_slice %329 {offsets = [0, 8], sizes = [8, 8], strides = [1, 1]} : vector<8x32xf32> to vector<8x8xf32>
    %355 = arith.truncf %354 : vector<8x8xf32> to vector<8x8xbf16>
    %356 = vector.extract_strided_slice %330 {offsets = [0, 8], sizes = [8, 8], strides = [1, 1]} : vector<8x32xf32> to vector<8x8xf32>
    %357 = arith.truncf %356 : vector<8x8xf32> to vector<8x8xbf16>
    %cst_95 = arith.constant dense<0.000000e+00> : vector<8x8xf32>
    %358 = tpu.matmul %353, %355, %cst_95 {dimension_numbers = #tpu.dot_dimension_numbers<[1], [1], [0], [0], [0, 0, 1, 0], [], []>} : vector<8x8xbf16>, vector<8x8xbf16>, vector<8x8xf32> -> vector<8x8xf32>
    %cst_96 = arith.constant 0.353553385 : f32
    %359 = vector.broadcast %cst_96 : f32 to vector<8x8xf32>
    %360 = arith.mulf %358, %359 : vector<8x8xf32>
    %cst_97 = arith.constant dense<0xFF800000> : vector<8xf32>
    %361 = vector.multi_reduction <maximumf>, %360, %cst_97 [1] : vector<8x8xf32> to vector<8xf32>
    %362 = vector.shape_cast %361 : vector<8xf32> to vector<8x1xf32>
    %363 = vector.broadcast %362 : vector<8x1xf32> to vector<8x8xf32>
    %364 = arith.subf %360, %363 : vector<8x8xf32>
    %365 = math.exp %364 : vector<8x8xf32>
    %cst_98 = arith.constant dense<0.000000e+00> : vector<8xf32>
    %366 = vector.multi_reduction <add>, %365, %cst_98 [1] : vector<8x8xf32> to vector<8xf32>
    %367 = vector.shape_cast %366 : vector<8xf32> to vector<8x1xf32>
    %368 = tpu.reciprocal %367 {approx = true} : vector<8x1xf32> -> vector<8x1xf32>
    %369 = vector.broadcast %368 : vector<8x1xf32> to vector<8x8xf32>
    %370 = arith.mulf %365, %369 : vector<8x8xf32>
    %371 = arith.truncf %370 : vector<8x8xf32> to vector<8x8xbf16>
    %cst_99 = arith.constant dense<0.000000e+00> : vector<8x8xf32>
    %372 = tpu.matmul %371, %357, %cst_99 {dimension_numbers = #tpu.dot_dimension_numbers<[1], [0], [0], [1], [0, 0, 1, 1], [], []>} : vector<8x8xbf16>, vector<8x8xbf16>, vector<8x8xf32> -> vector<8x8xf32>
    %373 = vector.extract_strided_slice %328 {offsets = [0, 16], sizes = [8, 8], strides = [1, 1]} : vector<8x32xf32> to vector<8x8xf32>
    %374 = arith.truncf %373 : vector<8x8xf32> to vector<8x8xbf16>
    %375 = vector.extract_strided_slice %329 {offsets = [0, 16], sizes = [8, 8], strides = [1, 1]} : vector<8x32xf32> to vector<8x8xf32>
    %376 = arith.truncf %375 : vector<8x8xf32> to vector<8x8xbf16>
    %377 = vector.extract_strided_slice %330 {offsets = [0, 16], sizes = [8, 8], strides = [1, 1]} : vector<8x32xf32> to vector<8x8xf32>
    %378 = arith.truncf %377 : vector<8x8xf32> to vector<8x8xbf16>
    %cst_100 = arith.constant dense<0.000000e+00> : vector<8x8xf32>
    %379 = tpu.matmul %374, %376, %cst_100 {dimension_numbers = #tpu.dot_dimension_numbers<[1], [1], [0], [0], [0, 0, 1, 0], [], []>} : vector<8x8xbf16>, vector<8x8xbf16>, vector<8x8xf32> -> vector<8x8xf32>
    %cst_101 = arith.constant 0.353553385 : f32
    %380 = vector.broadcast %cst_101 : f32 to vector<8x8xf32>
    %381 = arith.mulf %379, %380 : vector<8x8xf32>
    %cst_102 = arith.constant dense<0xFF800000> : vector<8xf32>
    %382 = vector.multi_reduction <maximumf>, %381, %cst_102 [1] : vector<8x8xf32> to vector<8xf32>
    %383 = vector.shape_cast %382 : vector<8xf32> to vector<8x1xf32>
    %384 = vector.broadcast %383 : vector<8x1xf32> to vector<8x8xf32>
    %385 = arith.subf %381, %384 : vector<8x8xf32>
    %386 = math.exp %385 : vector<8x8xf32>
    %cst_103 = arith.constant dense<0.000000e+00> : vector<8xf32>
    %387 = vector.multi_reduction <add>, %386, %cst_103 [1] : vector<8x8xf32> to vector<8xf32>
    %388 = vector.shape_cast %387 : vector<8xf32> to vector<8x1xf32>
    %389 = tpu.reciprocal %388 {approx = true} : vector<8x1xf32> -> vector<8x1xf32>
    %390 = vector.broadcast %389 : vector<8x1xf32> to vector<8x8xf32>
    %391 = arith.mulf %386, %390 : vector<8x8xf32>
    %392 = arith.truncf %391 : vector<8x8xf32> to vector<8x8xbf16>
    %cst_104 = arith.constant dense<0.000000e+00> : vector<8x8xf32>
    %393 = tpu.matmul %392, %378, %cst_104 {dimension_numbers = #tpu.dot_dimension_numbers<[1], [0], [0], [1], [0, 0, 1, 1], [], []>} : vector<8x8xbf16>, vector<8x8xbf16>, vector<8x8xf32> -> vector<8x8xf32>
    %394 = vector.extract_strided_slice %328 {offsets = [0, 24], sizes = [8, 8], strides = [1, 1]} : vector<8x32xf32> to vector<8x8xf32>
    %395 = arith.truncf %394 : vector<8x8xf32> to vector<8x8xbf16>
    %396 = vector.extract_strided_slice %329 {offsets = [0, 24], sizes = [8, 8], strides = [1, 1]} : vector<8x32xf32> to vector<8x8xf32>
    %397 = arith.truncf %396 : vector<8x8xf32> to vector<8x8xbf16>
    %398 = vector.extract_strided_slice %330 {offsets = [0, 24], sizes = [8, 8], strides = [1, 1]} : vector<8x32xf32> to vector<8x8xf32>
    %399 = arith.truncf %398 : vector<8x8xf32> to vector<8x8xbf16>
    %cst_105 = arith.constant dense<0.000000e+00> : vector<8x8xf32>
    %400 = tpu.matmul %395, %397, %cst_105 {dimension_numbers = #tpu.dot_dimension_numbers<[1], [1], [0], [0], [0, 0, 1, 0], [], []>} : vector<8x8xbf16>, vector<8x8xbf16>, vector<8x8xf32> -> vector<8x8xf32>
    %cst_106 = arith.constant 0.353553385 : f32
    %401 = vector.broadcast %cst_106 : f32 to vector<8x8xf32>
    %402 = arith.mulf %400, %401 : vector<8x8xf32>
    %cst_107 = arith.constant dense<0xFF800000> : vector<8xf32>
    %403 = vector.multi_reduction <maximumf>, %402, %cst_107 [1] : vector<8x8xf32> to vector<8xf32>
    %404 = vector.shape_cast %403 : vector<8xf32> to vector<8x1xf32>
    %405 = vector.broadcast %404 : vector<8x1xf32> to vector<8x8xf32>
    %406 = arith.subf %402, %405 : vector<8x8xf32>
    %407 = math.exp %406 : vector<8x8xf32>
    %cst_108 = arith.constant dense<0.000000e+00> : vector<8xf32>
    %408 = vector.multi_reduction <add>, %407, %cst_108 [1] : vector<8x8xf32> to vector<8xf32>
    %409 = vector.shape_cast %408 : vector<8xf32> to vector<8x1xf32>
    %410 = tpu.reciprocal %409 {approx = true} : vector<8x1xf32> -> vector<8x1xf32>
    %411 = vector.broadcast %410 : vector<8x1xf32> to vector<8x8xf32>
    %412 = arith.mulf %407, %411 : vector<8x8xf32>
    %413 = arith.truncf %412 : vector<8x8xf32> to vector<8x8xbf16>
    %cst_109 = arith.constant dense<0.000000e+00> : vector<8x8xf32>
    %414 = tpu.matmul %413, %399, %cst_109 {dimension_numbers = #tpu.dot_dimension_numbers<[1], [0], [0], [1], [0, 0, 1, 1], [], []>} : vector<8x8xbf16>, vector<8x8xbf16>, vector<8x8xf32> -> vector<8x8xf32>
    %415 = tpu.concatenate %351, %372, %393, %414 in 1 : vector<8x8xf32>, vector<8x8xf32>, vector<8x8xf32>, vector<8x8xf32> -> vector<8x32xf32>
    %416 = tpu.concatenate %327, %415 in 0 : vector<8x32xf32>, vector<8x32xf32> -> vector<16x32xf32>
    %417 = arith.truncf %416 : vector<16x32xf32> to vector<16x32xbf16>
    %c0_110 = arith.constant 0 : index
    %c640 = arith.constant 640 : index
    %418 = vector.load %arg2[%c0_110, %c640] : memref<64x2048xbf16, #tpu.memory_space<vmem>>, vector<32x32xbf16>
    %cst_111 = arith.constant dense<0.000000e+00> : vector<16x32xf32>
    %419 = tpu.matmul %417, %418, %cst_111 {dimension_numbers = #tpu.dot_dimension_numbers<[1], [0], [0], [1], [0, 0, 1, 1], [], []>} : vector<16x32xbf16>, vector<32x32xbf16>, vector<16x32xf32> -> vector<16x32xf32>
    %c0_112 = arith.constant 0 : index
    %c640_113 = arith.constant 640 : index
    %420 = vector.load %arg3[%c0_112, %c640_113] : memref<1x3584xf32, #tpu.memory_space<vmem>>, vector<1x32xf32>
    %421 = vector.broadcast %420 : vector<1x32xf32> to vector<16x32xf32>
    %422 = arith.addf %419, %421 : vector<16x32xf32>
    %423 = arith.addf %227, %422 : vector<16x32xf32>
    %cst_114 = arith.constant dense<0.000000e+00> : vector<16xf32>
    %424 = vector.multi_reduction <add>, %423, %cst_114 [1] : vector<16x32xf32> to vector<16xf32>
    %425 = vector.shape_cast %424 : vector<16xf32> to vector<16x1xf32>
    %cst_115 = arith.constant 3.200000e+01 : f32
    %426 = vector.broadcast %cst_115 : f32 to vector<16x1xf32>
    %427 = arith.divf %425, %426 : vector<16x1xf32>
    %428 = arith.mulf %423, %423 : vector<16x32xf32>
    %cst_116 = arith.constant dense<0.000000e+00> : vector<16xf32>
    %429 = vector.multi_reduction <add>, %428, %cst_116 [1] : vector<16x32xf32> to vector<16xf32>
    %430 = vector.shape_cast %429 : vector<16xf32> to vector<16x1xf32>
    %cst_117 = arith.constant 3.200000e+01 : f32
    %431 = vector.broadcast %cst_117 : f32 to vector<16x1xf32>
    %432 = arith.divf %430, %431 : vector<16x1xf32>
    %433 = arith.mulf %427, %427 : vector<16x1xf32>
    %434 = arith.subf %432, %433 : vector<16x1xf32>
    %435 = vector.broadcast %427 : vector<16x1xf32> to vector<16x32xf32>
    %436 = arith.subf %423, %435 : vector<16x32xf32>
    %cst_118 = arith.constant 9.99999974E-6 : f32
    %437 = vector.broadcast %cst_118 : f32 to vector<16x1xf32>
    %438 = arith.addf %434, %437 : vector<16x1xf32>
    %439 = math.rsqrt %438 : vector<16x1xf32>
    %440 = vector.broadcast %439 : vector<16x1xf32> to vector<16x32xf32>
    %441 = arith.mulf %436, %440 : vector<16x32xf32>
    %c0_119 = arith.constant 0 : index
    %c1280 = arith.constant 1280 : index
    %442 = vector.load %arg3[%c0_119, %c1280] : memref<1x3584xf32, #tpu.memory_space<vmem>>, vector<1x32xf32>
    %443 = vector.broadcast %442 : vector<1x32xf32> to vector<16x32xf32>
    %444 = arith.mulf %441, %443 : vector<16x32xf32>
    %c0_120 = arith.constant 0 : index
    %c1408 = arith.constant 1408 : index
    %445 = vector.load %arg3[%c0_120, %c1408] : memref<1x3584xf32, #tpu.memory_space<vmem>>, vector<1x32xf32>
    %446 = vector.broadcast %445 : vector<1x32xf32> to vector<16x32xf32>
    %447 = arith.addf %444, %446 : vector<16x32xf32>
    %448 = arith.truncf %447 : vector<16x32xf32> to vector<16x32xbf16>
    %c0_121 = arith.constant 0 : index
    %c768 = arith.constant 768 : index
    %449 = vector.load %arg2[%c0_121, %c768] : memref<64x2048xbf16, #tpu.memory_space<vmem>>, vector<32x64xbf16>
    %cst_122 = arith.constant dense<0.000000e+00> : vector<16x64xf32>
    %450 = tpu.matmul %448, %449, %cst_122 {dimension_numbers = #tpu.dot_dimension_numbers<[1], [0], [0], [1], [0, 0, 1, 1], [], []>} : vector<16x32xbf16>, vector<32x64xbf16>, vector<16x64xf32> -> vector<16x64xf32>
    %c0_123 = arith.constant 0 : index
    %c768_124 = arith.constant 768 : index
    %451 = vector.load %arg3[%c0_123, %c768_124] : memref<1x3584xf32, #tpu.memory_space<vmem>>, vector<1x64xf32>
    %452 = vector.broadcast %451 : vector<1x64xf32> to vector<16x64xf32>
    %453 = arith.addf %450, %452 : vector<16x64xf32>
    %cst_125 = arith.constant 0.000000e+00 : f32
    %454 = vector.broadcast %cst_125 : f32 to vector<16x64xf32>
    %455 = arith.maximumf %453, %454 : vector<16x64xf32>
    %456 = arith.truncf %455 : vector<16x64xf32> to vector<16x64xbf16>
    %c0_126 = arith.constant 0 : index
    %c896 = arith.constant 896 : index
    %457 = vector.load %arg2[%c0_126, %c896] : memref<64x2048xbf16, #tpu.memory_space<vmem>>, vector<64x32xbf16>
    %cst_127 = arith.constant dense<0.000000e+00> : vector<16x32xf32>
    %458 = tpu.matmul %456, %457, %cst_127 {dimension_numbers = #tpu.dot_dimension_numbers<[1], [0], [0], [1], [0, 0, 1, 1], [], []>} : vector<16x64xbf16>, vector<64x32xbf16>, vector<16x32xf32> -> vector<16x32xf32>
    %c0_128 = arith.constant 0 : index
    %c896_129 = arith.constant 896 : index
    %459 = vector.load %arg3[%c0_128, %c896_129] : memref<1x3584xf32, #tpu.memory_space<vmem>>, vector<1x32xf32>
    %460 = vector.broadcast %459 : vector<1x32xf32> to vector<16x32xf32>
    %461 = arith.addf %458, %460 : vector<16x32xf32>
    %462 = arith.addf %447, %461 : vector<16x32xf32>
    %cst_130 = arith.constant dense<0.000000e+00> : vector<16xf32>
    %463 = vector.multi_reduction <add>, %462, %cst_130 [1] : vector<16x32xf32> to vector<16xf32>
    %464 = vector.shape_cast %463 : vector<16xf32> to vector<16x1xf32>
    %cst_131 = arith.constant 3.200000e+01 : f32
    %465 = vector.broadcast %cst_131 : f32 to vector<16x1xf32>
    %466 = arith.divf %464, %465 : vector<16x1xf32>
    %467 = arith.mulf %462, %462 : vector<16x32xf32>
    %cst_132 = arith.constant dense<0.000000e+00> : vector<16xf32>
    %468 = vector.multi_reduction <add>, %467, %cst_132 [1] : vector<16x32xf32> to vector<16xf32>
    %469 = vector.shape_cast %468 : vector<16xf32> to vector<16x1xf32>
    %cst_133 = arith.constant 3.200000e+01 : f32
    %470 = vector.broadcast %cst_133 : f32 to vector<16x1xf32>
    %471 = arith.divf %469, %470 : vector<16x1xf32>
    %472 = arith.mulf %466, %466 : vector<16x1xf32>
    %473 = arith.subf %471, %472 : vector<16x1xf32>
    %474 = vector.broadcast %466 : vector<16x1xf32> to vector<16x32xf32>
    %475 = arith.subf %462, %474 : vector<16x32xf32>
    %cst_134 = arith.constant 9.99999974E-6 : f32
    %476 = vector.broadcast %cst_134 : f32 to vector<16x1xf32>
    %477 = arith.addf %473, %476 : vector<16x1xf32>
    %478 = math.rsqrt %477 : vector<16x1xf32>
    %479 = vector.broadcast %478 : vector<16x1xf32> to vector<16x32xf32>
    %480 = arith.mulf %475, %479 : vector<16x32xf32>
    %c0_135 = arith.constant 0 : index
    %c1536 = arith.constant 1536 : index
    %481 = vector.load %arg3[%c0_135, %c1536] : memref<1x3584xf32, #tpu.memory_space<vmem>>, vector<1x32xf32>
    %482 = vector.broadcast %481 : vector<1x32xf32> to vector<16x32xf32>
    %483 = arith.mulf %480, %482 : vector<16x32xf32>
    %c0_136 = arith.constant 0 : index
    %c1664 = arith.constant 1664 : index
    %484 = vector.load %arg3[%c0_136, %c1664] : memref<1x3584xf32, #tpu.memory_space<vmem>>, vector<1x32xf32>
    %485 = vector.broadcast %484 : vector<1x32xf32> to vector<16x32xf32>
    %486 = arith.addf %483, %485 : vector<16x32xf32>
    %487 = arith.truncf %486 : vector<16x32xf32> to vector<16x32xbf16>
    %c0_137 = arith.constant 0 : index
    %c1024_138 = arith.constant 1024 : index
    %488 = vector.load %arg2[%c0_137, %c1024_138] : memref<64x2048xbf16, #tpu.memory_space<vmem>>, vector<32x96xbf16>
    %cst_139 = arith.constant dense<0.000000e+00> : vector<16x96xf32>
    %489 = tpu.matmul %487, %488, %cst_139 {dimension_numbers = #tpu.dot_dimension_numbers<[1], [0], [0], [1], [0, 0, 1, 1], [], []>} : vector<16x32xbf16>, vector<32x96xbf16>, vector<16x96xf32> -> vector<16x96xf32>
    %c0_140 = arith.constant 0 : index
    %c1792 = arith.constant 1792 : index
    %490 = vector.load %arg3[%c0_140, %c1792] : memref<1x3584xf32, #tpu.memory_space<vmem>>, vector<1x96xf32>
    %491 = vector.broadcast %490 : vector<1x96xf32> to vector<16x96xf32>
    %492 = arith.addf %489, %491 : vector<16x96xf32>
    %493 = vector.extract_strided_slice %492 {offsets = [0, 0], sizes = [8, 32], strides = [1, 1]} : vector<16x96xf32> to vector<8x32xf32>
    %494 = vector.extract_strided_slice %492 {offsets = [0, 32], sizes = [8, 32], strides = [1, 1]} : vector<16x96xf32> to vector<8x32xf32>
    %495 = vector.extract_strided_slice %492 {offsets = [0, 64], sizes = [8, 32], strides = [1, 1]} : vector<16x96xf32> to vector<8x32xf32>
    %496 = vector.extract_strided_slice %493 {offsets = [0, 0], sizes = [8, 8], strides = [1, 1]} : vector<8x32xf32> to vector<8x8xf32>
    %497 = arith.truncf %496 : vector<8x8xf32> to vector<8x8xbf16>
    %498 = vector.extract_strided_slice %494 {offsets = [0, 0], sizes = [8, 8], strides = [1, 1]} : vector<8x32xf32> to vector<8x8xf32>
    %499 = arith.truncf %498 : vector<8x8xf32> to vector<8x8xbf16>
    %500 = vector.extract_strided_slice %495 {offsets = [0, 0], sizes = [8, 8], strides = [1, 1]} : vector<8x32xf32> to vector<8x8xf32>
    %501 = arith.truncf %500 : vector<8x8xf32> to vector<8x8xbf16>
    %cst_141 = arith.constant dense<0.000000e+00> : vector<8x8xf32>
    %502 = tpu.matmul %497, %499, %cst_141 {dimension_numbers = #tpu.dot_dimension_numbers<[1], [1], [0], [0], [0, 0, 1, 0], [], []>} : vector<8x8xbf16>, vector<8x8xbf16>, vector<8x8xf32> -> vector<8x8xf32>
    %cst_142 = arith.constant 0.353553385 : f32
    %503 = vector.broadcast %cst_142 : f32 to vector<8x8xf32>
    %504 = arith.mulf %502, %503 : vector<8x8xf32>
    %cst_143 = arith.constant dense<0xFF800000> : vector<8xf32>
    %505 = vector.multi_reduction <maximumf>, %504, %cst_143 [1] : vector<8x8xf32> to vector<8xf32>
    %506 = vector.shape_cast %505 : vector<8xf32> to vector<8x1xf32>
    %507 = vector.broadcast %506 : vector<8x1xf32> to vector<8x8xf32>
    %508 = arith.subf %504, %507 : vector<8x8xf32>
    %509 = math.exp %508 : vector<8x8xf32>
    %cst_144 = arith.constant dense<0.000000e+00> : vector<8xf32>
    %510 = vector.multi_reduction <add>, %509, %cst_144 [1] : vector<8x8xf32> to vector<8xf32>
    %511 = vector.shape_cast %510 : vector<8xf32> to vector<8x1xf32>
    %512 = tpu.reciprocal %511 {approx = true} : vector<8x1xf32> -> vector<8x1xf32>
    %513 = vector.broadcast %512 : vector<8x1xf32> to vector<8x8xf32>
    %514 = arith.mulf %509, %513 : vector<8x8xf32>
    %515 = arith.truncf %514 : vector<8x8xf32> to vector<8x8xbf16>
    %cst_145 = arith.constant dense<0.000000e+00> : vector<8x8xf32>
    %516 = tpu.matmul %515, %501, %cst_145 {dimension_numbers = #tpu.dot_dimension_numbers<[1], [0], [0], [1], [0, 0, 1, 1], [], []>} : vector<8x8xbf16>, vector<8x8xbf16>, vector<8x8xf32> -> vector<8x8xf32>
    %517 = vector.extract_strided_slice %493 {offsets = [0, 8], sizes = [8, 8], strides = [1, 1]} : vector<8x32xf32> to vector<8x8xf32>
    %518 = arith.truncf %517 : vector<8x8xf32> to vector<8x8xbf16>
    %519 = vector.extract_strided_slice %494 {offsets = [0, 8], sizes = [8, 8], strides = [1, 1]} : vector<8x32xf32> to vector<8x8xf32>
    %520 = arith.truncf %519 : vector<8x8xf32> to vector<8x8xbf16>
    %521 = vector.extract_strided_slice %495 {offsets = [0, 8], sizes = [8, 8], strides = [1, 1]} : vector<8x32xf32> to vector<8x8xf32>
    %522 = arith.truncf %521 : vector<8x8xf32> to vector<8x8xbf16>
    %cst_146 = arith.constant dense<0.000000e+00> : vector<8x8xf32>
    %523 = tpu.matmul %518, %520, %cst_146 {dimension_numbers = #tpu.dot_dimension_numbers<[1], [1], [0], [0], [0, 0, 1, 0], [], []>} : vector<8x8xbf16>, vector<8x8xbf16>, vector<8x8xf32> -> vector<8x8xf32>
    %cst_147 = arith.constant 0.353553385 : f32
    %524 = vector.broadcast %cst_147 : f32 to vector<8x8xf32>
    %525 = arith.mulf %523, %524 : vector<8x8xf32>
    %cst_148 = arith.constant dense<0xFF800000> : vector<8xf32>
    %526 = vector.multi_reduction <maximumf>, %525, %cst_148 [1] : vector<8x8xf32> to vector<8xf32>
    %527 = vector.shape_cast %526 : vector<8xf32> to vector<8x1xf32>
    %528 = vector.broadcast %527 : vector<8x1xf32> to vector<8x8xf32>
    %529 = arith.subf %525, %528 : vector<8x8xf32>
    %530 = math.exp %529 : vector<8x8xf32>
    %cst_149 = arith.constant dense<0.000000e+00> : vector<8xf32>
    %531 = vector.multi_reduction <add>, %530, %cst_149 [1] : vector<8x8xf32> to vector<8xf32>
    %532 = vector.shape_cast %531 : vector<8xf32> to vector<8x1xf32>
    %533 = tpu.reciprocal %532 {approx = true} : vector<8x1xf32> -> vector<8x1xf32>
    %534 = vector.broadcast %533 : vector<8x1xf32> to vector<8x8xf32>
    %535 = arith.mulf %530, %534 : vector<8x8xf32>
    %536 = arith.truncf %535 : vector<8x8xf32> to vector<8x8xbf16>
    %cst_150 = arith.constant dense<0.000000e+00> : vector<8x8xf32>
    %537 = tpu.matmul %536, %522, %cst_150 {dimension_numbers = #tpu.dot_dimension_numbers<[1], [0], [0], [1], [0, 0, 1, 1], [], []>} : vector<8x8xbf16>, vector<8x8xbf16>, vector<8x8xf32> -> vector<8x8xf32>
    %538 = vector.extract_strided_slice %493 {offsets = [0, 16], sizes = [8, 8], strides = [1, 1]} : vector<8x32xf32> to vector<8x8xf32>
    %539 = arith.truncf %538 : vector<8x8xf32> to vector<8x8xbf16>
    %540 = vector.extract_strided_slice %494 {offsets = [0, 16], sizes = [8, 8], strides = [1, 1]} : vector<8x32xf32> to vector<8x8xf32>
    %541 = arith.truncf %540 : vector<8x8xf32> to vector<8x8xbf16>
    %542 = vector.extract_strided_slice %495 {offsets = [0, 16], sizes = [8, 8], strides = [1, 1]} : vector<8x32xf32> to vector<8x8xf32>
    %543 = arith.truncf %542 : vector<8x8xf32> to vector<8x8xbf16>
    %cst_151 = arith.constant dense<0.000000e+00> : vector<8x8xf32>
    %544 = tpu.matmul %539, %541, %cst_151 {dimension_numbers = #tpu.dot_dimension_numbers<[1], [1], [0], [0], [0, 0, 1, 0], [], []>} : vector<8x8xbf16>, vector<8x8xbf16>, vector<8x8xf32> -> vector<8x8xf32>
    %cst_152 = arith.constant 0.353553385 : f32
    %545 = vector.broadcast %cst_152 : f32 to vector<8x8xf32>
    %546 = arith.mulf %544, %545 : vector<8x8xf32>
    %cst_153 = arith.constant dense<0xFF800000> : vector<8xf32>
    %547 = vector.multi_reduction <maximumf>, %546, %cst_153 [1] : vector<8x8xf32> to vector<8xf32>
    %548 = vector.shape_cast %547 : vector<8xf32> to vector<8x1xf32>
    %549 = vector.broadcast %548 : vector<8x1xf32> to vector<8x8xf32>
    %550 = arith.subf %546, %549 : vector<8x8xf32>
    %551 = math.exp %550 : vector<8x8xf32>
    %cst_154 = arith.constant dense<0.000000e+00> : vector<8xf32>
    %552 = vector.multi_reduction <add>, %551, %cst_154 [1] : vector<8x8xf32> to vector<8xf32>
    %553 = vector.shape_cast %552 : vector<8xf32> to vector<8x1xf32>
    %554 = tpu.reciprocal %553 {approx = true} : vector<8x1xf32> -> vector<8x1xf32>
    %555 = vector.broadcast %554 : vector<8x1xf32> to vector<8x8xf32>
    %556 = arith.mulf %551, %555 : vector<8x8xf32>
    %557 = arith.truncf %556 : vector<8x8xf32> to vector<8x8xbf16>
    %cst_155 = arith.constant dense<0.000000e+00> : vector<8x8xf32>
    %558 = tpu.matmul %557, %543, %cst_155 {dimension_numbers = #tpu.dot_dimension_numbers<[1], [0], [0], [1], [0, 0, 1, 1], [], []>} : vector<8x8xbf16>, vector<8x8xbf16>, vector<8x8xf32> -> vector<8x8xf32>
    %559 = vector.extract_strided_slice %493 {offsets = [0, 24], sizes = [8, 8], strides = [1, 1]} : vector<8x32xf32> to vector<8x8xf32>
    %560 = arith.truncf %559 : vector<8x8xf32> to vector<8x8xbf16>
    %561 = vector.extract_strided_slice %494 {offsets = [0, 24], sizes = [8, 8], strides = [1, 1]} : vector<8x32xf32> to vector<8x8xf32>
    %562 = arith.truncf %561 : vector<8x8xf32> to vector<8x8xbf16>
    %563 = vector.extract_strided_slice %495 {offsets = [0, 24], sizes = [8, 8], strides = [1, 1]} : vector<8x32xf32> to vector<8x8xf32>
    %564 = arith.truncf %563 : vector<8x8xf32> to vector<8x8xbf16>
    %cst_156 = arith.constant dense<0.000000e+00> : vector<8x8xf32>
    %565 = tpu.matmul %560, %562, %cst_156 {dimension_numbers = #tpu.dot_dimension_numbers<[1], [1], [0], [0], [0, 0, 1, 0], [], []>} : vector<8x8xbf16>, vector<8x8xbf16>, vector<8x8xf32> -> vector<8x8xf32>
    %cst_157 = arith.constant 0.353553385 : f32
    %566 = vector.broadcast %cst_157 : f32 to vector<8x8xf32>
    %567 = arith.mulf %565, %566 : vector<8x8xf32>
    %cst_158 = arith.constant dense<0xFF800000> : vector<8xf32>
    %568 = vector.multi_reduction <maximumf>, %567, %cst_158 [1] : vector<8x8xf32> to vector<8xf32>
    %569 = vector.shape_cast %568 : vector<8xf32> to vector<8x1xf32>
    %570 = vector.broadcast %569 : vector<8x1xf32> to vector<8x8xf32>
    %571 = arith.subf %567, %570 : vector<8x8xf32>
    %572 = math.exp %571 : vector<8x8xf32>
    %cst_159 = arith.constant dense<0.000000e+00> : vector<8xf32>
    %573 = vector.multi_reduction <add>, %572, %cst_159 [1] : vector<8x8xf32> to vector<8xf32>
    %574 = vector.shape_cast %573 : vector<8xf32> to vector<8x1xf32>
    %575 = tpu.reciprocal %574 {approx = true} : vector<8x1xf32> -> vector<8x1xf32>
    %576 = vector.broadcast %575 : vector<8x1xf32> to vector<8x8xf32>
    %577 = arith.mulf %572, %576 : vector<8x8xf32>
    %578 = arith.truncf %577 : vector<8x8xf32> to vector<8x8xbf16>
    %cst_160 = arith.constant dense<0.000000e+00> : vector<8x8xf32>
    %579 = tpu.matmul %578, %564, %cst_160 {dimension_numbers = #tpu.dot_dimension_numbers<[1], [0], [0], [1], [0, 0, 1, 1], [], []>} : vector<8x8xbf16>, vector<8x8xbf16>, vector<8x8xf32> -> vector<8x8xf32>
    %580 = tpu.concatenate %516, %537, %558, %579 in 1 : vector<8x8xf32>, vector<8x8xf32>, vector<8x8xf32>, vector<8x8xf32> -> vector<8x32xf32>
    %581 = vector.extract_strided_slice %492 {offsets = [8, 0], sizes = [8, 32], strides = [1, 1]} : vector<16x96xf32> to vector<8x32xf32>
    %582 = vector.extract_strided_slice %492 {offsets = [8, 32], sizes = [8, 32], strides = [1, 1]} : vector<16x96xf32> to vector<8x32xf32>
    %583 = vector.extract_strided_slice %492 {offsets = [8, 64], sizes = [8, 32], strides = [1, 1]} : vector<16x96xf32> to vector<8x32xf32>
    %584 = vector.extract_strided_slice %581 {offsets = [0, 0], sizes = [8, 8], strides = [1, 1]} : vector<8x32xf32> to vector<8x8xf32>
    %585 = arith.truncf %584 : vector<8x8xf32> to vector<8x8xbf16>
    %586 = vector.extract_strided_slice %582 {offsets = [0, 0], sizes = [8, 8], strides = [1, 1]} : vector<8x32xf32> to vector<8x8xf32>
    %587 = arith.truncf %586 : vector<8x8xf32> to vector<8x8xbf16>
    %588 = vector.extract_strided_slice %583 {offsets = [0, 0], sizes = [8, 8], strides = [1, 1]} : vector<8x32xf32> to vector<8x8xf32>
    %589 = arith.truncf %588 : vector<8x8xf32> to vector<8x8xbf16>
    %cst_161 = arith.constant dense<0.000000e+00> : vector<8x8xf32>
    %590 = tpu.matmul %585, %587, %cst_161 {dimension_numbers = #tpu.dot_dimension_numbers<[1], [1], [0], [0], [0, 0, 1, 0], [], []>} : vector<8x8xbf16>, vector<8x8xbf16>, vector<8x8xf32> -> vector<8x8xf32>
    %cst_162 = arith.constant 0.353553385 : f32
    %591 = vector.broadcast %cst_162 : f32 to vector<8x8xf32>
    %592 = arith.mulf %590, %591 : vector<8x8xf32>
    %cst_163 = arith.constant dense<0xFF800000> : vector<8xf32>
    %593 = vector.multi_reduction <maximumf>, %592, %cst_163 [1] : vector<8x8xf32> to vector<8xf32>
    %594 = vector.shape_cast %593 : vector<8xf32> to vector<8x1xf32>
    %595 = vector.broadcast %594 : vector<8x1xf32> to vector<8x8xf32>
    %596 = arith.subf %592, %595 : vector<8x8xf32>
    %597 = math.exp %596 : vector<8x8xf32>
    %cst_164 = arith.constant dense<0.000000e+00> : vector<8xf32>
    %598 = vector.multi_reduction <add>, %597, %cst_164 [1] : vector<8x8xf32> to vector<8xf32>
    %599 = vector.shape_cast %598 : vector<8xf32> to vector<8x1xf32>
    %600 = tpu.reciprocal %599 {approx = true} : vector<8x1xf32> -> vector<8x1xf32>
    %601 = vector.broadcast %600 : vector<8x1xf32> to vector<8x8xf32>
    %602 = arith.mulf %597, %601 : vector<8x8xf32>
    %603 = arith.truncf %602 : vector<8x8xf32> to vector<8x8xbf16>
    %cst_165 = arith.constant dense<0.000000e+00> : vector<8x8xf32>
    %604 = tpu.matmul %603, %589, %cst_165 {dimension_numbers = #tpu.dot_dimension_numbers<[1], [0], [0], [1], [0, 0, 1, 1], [], []>} : vector<8x8xbf16>, vector<8x8xbf16>, vector<8x8xf32> -> vector<8x8xf32>
    %605 = vector.extract_strided_slice %581 {offsets = [0, 8], sizes = [8, 8], strides = [1, 1]} : vector<8x32xf32> to vector<8x8xf32>
    %606 = arith.truncf %605 : vector<8x8xf32> to vector<8x8xbf16>
    %607 = vector.extract_strided_slice %582 {offsets = [0, 8], sizes = [8, 8], strides = [1, 1]} : vector<8x32xf32> to vector<8x8xf32>
    %608 = arith.truncf %607 : vector<8x8xf32> to vector<8x8xbf16>
    %609 = vector.extract_strided_slice %583 {offsets = [0, 8], sizes = [8, 8], strides = [1, 1]} : vector<8x32xf32> to vector<8x8xf32>
    %610 = arith.truncf %609 : vector<8x8xf32> to vector<8x8xbf16>
    %cst_166 = arith.constant dense<0.000000e+00> : vector<8x8xf32>
    %611 = tpu.matmul %606, %608, %cst_166 {dimension_numbers = #tpu.dot_dimension_numbers<[1], [1], [0], [0], [0, 0, 1, 0], [], []>} : vector<8x8xbf16>, vector<8x8xbf16>, vector<8x8xf32> -> vector<8x8xf32>
    %cst_167 = arith.constant 0.353553385 : f32
    %612 = vector.broadcast %cst_167 : f32 to vector<8x8xf32>
    %613 = arith.mulf %611, %612 : vector<8x8xf32>
    %cst_168 = arith.constant dense<0xFF800000> : vector<8xf32>
    %614 = vector.multi_reduction <maximumf>, %613, %cst_168 [1] : vector<8x8xf32> to vector<8xf32>
    %615 = vector.shape_cast %614 : vector<8xf32> to vector<8x1xf32>
    %616 = vector.broadcast %615 : vector<8x1xf32> to vector<8x8xf32>
    %617 = arith.subf %613, %616 : vector<8x8xf32>
    %618 = math.exp %617 : vector<8x8xf32>
    %cst_169 = arith.constant dense<0.000000e+00> : vector<8xf32>
    %619 = vector.multi_reduction <add>, %618, %cst_169 [1] : vector<8x8xf32> to vector<8xf32>
    %620 = vector.shape_cast %619 : vector<8xf32> to vector<8x1xf32>
    %621 = tpu.reciprocal %620 {approx = true} : vector<8x1xf32> -> vector<8x1xf32>
    %622 = vector.broadcast %621 : vector<8x1xf32> to vector<8x8xf32>
    %623 = arith.mulf %618, %622 : vector<8x8xf32>
    %624 = arith.truncf %623 : vector<8x8xf32> to vector<8x8xbf16>
    %cst_170 = arith.constant dense<0.000000e+00> : vector<8x8xf32>
    %625 = tpu.matmul %624, %610, %cst_170 {dimension_numbers = #tpu.dot_dimension_numbers<[1], [0], [0], [1], [0, 0, 1, 1], [], []>} : vector<8x8xbf16>, vector<8x8xbf16>, vector<8x8xf32> -> vector<8x8xf32>
    %626 = vector.extract_strided_slice %581 {offsets = [0, 16], sizes = [8, 8], strides = [1, 1]} : vector<8x32xf32> to vector<8x8xf32>
    %627 = arith.truncf %626 : vector<8x8xf32> to vector<8x8xbf16>
    %628 = vector.extract_strided_slice %582 {offsets = [0, 16], sizes = [8, 8], strides = [1, 1]} : vector<8x32xf32> to vector<8x8xf32>
    %629 = arith.truncf %628 : vector<8x8xf32> to vector<8x8xbf16>
    %630 = vector.extract_strided_slice %583 {offsets = [0, 16], sizes = [8, 8], strides = [1, 1]} : vector<8x32xf32> to vector<8x8xf32>
    %631 = arith.truncf %630 : vector<8x8xf32> to vector<8x8xbf16>
    %cst_171 = arith.constant dense<0.000000e+00> : vector<8x8xf32>
    %632 = tpu.matmul %627, %629, %cst_171 {dimension_numbers = #tpu.dot_dimension_numbers<[1], [1], [0], [0], [0, 0, 1, 0], [], []>} : vector<8x8xbf16>, vector<8x8xbf16>, vector<8x8xf32> -> vector<8x8xf32>
    %cst_172 = arith.constant 0.353553385 : f32
    %633 = vector.broadcast %cst_172 : f32 to vector<8x8xf32>
    %634 = arith.mulf %632, %633 : vector<8x8xf32>
    %cst_173 = arith.constant dense<0xFF800000> : vector<8xf32>
    %635 = vector.multi_reduction <maximumf>, %634, %cst_173 [1] : vector<8x8xf32> to vector<8xf32>
    %636 = vector.shape_cast %635 : vector<8xf32> to vector<8x1xf32>
    %637 = vector.broadcast %636 : vector<8x1xf32> to vector<8x8xf32>
    %638 = arith.subf %634, %637 : vector<8x8xf32>
    %639 = math.exp %638 : vector<8x8xf32>
    %cst_174 = arith.constant dense<0.000000e+00> : vector<8xf32>
    %640 = vector.multi_reduction <add>, %639, %cst_174 [1] : vector<8x8xf32> to vector<8xf32>
    %641 = vector.shape_cast %640 : vector<8xf32> to vector<8x1xf32>
    %642 = tpu.reciprocal %641 {approx = true} : vector<8x1xf32> -> vector<8x1xf32>
    %643 = vector.broadcast %642 : vector<8x1xf32> to vector<8x8xf32>
    %644 = arith.mulf %639, %643 : vector<8x8xf32>
    %645 = arith.truncf %644 : vector<8x8xf32> to vector<8x8xbf16>
    %cst_175 = arith.constant dense<0.000000e+00> : vector<8x8xf32>
    %646 = tpu.matmul %645, %631, %cst_175 {dimension_numbers = #tpu.dot_dimension_numbers<[1], [0], [0], [1], [0, 0, 1, 1], [], []>} : vector<8x8xbf16>, vector<8x8xbf16>, vector<8x8xf32> -> vector<8x8xf32>
    %647 = vector.extract_strided_slice %581 {offsets = [0, 24], sizes = [8, 8], strides = [1, 1]} : vector<8x32xf32> to vector<8x8xf32>
    %648 = arith.truncf %647 : vector<8x8xf32> to vector<8x8xbf16>
    %649 = vector.extract_strided_slice %582 {offsets = [0, 24], sizes = [8, 8], strides = [1, 1]} : vector<8x32xf32> to vector<8x8xf32>
    %650 = arith.truncf %649 : vector<8x8xf32> to vector<8x8xbf16>
    %651 = vector.extract_strided_slice %583 {offsets = [0, 24], sizes = [8, 8], strides = [1, 1]} : vector<8x32xf32> to vector<8x8xf32>
    %652 = arith.truncf %651 : vector<8x8xf32> to vector<8x8xbf16>
    %cst_176 = arith.constant dense<0.000000e+00> : vector<8x8xf32>
    %653 = tpu.matmul %648, %650, %cst_176 {dimension_numbers = #tpu.dot_dimension_numbers<[1], [1], [0], [0], [0, 0, 1, 0], [], []>} : vector<8x8xbf16>, vector<8x8xbf16>, vector<8x8xf32> -> vector<8x8xf32>
    %cst_177 = arith.constant 0.353553385 : f32
    %654 = vector.broadcast %cst_177 : f32 to vector<8x8xf32>
    %655 = arith.mulf %653, %654 : vector<8x8xf32>
    %cst_178 = arith.constant dense<0xFF800000> : vector<8xf32>
    %656 = vector.multi_reduction <maximumf>, %655, %cst_178 [1] : vector<8x8xf32> to vector<8xf32>
    %657 = vector.shape_cast %656 : vector<8xf32> to vector<8x1xf32>
    %658 = vector.broadcast %657 : vector<8x1xf32> to vector<8x8xf32>
    %659 = arith.subf %655, %658 : vector<8x8xf32>
    %660 = math.exp %659 : vector<8x8xf32>
    %cst_179 = arith.constant dense<0.000000e+00> : vector<8xf32>
    %661 = vector.multi_reduction <add>, %660, %cst_179 [1] : vector<8x8xf32> to vector<8xf32>
    %662 = vector.shape_cast %661 : vector<8xf32> to vector<8x1xf32>
    %663 = tpu.reciprocal %662 {approx = true} : vector<8x1xf32> -> vector<8x1xf32>
    %664 = vector.broadcast %663 : vector<8x1xf32> to vector<8x8xf32>
    %665 = arith.mulf %660, %664 : vector<8x8xf32>
    %666 = arith.truncf %665 : vector<8x8xf32> to vector<8x8xbf16>
    %cst_180 = arith.constant dense<0.000000e+00> : vector<8x8xf32>
    %667 = tpu.matmul %666, %652, %cst_180 {dimension_numbers = #tpu.dot_dimension_numbers<[1], [0], [0], [1], [0, 0, 1, 1], [], []>} : vector<8x8xbf16>, vector<8x8xbf16>, vector<8x8xf32> -> vector<8x8xf32>
    %668 = tpu.concatenate %604, %625, %646, %667 in 1 : vector<8x8xf32>, vector<8x8xf32>, vector<8x8xf32>, vector<8x8xf32> -> vector<8x32xf32>
    %669 = tpu.concatenate %580, %668 in 0 : vector<8x32xf32>, vector<8x32xf32> -> vector<16x32xf32>
    %670 = arith.truncf %669 : vector<16x32xf32> to vector<16x32xbf16>
    %c0_181 = arith.constant 0 : index
    %c1152_182 = arith.constant 1152 : index
    %671 = vector.load %arg2[%c0_181, %c1152_182] : memref<64x2048xbf16, #tpu.memory_space<vmem>>, vector<32x32xbf16>
    %cst_183 = arith.constant dense<0.000000e+00> : vector<16x32xf32>
    %672 = tpu.matmul %670, %671, %cst_183 {dimension_numbers = #tpu.dot_dimension_numbers<[1], [0], [0], [1], [0, 0, 1, 1], [], []>} : vector<16x32xbf16>, vector<32x32xbf16>, vector<16x32xf32> -> vector<16x32xf32>
    %c0_184 = arith.constant 0 : index
    %c1920 = arith.constant 1920 : index
    %673 = vector.load %arg3[%c0_184, %c1920] : memref<1x3584xf32, #tpu.memory_space<vmem>>, vector<1x32xf32>
    %674 = vector.broadcast %673 : vector<1x32xf32> to vector<16x32xf32>
    %675 = arith.addf %672, %674 : vector<16x32xf32>
    %676 = arith.addf %486, %675 : vector<16x32xf32>
    %cst_185 = arith.constant dense<0.000000e+00> : vector<16xf32>
    %677 = vector.multi_reduction <add>, %676, %cst_185 [1] : vector<16x32xf32> to vector<16xf32>
    %678 = vector.shape_cast %677 : vector<16xf32> to vector<16x1xf32>
    %cst_186 = arith.constant 3.200000e+01 : f32
    %679 = vector.broadcast %cst_186 : f32 to vector<16x1xf32>
    %680 = arith.divf %678, %679 : vector<16x1xf32>
    %681 = arith.mulf %676, %676 : vector<16x32xf32>
    %cst_187 = arith.constant dense<0.000000e+00> : vector<16xf32>
    %682 = vector.multi_reduction <add>, %681, %cst_187 [1] : vector<16x32xf32> to vector<16xf32>
    %683 = vector.shape_cast %682 : vector<16xf32> to vector<16x1xf32>
    %cst_188 = arith.constant 3.200000e+01 : f32
    %684 = vector.broadcast %cst_188 : f32 to vector<16x1xf32>
    %685 = arith.divf %683, %684 : vector<16x1xf32>
    %686 = arith.mulf %680, %680 : vector<16x1xf32>
    %687 = arith.subf %685, %686 : vector<16x1xf32>
    %688 = vector.broadcast %680 : vector<16x1xf32> to vector<16x32xf32>
    %689 = arith.subf %676, %688 : vector<16x32xf32>
    %cst_189 = arith.constant 9.99999974E-6 : f32
    %690 = vector.broadcast %cst_189 : f32 to vector<16x1xf32>
    %691 = arith.addf %687, %690 : vector<16x1xf32>
    %692 = math.rsqrt %691 : vector<16x1xf32>
    %693 = vector.broadcast %692 : vector<16x1xf32> to vector<16x32xf32>
    %694 = arith.mulf %689, %693 : vector<16x32xf32>
    %c0_190 = arith.constant 0 : index
    %c2688 = arith.constant 2688 : index
    %695 = vector.load %arg3[%c0_190, %c2688] : memref<1x3584xf32, #tpu.memory_space<vmem>>, vector<1x32xf32>
    %696 = vector.broadcast %695 : vector<1x32xf32> to vector<16x32xf32>
    %697 = arith.mulf %694, %696 : vector<16x32xf32>
    %c0_191 = arith.constant 0 : index
    %c2816 = arith.constant 2816 : index
    %698 = vector.load %arg3[%c0_191, %c2816] : memref<1x3584xf32, #tpu.memory_space<vmem>>, vector<1x32xf32>
    %699 = vector.broadcast %698 : vector<1x32xf32> to vector<16x32xf32>
    %700 = arith.addf %697, %699 : vector<16x32xf32>
    %701 = arith.truncf %700 : vector<16x32xf32> to vector<16x32xbf16>
    %c0_192 = arith.constant 0 : index
    %c1280_193 = arith.constant 1280 : index
    %702 = vector.load %arg2[%c0_192, %c1280_193] : memref<64x2048xbf16, #tpu.memory_space<vmem>>, vector<32x32xbf16>
    %cst_194 = arith.constant dense<0.000000e+00> : vector<16x32xf32>
    %703 = tpu.matmul %701, %702, %cst_194 {dimension_numbers = #tpu.dot_dimension_numbers<[1], [0], [0], [1], [0, 0, 1, 1], [], []>} : vector<16x32xbf16>, vector<32x32xbf16>, vector<16x32xf32> -> vector<16x32xf32>
    %c0_195 = arith.constant 0 : index
    %c2048 = arith.constant 2048 : index
    %704 = vector.load %arg3[%c0_195, %c2048] : memref<1x3584xf32, #tpu.memory_space<vmem>>, vector<1x32xf32>
    %705 = vector.broadcast %704 : vector<1x32xf32> to vector<16x32xf32>
    %706 = arith.addf %703, %705 : vector<16x32xf32>
    %707 = arith.truncf %7 : vector<16x32xf32> to vector<16x32xbf16>
    %c0_196 = arith.constant 0 : index
    %c1408_197 = arith.constant 1408 : index
    %708 = vector.load %arg2[%c0_196, %c1408_197] : memref<64x2048xbf16, #tpu.memory_space<vmem>>, vector<32x64xbf16>
    %cst_198 = arith.constant dense<0.000000e+00> : vector<16x64xf32>
    %709 = tpu.matmul %707, %708, %cst_198 {dimension_numbers = #tpu.dot_dimension_numbers<[1], [0], [0], [1], [0, 0, 1, 1], [], []>} : vector<16x32xbf16>, vector<32x64xbf16>, vector<16x64xf32> -> vector<16x64xf32>
    %c0_199 = arith.constant 0 : index
    %c2176 = arith.constant 2176 : index
    %710 = vector.load %arg3[%c0_199, %c2176] : memref<1x3584xf32, #tpu.memory_space<vmem>>, vector<1x64xf32>
    %711 = vector.broadcast %710 : vector<1x64xf32> to vector<16x64xf32>
    %712 = arith.addf %709, %711 : vector<16x64xf32>
    %713 = vector.extract_strided_slice %706 {offsets = [0, 0], sizes = [8, 32], strides = [1, 1]} : vector<16x32xf32> to vector<8x32xf32>
    %714 = vector.extract_strided_slice %712 {offsets = [0, 0], sizes = [8, 32], strides = [1, 1]} : vector<16x64xf32> to vector<8x32xf32>
    %715 = vector.extract_strided_slice %712 {offsets = [0, 32], sizes = [8, 32], strides = [1, 1]} : vector<16x64xf32> to vector<8x32xf32>
    %716 = vector.extract_strided_slice %713 {offsets = [0, 0], sizes = [8, 8], strides = [1, 1]} : vector<8x32xf32> to vector<8x8xf32>
    %717 = arith.truncf %716 : vector<8x8xf32> to vector<8x8xbf16>
    %718 = vector.extract_strided_slice %714 {offsets = [0, 0], sizes = [8, 8], strides = [1, 1]} : vector<8x32xf32> to vector<8x8xf32>
    %719 = arith.truncf %718 : vector<8x8xf32> to vector<8x8xbf16>
    %720 = vector.extract_strided_slice %715 {offsets = [0, 0], sizes = [8, 8], strides = [1, 1]} : vector<8x32xf32> to vector<8x8xf32>
    %721 = arith.truncf %720 : vector<8x8xf32> to vector<8x8xbf16>
    %cst_200 = arith.constant dense<0.000000e+00> : vector<8x8xf32>
    %722 = tpu.matmul %717, %719, %cst_200 {dimension_numbers = #tpu.dot_dimension_numbers<[1], [1], [0], [0], [0, 0, 1, 0], [], []>} : vector<8x8xbf16>, vector<8x8xbf16>, vector<8x8xf32> -> vector<8x8xf32>
    %cst_201 = arith.constant 0.353553385 : f32
    %723 = vector.broadcast %cst_201 : f32 to vector<8x8xf32>
    %724 = arith.mulf %722, %723 : vector<8x8xf32>
    %cst_202 = arith.constant dense<0xFF800000> : vector<8xf32>
    %725 = vector.multi_reduction <maximumf>, %724, %cst_202 [1] : vector<8x8xf32> to vector<8xf32>
    %726 = vector.shape_cast %725 : vector<8xf32> to vector<8x1xf32>
    %727 = vector.broadcast %726 : vector<8x1xf32> to vector<8x8xf32>
    %728 = arith.subf %724, %727 : vector<8x8xf32>
    %729 = math.exp %728 : vector<8x8xf32>
    %cst_203 = arith.constant dense<0.000000e+00> : vector<8xf32>
    %730 = vector.multi_reduction <add>, %729, %cst_203 [1] : vector<8x8xf32> to vector<8xf32>
    %731 = vector.shape_cast %730 : vector<8xf32> to vector<8x1xf32>
    %732 = tpu.reciprocal %731 {approx = true} : vector<8x1xf32> -> vector<8x1xf32>
    %733 = vector.broadcast %732 : vector<8x1xf32> to vector<8x8xf32>
    %734 = arith.mulf %729, %733 : vector<8x8xf32>
    %735 = arith.truncf %734 : vector<8x8xf32> to vector<8x8xbf16>
    %cst_204 = arith.constant dense<0.000000e+00> : vector<8x8xf32>
    %736 = tpu.matmul %735, %721, %cst_204 {dimension_numbers = #tpu.dot_dimension_numbers<[1], [0], [0], [1], [0, 0, 1, 1], [], []>} : vector<8x8xbf16>, vector<8x8xbf16>, vector<8x8xf32> -> vector<8x8xf32>
    %737 = vector.extract_strided_slice %713 {offsets = [0, 8], sizes = [8, 8], strides = [1, 1]} : vector<8x32xf32> to vector<8x8xf32>
    %738 = arith.truncf %737 : vector<8x8xf32> to vector<8x8xbf16>
    %739 = vector.extract_strided_slice %714 {offsets = [0, 8], sizes = [8, 8], strides = [1, 1]} : vector<8x32xf32> to vector<8x8xf32>
    %740 = arith.truncf %739 : vector<8x8xf32> to vector<8x8xbf16>
    %741 = vector.extract_strided_slice %715 {offsets = [0, 8], sizes = [8, 8], strides = [1, 1]} : vector<8x32xf32> to vector<8x8xf32>
    %742 = arith.truncf %741 : vector<8x8xf32> to vector<8x8xbf16>
    %cst_205 = arith.constant dense<0.000000e+00> : vector<8x8xf32>
    %743 = tpu.matmul %738, %740, %cst_205 {dimension_numbers = #tpu.dot_dimension_numbers<[1], [1], [0], [0], [0, 0, 1, 0], [], []>} : vector<8x8xbf16>, vector<8x8xbf16>, vector<8x8xf32> -> vector<8x8xf32>
    %cst_206 = arith.constant 0.353553385 : f32
    %744 = vector.broadcast %cst_206 : f32 to vector<8x8xf32>
    %745 = arith.mulf %743, %744 : vector<8x8xf32>
    %cst_207 = arith.constant dense<0xFF800000> : vector<8xf32>
    %746 = vector.multi_reduction <maximumf>, %745, %cst_207 [1] : vector<8x8xf32> to vector<8xf32>
    %747 = vector.shape_cast %746 : vector<8xf32> to vector<8x1xf32>
    %748 = vector.broadcast %747 : vector<8x1xf32> to vector<8x8xf32>
    %749 = arith.subf %745, %748 : vector<8x8xf32>
    %750 = math.exp %749 : vector<8x8xf32>
    %cst_208 = arith.constant dense<0.000000e+00> : vector<8xf32>
    %751 = vector.multi_reduction <add>, %750, %cst_208 [1] : vector<8x8xf32> to vector<8xf32>
    %752 = vector.shape_cast %751 : vector<8xf32> to vector<8x1xf32>
    %753 = tpu.reciprocal %752 {approx = true} : vector<8x1xf32> -> vector<8x1xf32>
    %754 = vector.broadcast %753 : vector<8x1xf32> to vector<8x8xf32>
    %755 = arith.mulf %750, %754 : vector<8x8xf32>
    %756 = arith.truncf %755 : vector<8x8xf32> to vector<8x8xbf16>
    %cst_209 = arith.constant dense<0.000000e+00> : vector<8x8xf32>
    %757 = tpu.matmul %756, %742, %cst_209 {dimension_numbers = #tpu.dot_dimension_numbers<[1], [0], [0], [1], [0, 0, 1, 1], [], []>} : vector<8x8xbf16>, vector<8x8xbf16>, vector<8x8xf32> -> vector<8x8xf32>
    %758 = vector.extract_strided_slice %713 {offsets = [0, 16], sizes = [8, 8], strides = [1, 1]} : vector<8x32xf32> to vector<8x8xf32>
    %759 = arith.truncf %758 : vector<8x8xf32> to vector<8x8xbf16>
    %760 = vector.extract_strided_slice %714 {offsets = [0, 16], sizes = [8, 8], strides = [1, 1]} : vector<8x32xf32> to vector<8x8xf32>
    %761 = arith.truncf %760 : vector<8x8xf32> to vector<8x8xbf16>
    %762 = vector.extract_strided_slice %715 {offsets = [0, 16], sizes = [8, 8], strides = [1, 1]} : vector<8x32xf32> to vector<8x8xf32>
    %763 = arith.truncf %762 : vector<8x8xf32> to vector<8x8xbf16>
    %cst_210 = arith.constant dense<0.000000e+00> : vector<8x8xf32>
    %764 = tpu.matmul %759, %761, %cst_210 {dimension_numbers = #tpu.dot_dimension_numbers<[1], [1], [0], [0], [0, 0, 1, 0], [], []>} : vector<8x8xbf16>, vector<8x8xbf16>, vector<8x8xf32> -> vector<8x8xf32>
    %cst_211 = arith.constant 0.353553385 : f32
    %765 = vector.broadcast %cst_211 : f32 to vector<8x8xf32>
    %766 = arith.mulf %764, %765 : vector<8x8xf32>
    %cst_212 = arith.constant dense<0xFF800000> : vector<8xf32>
    %767 = vector.multi_reduction <maximumf>, %766, %cst_212 [1] : vector<8x8xf32> to vector<8xf32>
    %768 = vector.shape_cast %767 : vector<8xf32> to vector<8x1xf32>
    %769 = vector.broadcast %768 : vector<8x1xf32> to vector<8x8xf32>
    %770 = arith.subf %766, %769 : vector<8x8xf32>
    %771 = math.exp %770 : vector<8x8xf32>
    %cst_213 = arith.constant dense<0.000000e+00> : vector<8xf32>
    %772 = vector.multi_reduction <add>, %771, %cst_213 [1] : vector<8x8xf32> to vector<8xf32>
    %773 = vector.shape_cast %772 : vector<8xf32> to vector<8x1xf32>
    %774 = tpu.reciprocal %773 {approx = true} : vector<8x1xf32> -> vector<8x1xf32>
    %775 = vector.broadcast %774 : vector<8x1xf32> to vector<8x8xf32>
    %776 = arith.mulf %771, %775 : vector<8x8xf32>
    %777 = arith.truncf %776 : vector<8x8xf32> to vector<8x8xbf16>
    %cst_214 = arith.constant dense<0.000000e+00> : vector<8x8xf32>
    %778 = tpu.matmul %777, %763, %cst_214 {dimension_numbers = #tpu.dot_dimension_numbers<[1], [0], [0], [1], [0, 0, 1, 1], [], []>} : vector<8x8xbf16>, vector<8x8xbf16>, vector<8x8xf32> -> vector<8x8xf32>
    %779 = vector.extract_strided_slice %713 {offsets = [0, 24], sizes = [8, 8], strides = [1, 1]} : vector<8x32xf32> to vector<8x8xf32>
    %780 = arith.truncf %779 : vector<8x8xf32> to vector<8x8xbf16>
    %781 = vector.extract_strided_slice %714 {offsets = [0, 24], sizes = [8, 8], strides = [1, 1]} : vector<8x32xf32> to vector<8x8xf32>
    %782 = arith.truncf %781 : vector<8x8xf32> to vector<8x8xbf16>
    %783 = vector.extract_strided_slice %715 {offsets = [0, 24], sizes = [8, 8], strides = [1, 1]} : vector<8x32xf32> to vector<8x8xf32>
    %784 = arith.truncf %783 : vector<8x8xf32> to vector<8x8xbf16>
    %cst_215 = arith.constant dense<0.000000e+00> : vector<8x8xf32>
    %785 = tpu.matmul %780, %782, %cst_215 {dimension_numbers = #tpu.dot_dimension_numbers<[1], [1], [0], [0], [0, 0, 1, 0], [], []>} : vector<8x8xbf16>, vector<8x8xbf16>, vector<8x8xf32> -> vector<8x8xf32>
    %cst_216 = arith.constant 0.353553385 : f32
    %786 = vector.broadcast %cst_216 : f32 to vector<8x8xf32>
    %787 = arith.mulf %785, %786 : vector<8x8xf32>
    %cst_217 = arith.constant dense<0xFF800000> : vector<8xf32>
    %788 = vector.multi_reduction <maximumf>, %787, %cst_217 [1] : vector<8x8xf32> to vector<8xf32>
    %789 = vector.shape_cast %788 : vector<8xf32> to vector<8x1xf32>
    %790 = vector.broadcast %789 : vector<8x1xf32> to vector<8x8xf32>
    %791 = arith.subf %787, %790 : vector<8x8xf32>
    %792 = math.exp %791 : vector<8x8xf32>
    %cst_218 = arith.constant dense<0.000000e+00> : vector<8xf32>
    %793 = vector.multi_reduction <add>, %792, %cst_218 [1] : vector<8x8xf32> to vector<8xf32>
    %794 = vector.shape_cast %793 : vector<8xf32> to vector<8x1xf32>
    %795 = tpu.reciprocal %794 {approx = true} : vector<8x1xf32> -> vector<8x1xf32>
    %796 = vector.broadcast %795 : vector<8x1xf32> to vector<8x8xf32>
    %797 = arith.mulf %792, %796 : vector<8x8xf32>
    %798 = arith.truncf %797 : vector<8x8xf32> to vector<8x8xbf16>
    %cst_219 = arith.constant dense<0.000000e+00> : vector<8x8xf32>
    %799 = tpu.matmul %798, %784, %cst_219 {dimension_numbers = #tpu.dot_dimension_numbers<[1], [0], [0], [1], [0, 0, 1, 1], [], []>} : vector<8x8xbf16>, vector<8x8xbf16>, vector<8x8xf32> -> vector<8x8xf32>
    %800 = tpu.concatenate %736, %757, %778, %799 in 1 : vector<8x8xf32>, vector<8x8xf32>, vector<8x8xf32>, vector<8x8xf32> -> vector<8x32xf32>
    %801 = vector.extract_strided_slice %706 {offsets = [8, 0], sizes = [8, 32], strides = [1, 1]} : vector<16x32xf32> to vector<8x32xf32>
    %802 = vector.extract_strided_slice %712 {offsets = [8, 0], sizes = [8, 32], strides = [1, 1]} : vector<16x64xf32> to vector<8x32xf32>
    %803 = vector.extract_strided_slice %712 {offsets = [8, 32], sizes = [8, 32], strides = [1, 1]} : vector<16x64xf32> to vector<8x32xf32>
    %804 = vector.extract_strided_slice %801 {offsets = [0, 0], sizes = [8, 8], strides = [1, 1]} : vector<8x32xf32> to vector<8x8xf32>
    %805 = arith.truncf %804 : vector<8x8xf32> to vector<8x8xbf16>
    %806 = vector.extract_strided_slice %802 {offsets = [0, 0], sizes = [8, 8], strides = [1, 1]} : vector<8x32xf32> to vector<8x8xf32>
    %807 = arith.truncf %806 : vector<8x8xf32> to vector<8x8xbf16>
    %808 = vector.extract_strided_slice %803 {offsets = [0, 0], sizes = [8, 8], strides = [1, 1]} : vector<8x32xf32> to vector<8x8xf32>
    %809 = arith.truncf %808 : vector<8x8xf32> to vector<8x8xbf16>
    %cst_220 = arith.constant dense<0.000000e+00> : vector<8x8xf32>
    %810 = tpu.matmul %805, %807, %cst_220 {dimension_numbers = #tpu.dot_dimension_numbers<[1], [1], [0], [0], [0, 0, 1, 0], [], []>} : vector<8x8xbf16>, vector<8x8xbf16>, vector<8x8xf32> -> vector<8x8xf32>
    %cst_221 = arith.constant 0.353553385 : f32
    %811 = vector.broadcast %cst_221 : f32 to vector<8x8xf32>
    %812 = arith.mulf %810, %811 : vector<8x8xf32>
    %cst_222 = arith.constant dense<0xFF800000> : vector<8xf32>
    %813 = vector.multi_reduction <maximumf>, %812, %cst_222 [1] : vector<8x8xf32> to vector<8xf32>
    %814 = vector.shape_cast %813 : vector<8xf32> to vector<8x1xf32>
    %815 = vector.broadcast %814 : vector<8x1xf32> to vector<8x8xf32>
    %816 = arith.subf %812, %815 : vector<8x8xf32>
    %817 = math.exp %816 : vector<8x8xf32>
    %cst_223 = arith.constant dense<0.000000e+00> : vector<8xf32>
    %818 = vector.multi_reduction <add>, %817, %cst_223 [1] : vector<8x8xf32> to vector<8xf32>
    %819 = vector.shape_cast %818 : vector<8xf32> to vector<8x1xf32>
    %820 = tpu.reciprocal %819 {approx = true} : vector<8x1xf32> -> vector<8x1xf32>
    %821 = vector.broadcast %820 : vector<8x1xf32> to vector<8x8xf32>
    %822 = arith.mulf %817, %821 : vector<8x8xf32>
    %823 = arith.truncf %822 : vector<8x8xf32> to vector<8x8xbf16>
    %cst_224 = arith.constant dense<0.000000e+00> : vector<8x8xf32>
    %824 = tpu.matmul %823, %809, %cst_224 {dimension_numbers = #tpu.dot_dimension_numbers<[1], [0], [0], [1], [0, 0, 1, 1], [], []>} : vector<8x8xbf16>, vector<8x8xbf16>, vector<8x8xf32> -> vector<8x8xf32>
    %825 = vector.extract_strided_slice %801 {offsets = [0, 8], sizes = [8, 8], strides = [1, 1]} : vector<8x32xf32> to vector<8x8xf32>
    %826 = arith.truncf %825 : vector<8x8xf32> to vector<8x8xbf16>
    %827 = vector.extract_strided_slice %802 {offsets = [0, 8], sizes = [8, 8], strides = [1, 1]} : vector<8x32xf32> to vector<8x8xf32>
    %828 = arith.truncf %827 : vector<8x8xf32> to vector<8x8xbf16>
    %829 = vector.extract_strided_slice %803 {offsets = [0, 8], sizes = [8, 8], strides = [1, 1]} : vector<8x32xf32> to vector<8x8xf32>
    %830 = arith.truncf %829 : vector<8x8xf32> to vector<8x8xbf16>
    %cst_225 = arith.constant dense<0.000000e+00> : vector<8x8xf32>
    %831 = tpu.matmul %826, %828, %cst_225 {dimension_numbers = #tpu.dot_dimension_numbers<[1], [1], [0], [0], [0, 0, 1, 0], [], []>} : vector<8x8xbf16>, vector<8x8xbf16>, vector<8x8xf32> -> vector<8x8xf32>
    %cst_226 = arith.constant 0.353553385 : f32
    %832 = vector.broadcast %cst_226 : f32 to vector<8x8xf32>
    %833 = arith.mulf %831, %832 : vector<8x8xf32>
    %cst_227 = arith.constant dense<0xFF800000> : vector<8xf32>
    %834 = vector.multi_reduction <maximumf>, %833, %cst_227 [1] : vector<8x8xf32> to vector<8xf32>
    %835 = vector.shape_cast %834 : vector<8xf32> to vector<8x1xf32>
    %836 = vector.broadcast %835 : vector<8x1xf32> to vector<8x8xf32>
    %837 = arith.subf %833, %836 : vector<8x8xf32>
    %838 = math.exp %837 : vector<8x8xf32>
    %cst_228 = arith.constant dense<0.000000e+00> : vector<8xf32>
    %839 = vector.multi_reduction <add>, %838, %cst_228 [1] : vector<8x8xf32> to vector<8xf32>
    %840 = vector.shape_cast %839 : vector<8xf32> to vector<8x1xf32>
    %841 = tpu.reciprocal %840 {approx = true} : vector<8x1xf32> -> vector<8x1xf32>
    %842 = vector.broadcast %841 : vector<8x1xf32> to vector<8x8xf32>
    %843 = arith.mulf %838, %842 : vector<8x8xf32>
    %844 = arith.truncf %843 : vector<8x8xf32> to vector<8x8xbf16>
    %cst_229 = arith.constant dense<0.000000e+00> : vector<8x8xf32>
    %845 = tpu.matmul %844, %830, %cst_229 {dimension_numbers = #tpu.dot_dimension_numbers<[1], [0], [0], [1], [0, 0, 1, 1], [], []>} : vector<8x8xbf16>, vector<8x8xbf16>, vector<8x8xf32> -> vector<8x8xf32>
    %846 = vector.extract_strided_slice %801 {offsets = [0, 16], sizes = [8, 8], strides = [1, 1]} : vector<8x32xf32> to vector<8x8xf32>
    %847 = arith.truncf %846 : vector<8x8xf32> to vector<8x8xbf16>
    %848 = vector.extract_strided_slice %802 {offsets = [0, 16], sizes = [8, 8], strides = [1, 1]} : vector<8x32xf32> to vector<8x8xf32>
    %849 = arith.truncf %848 : vector<8x8xf32> to vector<8x8xbf16>
    %850 = vector.extract_strided_slice %803 {offsets = [0, 16], sizes = [8, 8], strides = [1, 1]} : vector<8x32xf32> to vector<8x8xf32>
    %851 = arith.truncf %850 : vector<8x8xf32> to vector<8x8xbf16>
    %cst_230 = arith.constant dense<0.000000e+00> : vector<8x8xf32>
    %852 = tpu.matmul %847, %849, %cst_230 {dimension_numbers = #tpu.dot_dimension_numbers<[1], [1], [0], [0], [0, 0, 1, 0], [], []>} : vector<8x8xbf16>, vector<8x8xbf16>, vector<8x8xf32> -> vector<8x8xf32>
    %cst_231 = arith.constant 0.353553385 : f32
    %853 = vector.broadcast %cst_231 : f32 to vector<8x8xf32>
    %854 = arith.mulf %852, %853 : vector<8x8xf32>
    %cst_232 = arith.constant dense<0xFF800000> : vector<8xf32>
    %855 = vector.multi_reduction <maximumf>, %854, %cst_232 [1] : vector<8x8xf32> to vector<8xf32>
    %856 = vector.shape_cast %855 : vector<8xf32> to vector<8x1xf32>
    %857 = vector.broadcast %856 : vector<8x1xf32> to vector<8x8xf32>
    %858 = arith.subf %854, %857 : vector<8x8xf32>
    %859 = math.exp %858 : vector<8x8xf32>
    %cst_233 = arith.constant dense<0.000000e+00> : vector<8xf32>
    %860 = vector.multi_reduction <add>, %859, %cst_233 [1] : vector<8x8xf32> to vector<8xf32>
    %861 = vector.shape_cast %860 : vector<8xf32> to vector<8x1xf32>
    %862 = tpu.reciprocal %861 {approx = true} : vector<8x1xf32> -> vector<8x1xf32>
    %863 = vector.broadcast %862 : vector<8x1xf32> to vector<8x8xf32>
    %864 = arith.mulf %859, %863 : vector<8x8xf32>
    %865 = arith.truncf %864 : vector<8x8xf32> to vector<8x8xbf16>
    %cst_234 = arith.constant dense<0.000000e+00> : vector<8x8xf32>
    %866 = tpu.matmul %865, %851, %cst_234 {dimension_numbers = #tpu.dot_dimension_numbers<[1], [0], [0], [1], [0, 0, 1, 1], [], []>} : vector<8x8xbf16>, vector<8x8xbf16>, vector<8x8xf32> -> vector<8x8xf32>
    %867 = vector.extract_strided_slice %801 {offsets = [0, 24], sizes = [8, 8], strides = [1, 1]} : vector<8x32xf32> to vector<8x8xf32>
    %868 = arith.truncf %867 : vector<8x8xf32> to vector<8x8xbf16>
    %869 = vector.extract_strided_slice %802 {offsets = [0, 24], sizes = [8, 8], strides = [1, 1]} : vector<8x32xf32> to vector<8x8xf32>
    %870 = arith.truncf %869 : vector<8x8xf32> to vector<8x8xbf16>
    %871 = vector.extract_strided_slice %803 {offsets = [0, 24], sizes = [8, 8], strides = [1, 1]} : vector<8x32xf32> to vector<8x8xf32>
    %872 = arith.truncf %871 : vector<8x8xf32> to vector<8x8xbf16>
    %cst_235 = arith.constant dense<0.000000e+00> : vector<8x8xf32>
    %873 = tpu.matmul %868, %870, %cst_235 {dimension_numbers = #tpu.dot_dimension_numbers<[1], [1], [0], [0], [0, 0, 1, 0], [], []>} : vector<8x8xbf16>, vector<8x8xbf16>, vector<8x8xf32> -> vector<8x8xf32>
    %cst_236 = arith.constant 0.353553385 : f32
    %874 = vector.broadcast %cst_236 : f32 to vector<8x8xf32>
    %875 = arith.mulf %873, %874 : vector<8x8xf32>
    %cst_237 = arith.constant dense<0xFF800000> : vector<8xf32>
    %876 = vector.multi_reduction <maximumf>, %875, %cst_237 [1] : vector<8x8xf32> to vector<8xf32>
    %877 = vector.shape_cast %876 : vector<8xf32> to vector<8x1xf32>
    %878 = vector.broadcast %877 : vector<8x1xf32> to vector<8x8xf32>
    %879 = arith.subf %875, %878 : vector<8x8xf32>
    %880 = math.exp %879 : vector<8x8xf32>
    %cst_238 = arith.constant dense<0.000000e+00> : vector<8xf32>
    %881 = vector.multi_reduction <add>, %880, %cst_238 [1] : vector<8x8xf32> to vector<8xf32>
    %882 = vector.shape_cast %881 : vector<8xf32> to vector<8x1xf32>
    %883 = tpu.reciprocal %882 {approx = true} : vector<8x1xf32> -> vector<8x1xf32>
    %884 = vector.broadcast %883 : vector<8x1xf32> to vector<8x8xf32>
    %885 = arith.mulf %880, %884 : vector<8x8xf32>
    %886 = arith.truncf %885 : vector<8x8xf32> to vector<8x8xbf16>
    %cst_239 = arith.constant dense<0.000000e+00> : vector<8x8xf32>
    %887 = tpu.matmul %886, %872, %cst_239 {dimension_numbers = #tpu.dot_dimension_numbers<[1], [0], [0], [1], [0, 0, 1, 1], [], []>} : vector<8x8xbf16>, vector<8x8xbf16>, vector<8x8xf32> -> vector<8x8xf32>
    %888 = tpu.concatenate %824, %845, %866, %887 in 1 : vector<8x8xf32>, vector<8x8xf32>, vector<8x8xf32>, vector<8x8xf32> -> vector<8x32xf32>
    %889 = tpu.concatenate %800, %888 in 0 : vector<8x32xf32>, vector<8x32xf32> -> vector<16x32xf32>
    %890 = arith.truncf %889 : vector<16x32xf32> to vector<16x32xbf16>
    %c0_240 = arith.constant 0 : index
    %c1536_241 = arith.constant 1536 : index
    %891 = vector.load %arg2[%c0_240, %c1536_241] : memref<64x2048xbf16, #tpu.memory_space<vmem>>, vector<32x32xbf16>
    %cst_242 = arith.constant dense<0.000000e+00> : vector<16x32xf32>
    %892 = tpu.matmul %890, %891, %cst_242 {dimension_numbers = #tpu.dot_dimension_numbers<[1], [0], [0], [1], [0, 0, 1, 1], [], []>} : vector<16x32xbf16>, vector<32x32xbf16>, vector<16x32xf32> -> vector<16x32xf32>
    %c0_243 = arith.constant 0 : index
    %c2304 = arith.constant 2304 : index
    %893 = vector.load %arg3[%c0_243, %c2304] : memref<1x3584xf32, #tpu.memory_space<vmem>>, vector<1x32xf32>
    %894 = vector.broadcast %893 : vector<1x32xf32> to vector<16x32xf32>
    %895 = arith.addf %892, %894 : vector<16x32xf32>
    %896 = arith.addf %700, %895 : vector<16x32xf32>
    %cst_244 = arith.constant dense<0.000000e+00> : vector<16xf32>
    %897 = vector.multi_reduction <add>, %896, %cst_244 [1] : vector<16x32xf32> to vector<16xf32>
    %898 = vector.shape_cast %897 : vector<16xf32> to vector<16x1xf32>
    %cst_245 = arith.constant 3.200000e+01 : f32
    %899 = vector.broadcast %cst_245 : f32 to vector<16x1xf32>
    %900 = arith.divf %898, %899 : vector<16x1xf32>
    %901 = arith.mulf %896, %896 : vector<16x32xf32>
    %cst_246 = arith.constant dense<0.000000e+00> : vector<16xf32>
    %902 = vector.multi_reduction <add>, %901, %cst_246 [1] : vector<16x32xf32> to vector<16xf32>
    %903 = vector.shape_cast %902 : vector<16xf32> to vector<16x1xf32>
    %cst_247 = arith.constant 3.200000e+01 : f32
    %904 = vector.broadcast %cst_247 : f32 to vector<16x1xf32>
    %905 = arith.divf %903, %904 : vector<16x1xf32>
    %906 = arith.mulf %900, %900 : vector<16x1xf32>
    %907 = arith.subf %905, %906 : vector<16x1xf32>
    %908 = vector.broadcast %900 : vector<16x1xf32> to vector<16x32xf32>
    %909 = arith.subf %896, %908 : vector<16x32xf32>
    %cst_248 = arith.constant 9.99999974E-6 : f32
    %910 = vector.broadcast %cst_248 : f32 to vector<16x1xf32>
    %911 = arith.addf %907, %910 : vector<16x1xf32>
    %912 = math.rsqrt %911 : vector<16x1xf32>
    %913 = vector.broadcast %912 : vector<16x1xf32> to vector<16x32xf32>
    %914 = arith.mulf %909, %913 : vector<16x32xf32>
    %c0_249 = arith.constant 0 : index
    %c2944 = arith.constant 2944 : index
    %915 = vector.load %arg3[%c0_249, %c2944] : memref<1x3584xf32, #tpu.memory_space<vmem>>, vector<1x32xf32>
    %916 = vector.broadcast %915 : vector<1x32xf32> to vector<16x32xf32>
    %917 = arith.mulf %914, %916 : vector<16x32xf32>
    %c0_250 = arith.constant 0 : index
    %c3072 = arith.constant 3072 : index
    %918 = vector.load %arg3[%c0_250, %c3072] : memref<1x3584xf32, #tpu.memory_space<vmem>>, vector<1x32xf32>
    %919 = vector.broadcast %918 : vector<1x32xf32> to vector<16x32xf32>
    %920 = arith.addf %917, %919 : vector<16x32xf32>
    %921 = arith.truncf %920 : vector<16x32xf32> to vector<16x32xbf16>
    %c0_251 = arith.constant 0 : index
    %c1664_252 = arith.constant 1664 : index
    %922 = vector.load %arg2[%c0_251, %c1664_252] : memref<64x2048xbf16, #tpu.memory_space<vmem>>, vector<32x64xbf16>
    %cst_253 = arith.constant dense<0.000000e+00> : vector<16x64xf32>
    %923 = tpu.matmul %921, %922, %cst_253 {dimension_numbers = #tpu.dot_dimension_numbers<[1], [0], [0], [1], [0, 0, 1, 1], [], []>} : vector<16x32xbf16>, vector<32x64xbf16>, vector<16x64xf32> -> vector<16x64xf32>
    %c0_254 = arith.constant 0 : index
    %c2432 = arith.constant 2432 : index
    %924 = vector.load %arg3[%c0_254, %c2432] : memref<1x3584xf32, #tpu.memory_space<vmem>>, vector<1x64xf32>
    %925 = vector.broadcast %924 : vector<1x64xf32> to vector<16x64xf32>
    %926 = arith.addf %923, %925 : vector<16x64xf32>
    %cst_255 = arith.constant 0.000000e+00 : f32
    %927 = vector.broadcast %cst_255 : f32 to vector<16x64xf32>
    %928 = arith.maximumf %926, %927 : vector<16x64xf32>
    %929 = arith.truncf %928 : vector<16x64xf32> to vector<16x64xbf16>
    %c0_256 = arith.constant 0 : index
    %c1792_257 = arith.constant 1792 : index
    %930 = vector.load %arg2[%c0_256, %c1792_257] : memref<64x2048xbf16, #tpu.memory_space<vmem>>, vector<64x32xbf16>
    %cst_258 = arith.constant dense<0.000000e+00> : vector<16x32xf32>
    %931 = tpu.matmul %929, %930, %cst_258 {dimension_numbers = #tpu.dot_dimension_numbers<[1], [0], [0], [1], [0, 0, 1, 1], [], []>} : vector<16x64xbf16>, vector<64x32xbf16>, vector<16x32xf32> -> vector<16x32xf32>
    %c0_259 = arith.constant 0 : index
    %c2560 = arith.constant 2560 : index
    %932 = vector.load %arg3[%c0_259, %c2560] : memref<1x3584xf32, #tpu.memory_space<vmem>>, vector<1x32xf32>
    %933 = vector.broadcast %932 : vector<1x32xf32> to vector<16x32xf32>
    %934 = arith.addf %931, %933 : vector<16x32xf32>
    %935 = arith.addf %920, %934 : vector<16x32xf32>
    %cst_260 = arith.constant dense<0.000000e+00> : vector<16xf32>
    %936 = vector.multi_reduction <add>, %935, %cst_260 [1] : vector<16x32xf32> to vector<16xf32>
    %937 = vector.shape_cast %936 : vector<16xf32> to vector<16x1xf32>
    %cst_261 = arith.constant 3.200000e+01 : f32
    %938 = vector.broadcast %cst_261 : f32 to vector<16x1xf32>
    %939 = arith.divf %937, %938 : vector<16x1xf32>
    %940 = arith.mulf %935, %935 : vector<16x32xf32>
    %cst_262 = arith.constant dense<0.000000e+00> : vector<16xf32>
    %941 = vector.multi_reduction <add>, %940, %cst_262 [1] : vector<16x32xf32> to vector<16xf32>
    %942 = vector.shape_cast %941 : vector<16xf32> to vector<16x1xf32>
    %cst_263 = arith.constant 3.200000e+01 : f32
    %943 = vector.broadcast %cst_263 : f32 to vector<16x1xf32>
    %944 = arith.divf %942, %943 : vector<16x1xf32>
    %945 = arith.mulf %939, %939 : vector<16x1xf32>
    %946 = arith.subf %944, %945 : vector<16x1xf32>
    %947 = vector.broadcast %939 : vector<16x1xf32> to vector<16x32xf32>
    %948 = arith.subf %935, %947 : vector<16x32xf32>
    %cst_264 = arith.constant 9.99999974E-6 : f32
    %949 = vector.broadcast %cst_264 : f32 to vector<16x1xf32>
    %950 = arith.addf %946, %949 : vector<16x1xf32>
    %951 = math.rsqrt %950 : vector<16x1xf32>
    %952 = vector.broadcast %951 : vector<16x1xf32> to vector<16x32xf32>
    %953 = arith.mulf %948, %952 : vector<16x32xf32>
    %c0_265 = arith.constant 0 : index
    %c3200 = arith.constant 3200 : index
    %954 = vector.load %arg3[%c0_265, %c3200] : memref<1x3584xf32, #tpu.memory_space<vmem>>, vector<1x32xf32>
    %955 = vector.broadcast %954 : vector<1x32xf32> to vector<16x32xf32>
    %956 = arith.mulf %953, %955 : vector<16x32xf32>
    %c0_266 = arith.constant 0 : index
    %c3328 = arith.constant 3328 : index
    %957 = vector.load %arg3[%c0_266, %c3328] : memref<1x3584xf32, #tpu.memory_space<vmem>>, vector<1x32xf32>
    %958 = vector.broadcast %957 : vector<1x32xf32> to vector<16x32xf32>
    %959 = arith.addf %956, %958 : vector<16x32xf32>
    %960 = arith.truncf %959 : vector<16x32xf32> to vector<16x32xbf16>
    %c0_267 = arith.constant 0 : index
    %c1920_268 = arith.constant 1920 : index
    %961 = vector.load %arg2[%c0_267, %c1920_268] : memref<64x2048xbf16, #tpu.memory_space<vmem>>, vector<32x20xbf16>
    %cst_269 = arith.constant dense<0.000000e+00> : vector<16x20xf32>
    %962 = tpu.matmul %960, %961, %cst_269 {dimension_numbers = #tpu.dot_dimension_numbers<[1], [0], [0], [1], [0, 0, 1, 1], [], []>} : vector<16x32xbf16>, vector<32x20xbf16>, vector<16x20xf32> -> vector<16x20xf32>
    %c0_270 = arith.constant 0 : index
    %c3456 = arith.constant 3456 : index
    %963 = vector.load %arg3[%c0_270, %c3456] : memref<1x3584xf32, #tpu.memory_space<vmem>>, vector<1x20xf32>
    %964 = vector.broadcast %963 : vector<1x20xf32> to vector<16x20xf32>
    %965 = arith.addf %962, %964 : vector<16x20xf32>
    %966 = vector.extract_strided_slice %965 {offsets = [0, 0], sizes = [8, 20], strides = [1, 1]} : vector<16x20xf32> to vector<8x20xf32>
    %967 = vector.extract_strided_slice %965 {offsets = [8, 0], sizes = [8, 20], strides = [1, 1]} : vector<16x20xf32> to vector<8x20xf32>
    %968 = tpu.concatenate %966, %967 in 1 : vector<8x20xf32>, vector<8x20xf32> -> vector<8x40xf32>
    %c0_271 = arith.constant 0 : index
    %c0_272 = arith.constant 0 : index
    %969 = vector.load %arg4[%c0_271, %c0_272] : memref<8x40xf32, #tpu.memory_space<vmem>>, vector<8x40xf32>
    tpu.vector_store %arg4[%c0_271, %c0_272], %968 {strides = array<i32>} : memref<8x40xf32, #tpu.memory_space<vmem>>, vector<8x40xf32>,
    return
  }
}

</mosaic_0001>

<bundles_post_ra>
// kernel: decoder_t_forward.1
= control target key start
LH: loop header
LB: loop body
LE: loop exit
PB: predicated region body
PF: predicated region fallthrough
CT: control target
= control target key end

     0   :  { %9 = vsyncpa [#allocation3], 0  ;;  %s6239_s15 = smov [#allocation2]   ;;  %s7273_s0 = inlined_call_operand.vmem [shape: f32[8,32], index: 0, kind: input, shape index: {}]   ;;  %s7274_s1 = inlined_call_operand.vmem [shape: f32[8,64], index: 1, kind: input, shape index: {}]   ;;  %s7275_s2 = inlined_call_operand.hbm [shape: bf16[64,2048], index: 2, kind: input, shape index: {}]   ;;  %s7276_s3 = inlined_call_operand.vmem [shape: f32[1,3584], index: 3, kind: input, shape index: {}]   ;;  %s7277_s4 = inlined_call_operand.vmem [shape: f32[8,40], index: 4, kind: output, shape index: {}]  }
   0x1   :  { %s19_s16 = sshll.u32 %s6239_s15, 4  ;;  %s20_s16 = int_to_ptr.vmem [resolvable:$true] %s19_s16 }
   0x2   :  { %s6225_s17 = scalar_lea.vmem %s20_s16, 8192  ;;  %p6230_p1 = scmp.lt.s32.totalorder %s20_s16, %s20_s16 }
   0x3   :  { %p6226_p0 = scmp.ne.s32.totalorder %s20_s16, %s6225_s17  ;;  %p6231_p2 = scmp.lt.s32.totalorder %s6225_s17, %s6225_s17 }
   0x5   :  { %p6232_p3 = por %p6231_p2, %p6230_p1 }
   0x7   :  { %p6233_p4 = pnand %p6232_p3, %p6226_p0 }
   0x9   :  { %6236 = shalt.err (!%p6233_p4)
}
   0xa   :  { %s6240_s18 = smov 1024   ;;  %s6241_s19 = smov 64  }
   0xb   :  { %25 = dma.hbm_to_vmem [thread:$0]  %s7275_s2, 8192, %s20_s16, [#allocation3], %s6240_s18, %s6240_s18, %s6241_s19  }
   0xc   :  { %6237 = dma.done.wait [#allocation3], 8192  }
   0xd   :  { %6238 = vsyncadd [#allocation3], 4294959104  ;;  %v6242_v0 = vmov 0.0   ;;  %vm6243_vm0 = vmmov 0   ;;  %v32_v1 = vld [vmem:[%s7273_s0] sm:$0xff]  ;;  %s6244_s2 = smov 112  }
   0xe   :  { %5468 = vmatprep.subr.bf16.mxu0 %v6242_v0  ;;  %5470 = vmatprep.mubr.msk.bf16.mxu0 %vm6243_vm0, %v6242_v0  ;;  %v43_v2 = vld [vmem:[#allocation2] sm:$0xf]  ;;  %vm58_vm1 = vcmask 130048   ;;  %v106_v7 = vld [vmem:[#allocation2 + $0x84] sm:$0xf]  ;;  %vm127_vm2 = vcmask 261120  }
   0xf   :  { %5474 = vmatprep.subr.bf16.mxu1 %v6242_v0  ;;  %5478 = vmatprep.mubr.msk.bf16.mxu1 %vm6243_vm0, %v6242_v0  ;;  %v44_v3 = vld [vmem:[#allocation2 + $0x40] sm:$0xf]  ;;  %v107_v8 = vld [vmem:[#allocation2 + $0xc4] sm:$0xf]  ;;  %s6245_s27 = smov 88   ;;  %s6246_s28 = smov 96  }
  0x10   :  { %35 = vrot.lane.b32.xlu0 %v32_v1, %s6244_s2  ;;  %v5147_v4 = vcombine.low %v43_v2, %v44_v3  ;;  %v5151_v9 = vcombine.low %v106_v7, %v107_v8  ;;  %v104_v10 = vld [vmem:[#allocation2 + $0x4] sm:$0xf]  ;;  %v5146_v14 = vld [vmem:[%s7276_s3] ss:$0 sm:$0xff]  ;;  %v5149_v21 = vld [vmem:[%s7276_s3 + $0x1] ss:$0 sm:$0xff] }
  0x11   :  { %v105_v11 = vld [vmem:[#allocation2 + $0x44] sm:$0xf]  ;;  %s6247_s29 = smov 120   ;;  %s6248_s30 = smov 80   ;;  %vm176_vm3 = vcmask 64512   ;;  %vm241_vm4 = vcmask 1043456  }
  0x12   :  { %5469 = vmatpush3.bf16.msra.mxu0 %v5147_v4  ;;  %5475 = vmatpush3.bf16.msra.mxu1 %v5151_v9  ;;  %v5150_v12 = vcombine.low %v104_v10, %v105_v11  ;;  %s6249_s5 = smov 72   ;;  %s6250_s6 = smov 104   ;;  %vm632_vm5 = vcmask 195584   ;;  %vm2494_vm6 = vcmask 523264   ;;  %vm5137_vm7 = vcmask 162816  }
  0x13   :  { %5482 = vmatprep.subr.bf16.mxu0 %v6242_v0  ;;  %5476 = vmatprep.subr.bf16.mxu1 %v6242_v0  ;;  %s6251_s7 = smov 56   ;;  %s6252_s8 = smov 48   ;;  %vm5139_vm8 = vcmask 326656  }
  0x14   :  { %s6253_s9 = smov 40   ;;  %s6254_s10 = smov 8  }
  0x15   :  { %s6255_s11 = smov 16   ;;  %s6256_s12 = smov 24  }
  0x16   :  { %5477 = vmatpush3.bf16.msra.mxu1 %v5150_v12  ;;  %s6257_s23 = smov 20  }
  0x17   :  { %5488 = vmatprep.subr.bf16.mxu1 %v6242_v0 }
  0x82   :  { %v36_v5 = vpop.permute.xlu0 %35 }
  0x83   :  { %v42_v6 = vpack.c.bf16 %v36_v5, %v32_v1 }
  0x85   :  { %5471 = vmatmul.mubr.msk.bf16.vlgmr.msra.gmra.mxu0 %vm58_vm1, %v42_v6 }
  0x86   :  { %5484 = vmatprep.mubr.msk.bf16.mxu0 %vm6243_vm0, %v6242_v0 }
 0x145   :  { %v96_v13 = vpop.f32.mrf.mxu0 }
 0x146   :  { %v6306_v17 = vadd.f32 %v5146_v14, %v96_v13 }
 0x147   :  { %v5472_v15 = vpop.f32.mrf.mxu0 }
 0x149   :  { %v99_v16 = vpop.f32.mrf.mxu0 }
 0x14a   :  { %v6308_v18 = vadd.f32 %v5146_v14, %v99_v16 }
 0x14b   :  { %v5473_v19 = vpop.f32.mrf.mxu0 }
 0x14c   :  { %v103_v20 = vpack.c.bf16 %v6308_v18, %v6306_v17 }
 0x14e   :  { %5479 = vmatmul.mubr.msk.bf16.vlgmr.msra.gmra.mxu1 %vm127_vm2, %v103_v20 }
 0x14f   :  { %5490 = vmatprep.mubr.msk.bf16.mxu1 %vm6243_vm0, %v6242_v0 }
 0x20e   :  { %v165_v22 = vpop.f32.mrf.mxu1 }
 0x20f   :  { %v166_v23 = vadd.f32 %v5149_v21, %v165_v22 }
 0x210   :  { %v5480_v24 = vpop.f32.mrf.mxu1 }
 0x211   :  { %v6318_v25 = vpack.c.bf16 %v166_v23, %v166_v23 }
 0x212   :  { %v168_v26 = vpop.f32.mrf.mxu1 }
 0x213   :  { %287 = vrot.lane.b32.xlu1 %v6318_v25, %s6245_s27  ;;  %174 = vrot.lane.b32.xlu0 %v6318_v25, %s6246_s28  ;;  %v169_v28 = vadd.f32 %v5149_v21, %v168_v26 }
 0x214   :  { %v5481_v27 = vpop.f32.mrf.mxu1 }
 0x215   :  { %v6332_v29 = vpack.c.bf16 %v169_v28, %v169_v28 }
 0x217   :  { %285 = vrot.lane.b32.xlu1 %v6318_v25, %s6247_s29  ;;  %398 = vrot.lane.b32.xlu0 %v6318_v25, %s6248_s30 }
 0x21b   :  { %396 = vrot.lane.b32.xlu1 %v6318_v25, %s6244_s2  ;;  %509 = vrot.lane.b32.xlu0 %v6318_v25, %s6249_s5 }
 0x21f   :  { %507 = vrot.lane.b32.xlu1 %v6318_v25, %s6250_s6  ;;  %636 = vrot.lane.b32.xlu0 %v6332_v29, %s6246_s28 }
 0x223   :  { %747 = vrot.lane.b32.xlu1 %v6332_v29, %s6245_s27  ;;  %745 = vrot.lane.b32.xlu0 %v6332_v29, %s6247_s29 }
 0x227   :  { %858 = vrot.lane.b32.xlu1 %v6332_v29, %s6248_s30  ;;  %856 = vrot.lane.b32.xlu0 %v6332_v29, %s6244_s2 }
 0x22b   :  { %969 = vrot.lane.b32.xlu1 %v6332_v29, %s6249_s5  ;;  %967 = vrot.lane.b32.xlu0 %v6332_v29, %s6250_s6 }
 0x285   :  { %v175_v30 = vpop.permute.xlu0 %174  ;;  %v288_v32 = vpop.permute.xlu1 %287 }
 0x286   :  { %v181_v31 = vsel %vm176_vm3, %v175_v30, 0  ;;  %v293_v33 = vsel %vm176_vm3, %v288_v32, 0 }
 0x287   :  { %5483 = vmatpush3.bf16.xpose.msra.mxu0 %v181_v31 }
 0x288   :  { %5494 = vmatprep.subr.bf16.mxu0 %v6242_v0 }
 0x289   :  { %v399_v34 = vpop.permute.xlu0 %398  ;;  %v286_v35 = vpop.permute.xlu1 %285 }
 0x28a   :  { %v404_v36 = vsel %vm176_vm3, %v399_v34, 0 }
 0x28d   :  { %v510_v37 = vpop.permute.xlu0 %509  ;;  %v397_v38 = vpop.permute.xlu1 %396 }
 0x28e   :  { %5485 = vmatmul.mubr.msk.bf16.vlgmr.msra.gmra.mxu0 %vm176_vm3, %v6318_v25  ;;  %v515_v39 = vsel %vm176_vm3, %v510_v37, 0 }
 0x28f   :  { %5495 = vmatpush3.bf16.xpose.msra.mxu0 %v293_v33  ;;  %5496 = vmatprep.mubr.msk.bf16.mxu0 %vm6243_vm0, %v6242_v0 }
 0x290   :  { %5506 = vmatprep.subr.bf16.mxu0 %v6242_v0 }
 0x291   :  { %v637_v40 = vpop.permute.xlu0 %636  ;;  %v508_v41 = vpop.permute.xlu1 %507 }
 0x292   :  { %v642_v42 = vsel %vm176_vm3, %v637_v40, 0 }
 0x295   :  { %v748_v43 = vpop.permute.xlu1 %747  ;;  %v746_v46 = vpop.permute.xlu0 %745 }
 0x296   :  { %5497 = vmatmul.mubr.msk.bf16.vlgmr.msra.gmra.mxu0 %vm176_vm3, %v286_v35  ;;  %v753_v44 = vsel %vm176_vm3, %v748_v43, 0 }
 0x297   :  { %5507 = vmatpush3.bf16.xpose.msra.mxu0 %v404_v36  ;;  %5508 = vmatprep.mubr.msk.bf16.mxu0 %vm6243_vm0, %v6242_v0 }
 0x298   :  { %5518 = vmatprep.subr.bf16.mxu0 %v6242_v0 }
 0x299   :  { %v859_v45 = vpop.permute.xlu1 %858  ;;  %v857_v49 = vpop.permute.xlu0 %856 }
 0x29a   :  { %v864_v47 = vsel %vm176_vm3, %v859_v45, 0 }
 0x29d   :  { %v970_v48 = vpop.permute.xlu1 %969  ;;  %v968_v51 = vpop.permute.xlu0 %967 }
 0x29e   :  { %5509 = vmatmul.mubr.msk.bf16.vlgmr.msra.gmra.mxu0 %vm176_vm3, %v397_v38  ;;  %v975_v50 = vsel %vm176_vm3, %v970_v48, 0 }
 0x29f   :  { %5519 = vmatpush3.bf16.xpose.msra.mxu0 %v515_v39  ;;  %5520 = vmatprep.mubr.msk.bf16.mxu0 %vm6243_vm0, %v6242_v0 }
 0x2a0   :  { %5530 = vmatprep.subr.bf16.mxu0 %v6242_v0 }
 0x2a6   :  { %5521 = vmatmul.mubr.msk.bf16.vlgmr.msra.gmra.mxu0 %vm176_vm3, %v508_v41 }
 0x2a7   :  { %5531 = vmatpush3.bf16.xpose.msra.mxu0 %v642_v42  ;;  %5532 = vmatprep.mubr.msk.bf16.mxu0 %vm6243_vm0, %v6242_v0 }
 0x2a8   :  { %5542 = vmatprep.subr.bf16.mxu0 %v6242_v0 }
 0x2ae   :  { %5533 = vmatmul.mubr.msk.bf16.vlgmr.msra.gmra.mxu0 %vm176_vm3, %v6332_v29 }
 0x2af   :  { %5543 = vmatpush3.bf16.xpose.msra.mxu0 %v753_v44  ;;  %5544 = vmatprep.mubr.msk.bf16.mxu0 %vm6243_vm0, %v6242_v0 }
 0x2b0   :  { %5554 = vmatprep.subr.bf16.mxu0 %v6242_v0 }
 0x2b6   :  { %5545 = vmatmul.mubr.msk.bf16.vlgmr.msra.gmra.mxu0 %vm176_vm3, %v746_v46 }
 0x2b7   :  { %5555 = vmatpush3.bf16.xpose.msra.mxu0 %v864_v47  ;;  %5556 = vmatprep.mubr.msk.bf16.mxu0 %vm6243_vm0, %v6242_v0 }
 0x2b8   :  { %5566 = vmatprep.subr.bf16.mxu0 %v6242_v0 }
 0x2be   :  { %5557 = vmatmul.mubr.msk.bf16.vlgmr.msra.gmra.mxu0 %vm176_vm3, %v857_v49 }
 0x2bf   :  { %5567 = vmatpush3.bf16.xpose.msra.mxu0 %v975_v50  ;;  %5568 = vmatprep.mubr.msk.bf16.mxu0 %vm6243_vm0, %v6242_v0 }
 0x2c0   :  { %5578 = vmatprep.subr.bf16.mxu0 %v6242_v0 }
 0x2c6   :  { %5569 = vmatmul.mubr.msk.bf16.vlgmr.msra.gmra.mxu0 %vm176_vm3, %v968_v51 }
 0x2c7   :  { %5582 = vmatprep.mubr.msk.bf16.mxu0 %vm6243_vm0, %v6242_v0 }
 0x34e   :  { %v217_v52 = vpop.f32.mrf.mxu0 }
 0x34f   :  { %v223_v53 = vmul.f32 0.35355338, %v217_v52 }
 0x350   :  { %v5486_v54 = vpop.f32.mrf.mxu0 }
 0x351   :  { %v224_v55 = vsel %vm176_vm3, %v223_v53, -inf }
 0x352   :  { %225 = vmax.xlane.f32.xlu1 %v224_v55  ;;  %v220_v56 = vpop.f32.mrf.mxu0 }
 0x354   :  { %v5487_v57 = vpop.f32.mrf.mxu0 }
 0x356   :  { %v329_v58 = vpop.f32.mrf.mxu0 }
 0x357   :  { %v335_v59 = vmul.f32 0.35355338, %v329_v58 }
 0x358   :  { %v5498_v60 = vpop.f32.mrf.mxu0 }
 0x359   :  { %v336_v61 = vsel %vm176_vm3, %v335_v59, -inf }
 0x35a   :  { %337 = vmax.xlane.f32.xlu0 %v336_v61  ;;  %v332_v62 = vpop.f32.mrf.mxu0 }
 0x35c   :  { %v5499_v63 = vpop.f32.mrf.mxu0 }
 0x35e   :  { %v440_v1 = vpop.f32.mrf.mxu0 }
 0x35f   :  { %v446_v2 = vmul.f32 0.35355338, %v440_v1 }
 0x360   :  { %v5510_v3 = vpop.f32.mrf.mxu0 }
 0x361   :  { %v447_v4 = vsel %vm176_vm3, %v446_v2, -inf }
 0x362   :  { %448 = vmax.xlane.f32.xlu0 %v447_v4  ;;  %v443_v5 = vpop.f32.mrf.mxu0 }
 0x364   :  { %v5511_v6 = vpop.f32.mrf.mxu0 }
 0x366   :  { %v551_v7 = vpop.f32.mrf.mxu0 }
 0x367   :  { %v557_v8 = vmul.f32 0.35355338, %v551_v7 }
 0x368   :  { %v5522_v9 = vpop.f32.mrf.mxu0 }
 0x369   :  { %v558_v10 = vsel %vm176_vm3, %v557_v8, -inf }
 0x36a   :  { %559 = vmax.xlane.f32.xlu1 %v558_v10  ;;  %v554_v11 = vpop.f32.mrf.mxu0 }
 0x36c   :  { %v5523_v12 = vpop.f32.mrf.mxu0 }
 0x36e   :  { %v678_v13 = vpop.f32.mrf.mxu0 }
 0x36f   :  { %v684_v14 = vmul.f32 0.35355338, %v678_v13 }
 0x370   :  { %v5534_v15 = vpop.f32.mrf.mxu0 }
 0x371   :  { %v685_v16 = vsel %vm176_vm3, %v684_v14, -inf }
 0x372   :  { %686 = vmax.xlane.f32.xlu0 %v685_v16  ;;  %v681_v19 = vpop.f32.mrf.mxu0 }
 0x374   :  { %v5535_v20 = vpop.f32.mrf.mxu0 }
 0x376   :  { %v789_v21 = vpop.f32.mrf.mxu0 }
 0x377   :  { %v6397_v22 = vmul.f32 0.35355338, %v789_v21 }
 0x378   :  { %v5546_v23 = vpop.f32.mrf.mxu0 }
 0x379   :  { %v796_v24 = vsel %vm176_vm3, %v6397_v22, -inf }
 0x37a   :  { %797 = vmax.xlane.f32.xlu1 %v796_v24  ;;  %v792_v26 = vpop.f32.mrf.mxu0 }
 0x37c   :  { %v5547_v27 = vpop.f32.mrf.mxu0 }
 0x37e   :  { %v900_v28 = vpop.f32.mrf.mxu0 }
 0x37f   :  { %v906_v30 = vmul.f32 0.35355338, %v900_v28 }
 0x380   :  { %v5558_v31 = vpop.f32.mrf.mxu0 }
 0x381   :  { %v907_v32 = vsel %vm176_vm3, %v906_v30, -inf }
 0x382   :  { %908 = vmax.xlane.f32.xlu0 %v907_v32  ;;  %v903_v33 = vpop.f32.mrf.mxu0 }
 0x384   :  { %v5559_v34 = vpop.f32.mrf.mxu0 }
 0x386   :  { %v1011_v35 = vpop.f32.mrf.mxu0 }
 0x387   :  { %v6406_v39 = vmul.f32 0.35355338, %v1011_v35 }
 0x388   :  { %v5570_v36 = vpop.f32.mrf.mxu0 }
 0x389   :  { %v1018_v40 = vsel %vm176_vm3, %v6406_v39, -inf }
 0x38a   :  { %v1014_v37 = vpop.f32.mrf.mxu0 }
 0x38b   :  { %348 = vrot.lane.b32.xlu1 %v6318_v25, %s6251_s7 }
 0x38c   :  { %v5571_v38 = vpop.f32.mrf.mxu0 }
 0x398   :  { %236 = vrot.lane.b32.xlu0 %v6318_v25, %s6241_s19 }
 0x3af   :  { %1019 = vmax.xlane.f32.xlu1 %v1018_v40 }
 0x3c0   :  { %459 = vrot.lane.b32.xlu1 %v6318_v25, %s6252_s8 }
 0x3db   :  { %v226_v41 = vpop.xlane.xlu1 %225 }
 0x3dc   :  { %v227_v42 = vsub.f32 %v223_v53, %v226_v41 }
 0x3de   :  { %v228_v43 = vmul.f32 1.442695, %v227_v42 }
 0x3e0   :  { %6065 = vpow2.f32 %v228_v43 }
 0x3e3   :  { %v338_v44 = vpop.xlane.xlu0 %337 }
 0x3e4   :  { %v339_v45 = vsub.f32 %v335_v59, %v338_v44 }
 0x3e6   :  { %v340_v46 = vmul.f32 1.442695, %v339_v45 }
 0x3e8   :  { %6067 = vpow2.f32 %v340_v46 }
 0x3eb   :  { %v449_v47 = vpop.xlane.xlu0 %448 }
 0x3ec   :  { %v450_v48 = vsub.f32 %v446_v2, %v449_v47 }
 0x3ed   :  { %v6412_v49 = vpop.eup %6065 }
 0x3ee   :  { %v451_v50 = vmul.f32 1.442695, %v450_v48  ;;  %v230_v51 = vsel %vm176_vm3, %v6412_v49, 0.0 }
 0x3ef   :  { %231 = vadd.xlane.f32.xlu0 %v230_v51 }
 0x3f0   :  { %6069 = vpow2.f32 %v451_v50 }
 0x3f3   :  { %v560_v52 = vpop.xlane.xlu1 %559 }
 0x3f4   :  { %v561_v54 = vsub.f32 %v557_v8, %v560_v52 }
 0x3f5   :  { %v6416_v55 = vpop.eup %6067 }
 0x3f6   :  { %v562_v53 = vmul.f32 1.442695, %v561_v54  ;;  %v342_v56 = vsel %vm176_vm3, %v6416_v55, 0.0 }
 0x3f7   :  { %343 = vadd.xlane.f32.xlu1 %v342_v56 }
 0x3f8   :  { %6071 = vpow2.f32 %v562_v53 }
 0x3fb   :  { %v687_v57 = vpop.xlane.xlu0 %686 }
 0x3fc   :  { %v688_v58 = vsub.f32 %v684_v14, %v687_v57 }
 0x3fd   :  { %v6420_v59 = vpop.eup %6069 }
 0x3fe   :  { %v689_v60 = vmul.f32 1.442695, %v688_v58  ;;  %v453_v61 = vsel %vm176_vm3, %v6420_v59, 0.0 }
 0x3ff   :  { %454 = vadd.xlane.f32.xlu0 %v453_v61 }
 0x400   :  { %6073 = vpow2.f32 %v689_v60 }
 0x403   :  { %v798_v8 = vpop.xlane.xlu1 %797 }
 0x404   :  { %v799_v9 = vsub.f32 %v6397_v22, %v798_v8 }
 0x405   :  { %v6424_v62 = vpop.eup %6071 }
 0x406   :  { %v564_v63 = vsel %vm176_vm3, %v6424_v62, 0.0  ;;  %v800_v12 = vmul.f32 1.442695, %v799_v9 }
 0x407   :  { %565 = vadd.xlane.f32.xlu1 %v564_v63  ;;  %v349_v15 = vpop.permute.xlu1 %348 }
 0x408   :  { %v354_v31 = vsel %vm241_vm4, %v349_v15, 0 }
 0x40b   :  { %v909_v1 = vpop.xlane.xlu0 %908 }
 0x40c   :  { %v910_v2 = vsub.f32 %v906_v30, %v909_v1 }
 0x40d   :  { %v6428_v3 = vpop.eup %6073 }
 0x40e   :  { %v911_v4 = vmul.f32 1.442695, %v910_v2  ;;  %v691_v5 = vsel %vm176_vm3, %v6428_v3, 0.0 }
 0x40f   :  { %v237_v6 = vpop.permute.xlu0 %236  ;;  %692 = vadd.xlane.f32.xlu1 %v691_v5 }
 0x410   :  { %6075 = vpow2.f32 %v911_v4  ;;  %v243_v7 = vsel %vm241_vm4, %v237_v6, 0 }
 0x411   :  { %5489 = vmatpush3.bf16.msra.mxu1 %v243_v7  ;;  %6077 = vpow2.f32 %v800_v12 }
 0x412   :  { %5500 = vmatprep.subr.bf16.mxu1 %v6242_v0 }
 0x415   :  { %570 = vrot.lane.b32.xlu0 %v6318_v25, %s6253_s9 }
 0x41d   :  { %v6437_v10 = vpop.eup %6075 }
 0x41e   :  { %v913_v11 = vsel %vm176_vm3, %v6437_v10, 0.0  ;;  %v6441_v13 = vpop.eup %6077 }
 0x41f   :  { %914 = vadd.xlane.f32.xlu1 %v913_v11  ;;  %v802_v14 = vsel %vm176_vm3, %v6441_v13, 0.0 }
 0x434   :  { %803 = vadd.xlane.f32.xlu0 %v802_v14 }
 0x438   :  { %v1020_v16 = vpop.xlane.xlu1 %1019 }
 0x439   :  { %v1021_v25 = vsub.f32 %v6406_v39, %v1020_v16 }
 0x43b   :  { %v1022_v19 = vmul.f32 1.442695, %v1021_v25 }
 0x43c   :  { %v460_v23 = vpop.permute.xlu1 %459 }
 0x43d   :  { %6079 = vpow2.f32 %v1022_v19  ;;  %v465_v35 = vsel %vm241_vm4, %v460_v23, 0 }
 0x44a   :  { %v6446_v20 = vpop.eup %6079  ;;  %808 = vrot.lane.b32.xlu0 %v6332_v29, %s6251_s7 }
 0x44b   :  { %v1024_v21 = vsel %vm176_vm3, %v6446_v20, 0.0 }
 0x44c   :  { %1025 = vadd.xlane.f32.xlu1 %v1024_v21 }
 0x44e   :  { %919 = vrot.lane.b32.xlu0 %v6332_v29, %s6252_s8 }
 0x452   :  { %1030 = vrot.lane.b32.xlu0 %v6332_v29, %s6253_s9 }
 0x45d   :  { %697 = vrot.lane.b32.xlu1 %v6332_v29, %s6241_s19 }
 0x478   :  { %v232_v22 = vpop.xlane.xlu0 %231 }
 0x479   :  { %6081 = vrcp.f32 %v232_v22 }
 0x480   :  { %v344_v24 = vpop.xlane.xlu1 %343 }
 0x481   :  { %6083 = vrcp.f32 %v344_v24 }
 0x486   :  { %v6082_v26 = vpop.eup %6081 }
 0x487   :  { %v234_v27 = vmul.f32 %v6082_v26, %v6412_v49 }
 0x488   :  { %v455_v28 = vpop.xlane.xlu0 %454 }
 0x489   :  { %6085 = vrcp.f32 %v455_v28  ;;  %v235_v30 = vpack.c.bf16 %v234_v27, %v234_v27  ;;  %v1096_v28 = vld [vmem:[#allocation2 + $0x88] sm:$0xf] }
 0x48b   :  { %5491 = vmatmul.mubr.msk.bf16.vlgmr.msra.gmra.mxu1 %vm176_vm3, %v235_v30  ;;  %v1097_v30 = vld [vmem:[#allocation2 + $0xc8] sm:$0xf] }
 0x48c   :  { %5501 = vmatpush3.bf16.msra.mxu1 %v354_v31  ;;  %5502 = vmatprep.mubr.msk.bf16.mxu1 %vm6243_vm0, %v6242_v0  ;;  %v571_v38 = vpop.permute.xlu0 %570 }
 0x48d   :  { %5512 = vmatprep.subr.bf16.mxu1 %v6242_v0  ;;  %v576_v40 = vsel %vm241_vm4, %v571_v38, 0 }
 0x48e   :  { %v6084_v29 = vpop.eup %6083 }
 0x48f   :  { %v346_v32 = vmul.f32 %v6084_v29, %v6416_v55  ;;  %v5171_v29 = vcombine.low %v1096_v28, %v1097_v30 }
 0x490   :  { %v566_v33 = vpop.xlane.xlu1 %565 }
 0x491   :  { %6087 = vrcp.f32 %v566_v33  ;;  %v347_v34 = vpack.c.bf16 %v346_v32, %v346_v32  ;;  %5579 = vmatpush3.bf16.msra.mxu0 %v5171_v29 }
 0x492   :  { %5580 = vmatprep.subr.bf16.mxu0 %v6242_v0 }
 0x493   :  { %5503 = vmatmul.mubr.msk.bf16.vlgmr.msra.gmra.mxu1 %vm176_vm3, %v347_v34 }
 0x494   :  { %5513 = vmatpush3.bf16.msra.mxu1 %v465_v35  ;;  %5514 = vmatprep.mubr.msk.bf16.mxu1 %vm6243_vm0, %v6242_v0  ;;  %v1094_v35 = vld [vmem:[#allocation2 + $0x8] sm:$0xf] }
 0x495   :  { %5524 = vmatprep.subr.bf16.mxu1 %v6242_v0 }
 0x496   :  { %v6086_v36 = vpop.eup %6085 }
 0x497   :  { %v457_v37 = vmul.f32 %v6086_v36, %v6420_v59  ;;  %v1095_v36 = vld [vmem:[#allocation2 + $0x48] sm:$0xf] }
 0x498   :  { %v693_v44 = vpop.xlane.xlu1 %692 }
 0x499   :  { %v458_v39 = vpack.c.bf16 %v457_v37, %v457_v37  ;;  %6089 = vrcp.f32 %v693_v44  ;;  %v5170_v37 = vcombine.low %v1094_v35, %v1095_v36 }
 0x49b   :  { %5515 = vmatmul.mubr.msk.bf16.vlgmr.msra.gmra.mxu1 %vm176_vm3, %v458_v39  ;;  %5581 = vmatpush3.bf16.msra.mxu0 %v5170_v37 }
 0x49c   :  { %5525 = vmatpush3.bf16.msra.mxu1 %v576_v40  ;;  %5526 = vmatprep.mubr.msk.bf16.mxu1 %vm6243_vm0, %v6242_v0 }
 0x49d   :  { %5536 = vmatprep.subr.bf16.mxu1 %v6242_v0  ;;  %5594 = vmatprep.subr.bf16.mxu0 %v6242_v0 }
 0x49e   :  { %v6088_v41 = vpop.eup %6087 }
 0x49f   :  { %v568_v42 = vmul.f32 %v6088_v41, %v6424_v62 }
 0x4a1   :  { %v569_v43 = vpack.c.bf16 %v568_v42, %v568_v42 }
 0x4a3   :  { %5527 = vmatmul.mubr.msk.bf16.vlgmr.msra.gmra.mxu1 %vm176_vm3, %v569_v43 }
 0x4a4   :  { %5538 = vmatprep.mubr.msk.bf16.mxu1 %vm6243_vm0, %v6242_v0 }
 0x4a6   :  { %v6090_v47 = vpop.eup %6089 }
 0x4a7   :  { %v695_v49 = vmul.f32 %v6090_v47, %v6428_v3 }
 0x4a8   :  { %v915_v46 = vpop.xlane.xlu1 %914 }
 0x4a9   :  { %v696_v54 = vpack.c.bf16 %v695_v49, %v695_v49 }
 0x4bd   :  { %v804_v45 = vpop.xlane.xlu0 %803 }
 0x4be   :  { %6091 = vrcp.f32 %v804_v45 }
 0x4bf   :  { %6093 = vrcp.f32 %v915_v46 }
 0x4c1   :  { %v809_v52 = vpop.permute.xlu0 %808 }
 0x4c2   :  { %v814_v53 = vsel %vm241_vm4, %v809_v52, 0 }
 0x4c5   :  { %v920_v57 = vpop.permute.xlu0 %919 }
 0x4c6   :  { %v925_v60 = vsel %vm241_vm4, %v920_v57, 0 }
 0x4c9   :  { %v1031_v62 = vpop.permute.xlu0 %1030 }
 0x4ca   :  { %v1036_v2 = vsel %vm241_vm4, %v1031_v62, 0 }
 0x4cb   :  { %v6092_v55 = vpop.eup %6091 }
 0x4cc   :  { %v806_v56 = vmul.f32 %v6092_v55, %v6441_v13  ;;  %v6094_v59 = vpop.eup %6093 }
 0x4cd   :  { %v917_v61 = vmul.f32 %v6094_v59, %v6437_v10 }
 0x4ce   :  { %v807_v58 = vpack.c.bf16 %v806_v56, %v806_v56 }
 0x4cf   :  { %v918_v63 = vpack.c.bf16 %v917_v61, %v917_v61 }
 0x4d5   :  { %v1026_v48 = vpop.xlane.xlu1 %1025 }
 0x4d6   :  { %6095 = vrcp.f32 %v1026_v48 }
 0x4d9   :  { %v698_v50 = vpop.permute.xlu1 %697 }
 0x4da   :  { %v703_v51 = vsel %vm241_vm4, %v698_v50, 0 }
 0x4db   :  { %5537 = vmatpush3.bf16.msra.mxu1 %v703_v51 }
 0x4dc   :  { %5548 = vmatprep.subr.bf16.mxu1 %v6242_v0 }
 0x4de   :  { %5539 = vmatmul.mubr.msk.bf16.vlgmr.msra.gmra.mxu1 %vm176_vm3, %v696_v54 }
 0x4df   :  { %5549 = vmatpush3.bf16.msra.mxu1 %v814_v53  ;;  %5550 = vmatprep.mubr.msk.bf16.mxu1 %vm6243_vm0, %v6242_v0 }
 0x4e0   :  { %5560 = vmatprep.subr.bf16.mxu1 %v6242_v0 }
 0x4e3   :  { %v6096_v1 = vpop.eup %6095 }
 0x4e4   :  { %v1028_v3 = vmul.f32 %v6096_v1, %v6446_v20  ;;  %v5169_v1 = vld [vmem:[%s7276_s3 + $0x2] ss:$0 sm:$0xff] }
 0x4e6   :  { %5551 = vmatmul.mubr.msk.bf16.vlgmr.msra.gmra.mxu1 %vm176_vm3, %v807_v58  ;;  %v1029_v4 = vpack.c.bf16 %v1028_v3, %v1028_v3 }
 0x4e7   :  { %5561 = vmatpush3.bf16.msra.mxu1 %v925_v60  ;;  %5562 = vmatprep.mubr.msk.bf16.mxu1 %vm6243_vm0, %v6242_v0 }
 0x4e8   :  { %5572 = vmatprep.subr.bf16.mxu1 %v6242_v0 }
 0x4ee   :  { %5563 = vmatmul.mubr.msk.bf16.vlgmr.msra.gmra.mxu1 %vm176_vm3, %v918_v63 }
 0x4ef   :  { %5573 = vmatpush3.bf16.msra.mxu1 %v1036_v2  ;;  %5574 = vmatprep.mubr.msk.bf16.mxu1 %vm6243_vm0, %v6242_v0 }
 0x4f0   :  { %5586 = vmatprep.subr.bf16.mxu1 %v6242_v0 }
 0x4f6   :  { %5575 = vmatmul.mubr.msk.bf16.vlgmr.msra.gmra.mxu1 %vm176_vm3, %v1029_v4 }
 0x4f7   :  { %5590 = vmatprep.mubr.msk.bf16.mxu1 %vm6243_vm0, %v6242_v0 }
 0x54b   :  { %v279_v5 = vpop.f32.mrf.mxu1 }
 0x54d   :  { %v5492_v6 = vpop.f32.mrf.mxu1 }
 0x54f   :  { %v282_v7 = vpop.f32.mrf.mxu1 }
 0x551   :  { %v5493_v8 = vpop.f32.mrf.mxu1 }
 0x553   :  { %v390_v9 = vpop.f32.mrf.mxu1 }
 0x555   :  { %v5504_v10 = vpop.f32.mrf.mxu1 }
 0x557   :  { %v393_v11 = vpop.f32.mrf.mxu1 }
 0x559   :  { %v5505_v12 = vpop.f32.mrf.mxu1 }
 0x55b   :  { %v501_v13 = vpop.f32.mrf.mxu1 }
 0x55d   :  { %v5516_v14 = vpop.f32.mrf.mxu1 }
 0x55f   :  { %v504_v15 = vpop.f32.mrf.mxu1 }
 0x561   :  { %v5517_v16 = vpop.f32.mrf.mxu1 }
 0x562   :  { %v1283_v16 = vld [vmem:[#allocation2 + $0x90] sm:$0xf] }
 0x563   :  { %v612_v25 = vpop.f32.mrf.mxu1 }
 0x565   :  { %v5528_v19 = vpop.f32.mrf.mxu1 }
 0x566   :  { %v1281_v19 = vld [vmem:[#allocation2 + $0x10] sm:$0xf] }
 0x567   :  { %v615_v20 = vpop.f32.mrf.mxu1 }
 0x568   :  { %v1282_v20 = vld [vmem:[#allocation2 + $0x50] sm:$0xf] }
 0x569   :  { %v5529_v21 = vpop.f32.mrf.mxu1 }
 0x56a   :  { %v1215_v21 = vld [vmem:[#allocation2 + $0x8c] sm:$0xf] }
 0x59e   :  { %v739_v22 = vpop.f32.mrf.mxu1 }
 0x5a0   :  { %v5540_v23 = vpop.f32.mrf.mxu1 }
 0x5a2   :  { %v742_v24 = vpop.f32.mrf.mxu1 }
 0x5a3   :  { %v1213_v24 = vld [vmem:[#allocation2 + $0xc] sm:$0xf] }
 0x5a4   :  { %v5541_v26 = vpop.f32.mrf.mxu1 }
 0x5a5   :  { %v1214_v26 = vld [vmem:[#allocation2 + $0x4c] sm:$0xf] }
 0x5a6   :  { %v850_v27 = vpop.f32.mrf.mxu1  ;;  %v5176_v28 = vcombine.low %v1213_v24, %v1214_v26 }
 0x5a7   :  { %v6005_v31 = vpack.i.bf16 %v850_v27, %v390_v9  ;;  %v5180_v27 = vcombine.low %v1281_v19, %v1282_v20 }
 0x5a8   :  { %v5552_v32 = vpop.f32.mrf.mxu1 }
 0x5a9   :  { %6006 = vrot.lane.b32.xlu1 %v6005_v31, %s6254_s10 }
 0x5aa   :  { %v853_v33 = vpop.f32.mrf.mxu1 }
 0x5ac   :  { %v5553_v34 = vpop.f32.mrf.mxu1 }
 0x5ae   :  { %v961_v38 = vpop.f32.mrf.mxu1 }
 0x5af   :  { %v6010_v39 = vpack.i.bf16 %v961_v38, %v501_v13 }
 0x5b0   :  { %v5564_v40 = vpop.f32.mrf.mxu1 }
 0x5b1   :  { %6011 = vrot.lane.b32.xlu0 %v6010_v39, %s6255_s11 }
 0x5b2   :  { %v964_v41 = vpop.f32.mrf.mxu1 }
 0x5b4   :  { %v5565_v42 = vpop.f32.mrf.mxu1 }
 0x5b6   :  { %v1072_v43 = vpop.f32.mrf.mxu1 }
 0x5b7   :  { %v6015_v44 = vpack.i.bf16 %v1072_v43, %v612_v25  ;;  %v1284_v25 = vld [vmem:[#allocation2 + $0xd0] sm:$0xf] }
 0x5b8   :  { %v5576_v45 = vpop.f32.mrf.mxu1 }
 0x5b9   :  { %6016 = vrot.lane.b32.xlu1 %v6015_v44, %s6256_s12 }
 0x5ba   :  { %v1075_v46 = vpop.f32.mrf.mxu1 }
 0x5bc   :  { %v5577_v47 = vpop.f32.mrf.mxu1 }
 0x61b   :  { %v6007_v48 = vpop.permute.xlu1 %6006 }
 0x61c   :  { %v6009_v50 = vunpack.i.h.bf16 %v6007_v48  ;;  %v6008_v51 = vunpack.i.l.bf16 %v6007_v48  ;;  %v5173_v48 = vld [vmem:[%s7276_s3 + $0x8] ss:$0 sm:$0xff] }
 0x61e   :  { %v1090_v53 = vsel %vm176_vm3, %v739_v22, %v6009_v50  ;;  %v630_v56 = vsel %vm176_vm3, %v279_v5, %v6008_v51  ;;  %v1216_v22 = vld [vmem:[#allocation2 + $0xcc] sm:$0xf] }
 0x61f   :  { %v5177_v23 = vcombine.low %v1215_v21, %v1216_v22 }
 0x621   :  { %5587 = vmatpush3.bf16.msra.mxu1 %v5177_v23 }
 0x622   :  { %5588 = vmatprep.subr.bf16.mxu1 %v6242_v0 }
 0x623   :  { %v6012_v49 = vpop.permute.xlu0 %6011 }
 0x624   :  { %v6014_v52 = vunpack.i.h.bf16 %v6012_v49  ;;  %v6013_v54 = vunpack.i.l.bf16 %v6012_v49 }
 0x625   :  { %5589 = vmatpush3.bf16.msra.mxu1 %v5176_v28 }
 0x626   :  { %v1091_v59 = vsel %vm58_vm1, %v1090_v53, %v6014_v52  ;;  %v631_v60 = vsel %vm58_vm1, %v630_v56, %v6013_v54  ;;  %5602 = vmatprep.subr.bf16.mxu1 %v6242_v0  ;;  %v5174_v54 = vld [vmem:[%s7276_s3 + $0x9] ss:$0 sm:$0xff] }
 0x62b   :  { %v6017_v55 = vpop.permute.xlu1 %6016 }
 0x62c   :  { %v6019_v57 = vunpack.i.h.bf16 %v6017_v55  ;;  %v6018_v58 = vunpack.i.l.bf16 %v6017_v55 }
 0x62e   :  { %v1092_v61 = vsel %vm632_vm5, %v1091_v59, %v6019_v57  ;;  %v633_v62 = vsel %vm632_vm5, %v631_v60, %v6018_v58  ;;  %v5179_v58 = vld [vmem:[%s7276_s3 + $0x4] ss:$0 sm:$0xff] }
 0x62f   :  { %v1093_v63 = vpack.c.bf16 %v1092_v61, %v633_v62 }
 0x631   :  { %5583 = vmatmul.mubr.msk.bf16.vlgmr.msra.gmra.mxu0 %vm127_vm2, %v1093_v63 }
 0x632   :  { %5598 = vmatprep.mubr.msk.bf16.mxu0 %vm6243_vm0, %v6242_v0 }
 0x6f1   :  { %v1154_v2 = vpop.f32.mrf.mxu0 }
 0x6f2   :  { %v1155_v3 = vadd.f32 %v5169_v1, %v1154_v2 }
 0x6f3   :  { %v5584_v4 = vpop.f32.mrf.mxu0 }
 0x6f4   :  { %v1161_v5 = vadd.f32 %v1155_v3, %v6306_v17  ;;  %v33_v17 = vld [vmem:[%s7274_s1] sm:$0xff] }
 0x6f5   :  { %v1157_v6 = vpop.f32.mrf.mxu0  ;;  %v5175_v3 = vld [vmem:[%s7276_s3 + $0x3] ss:$0 sm:$0xff] }
 0x6f6   :  { %v1158_v7 = vadd.f32 %v5169_v1, %v1157_v6  ;;  %v1163_v8 = vsel %vm127_vm2, %v1161_v5, 0.0  ;;  %v1172_v9 = vmul.f32 %v1161_v5, %v1161_v5 }
 0x6f7   :  { %1164 = vadd.xlane.f32.xlu0 %v1163_v8  ;;  %v5585_v10 = vpop.f32.mrf.mxu0 }
 0x6f8   :  { %v1162_v11 = vadd.f32 %v1158_v7, %v6308_v18  ;;  %v1174_v12 = vsel %vm127_vm2, %v1172_v9, 0.0  ;;  %v5181_v18 = vcombine.low %v1283_v16, %v1284_v25 }
 0x6fa   :  { %v1166_v13 = vsel %vm127_vm2, %v1162_v11, 0.0  ;;  %v1173_v14 = vmul.f32 %v1162_v11, %v1162_v11  ;;  %5595 = vmatpush3.bf16.msra.mxu0 %v5181_v18 }
 0x6fb   :  { %1175 = vadd.xlane.f32.xlu0 %v1174_v12  ;;  %1167 = vadd.xlane.f32.xlu1 %v1166_v13 }
 0x6fc   :  { %v1177_v15 = vsel %vm127_vm2, %v1173_v14, 0.0  ;;  %5596 = vmatprep.subr.bf16.mxu0 %v6242_v0 }
 0x6fe   :  { %5597 = vmatpush3.bf16.msra.mxu0 %v5180_v27 }
 0x6ff   :  { %1178 = vadd.xlane.f32.xlu0 %v1177_v15  ;;  %5608 = vmatprep.subr.bf16.mxu0 %v6242_v0 }
 0x70c   :  { %39 = vrot.lane.b32.xlu1 %v33_v17, %s6246_s28 }
 0x780   :  { %v1165_v30 = vpop.xlane.xlu0 %1164 }
 0x781   :  { %v1170_v31 = vmul.f32 0.03125, %v1165_v30 }
 0x783   :  { %v1182_v33 = vmul.f32 %v1170_v31, %v1170_v31  ;;  %v1186_v45 = vsub.f32 %v1161_v5, %v1170_v31 }
 0x784   :  { %v1176_v29 = vpop.xlane.xlu0 %1175  ;;  %v1168_v32 = vpop.xlane.xlu1 %1167 }
 0x785   :  { %v1180_v34 = vmul.f32 0.03125, %v1176_v29  ;;  %v1171_v35 = vmul.f32 0.03125, %v1168_v32 }
 0x787   :  { %v1184_v36 = vsub.f32 %v1180_v34, %v1182_v33  ;;  %v1183_v40 = vmul.f32 %v1171_v35, %v1171_v35  ;;  %v1187_v49 = vsub.f32 %v1162_v11, %v1171_v35 }
 0x788   :  { %v1179_v37 = vpop.xlane.xlu0 %1178  ;;  %v40_v38 = vpop.permute.xlu1 %39 }
 0x789   :  { %v1188_v39 = vadd.f32 1e-05, %v1184_v36  ;;  %v1181_v41 = vmul.f32 0.03125, %v1179_v37  ;;  %v6535_v42 = vpack.c.bf16 %v40_v38, %v33_v17 }
 0x78b   :  { %6097 = vrsqrt.f32 %v1188_v39  ;;  %v1185_v43 = vsub.f32 %v1181_v41, %v1183_v40  ;;  %5599 = vmatmul.mubr.msk.bf16.vlgmr.msra.gmra.mxu0 %vm127_vm2, %v6535_v42 }
 0x78c   :  { %5610 = vmatprep.mubr.msk.bf16.mxu0 %vm6243_vm0, %v6242_v0 }
 0x78d   :  { %v1189_v44 = vadd.f32 1e-05, %v1185_v43 }
 0x78f   :  { %6099 = vrsqrt.f32 %v1189_v44 }
 0x798   :  { %v6098_v46 = vpop.eup %6097 }
 0x799   :  { %v1192_v47 = vmul.f32 %v6098_v46, %v1186_v45 }
 0x79b   :  { %v1201_v52 = vmul.f32 %v5173_v48, %v1192_v47 }
 0x79c   :  { %v6100_v50 = vpop.eup %6099 }
 0x79d   :  { %v1193_v51 = vmul.f32 %v6100_v50, %v1187_v49  ;;  %v6547_v53 = vadd.f32 %v5174_v54, %v1201_v52 }
 0x79f   :  { %v1202_v55 = vmul.f32 %v5173_v48, %v1193_v51 }
 0x7a1   :  { %v6549_v56 = vadd.f32 %v5174_v54, %v1202_v55 }
 0x7a3   :  { %v1212_v57 = vpack.c.bf16 %v6549_v56, %v6547_v53 }
 0x7a5   :  { %5591 = vmatmul.mubr.msk.bf16.vlgmr.msra.gmra.mxu1 %vm127_vm2, %v1212_v57 }
 0x7a6   :  { %5604 = vmatprep.mubr.msk.bf16.mxu1 %vm6243_vm0, %v6242_v0 }
 0x84b   :  { %v1341_v59 = vpop.f32.mrf.mxu0 }
 0x84c   :  { %v1342_v60 = vadd.f32 %v5179_v58, %v1341_v59 }
 0x84d   :  { %v5600_v61 = vpop.f32.mrf.mxu0 }
 0x84e   :  { %v6559_v62 = vpack.c.bf16 %v1342_v60, %v1342_v60 }
 0x84f   :  { %v1344_v63 = vpop.f32.mrf.mxu0 }
 0x850   :  { %1461 = vrot.lane.b32.xlu0 %v6559_v62, %s6247_s29  ;;  %v1354_v1 = vsel %vm176_vm3, %v6559_v62, 0  ;;  %v1345_v11 = vadd.f32 %v5179_v58, %v1344_v63 }
 0x851   :  { %v5601_v2 = vpop.f32.mrf.mxu0  ;;  %5603 = vmatpush3.bf16.xpose.msra.mxu1 %v1354_v1 }
 0x852   :  { %5614 = vmatprep.subr.bf16.mxu1 %v6242_v0  ;;  %v6580_v13 = vpack.c.bf16 %v1345_v11, %v1345_v11 }
 0x854   :  { %v1813_v22 = vsel %vm176_vm3, %v6580_v13, 0 }
 0x865   :  { %v1273_v4 = vpop.f32.mrf.mxu1 }
 0x866   :  { %v1274_v5 = vadd.f32 %v5175_v3, %v1273_v4 }
 0x867   :  { %v5592_v6 = vpop.f32.mrf.mxu1 }
 0x868   :  { %v1348_v7 = vpack.c.bf16 %v1274_v5, %v1274_v5 }
 0x869   :  { %v1276_v8 = vpop.f32.mrf.mxu1 }
 0x86a   :  { %1459 = vrot.lane.b32.xlu1 %v1348_v7, %s6247_s29  ;;  %1570 = vrot.lane.b32.xlu0 %v1348_v7, %s6244_s2  ;;  %v1277_v10 = vadd.f32 %v5175_v3, %v1276_v8 }
 0x86b   :  { %5605 = vmatmul.mubr.msk.bf16.vlgmr.msra.gmra.mxu1 %vm176_vm3, %v1348_v7  ;;  %v5593_v9 = vpop.f32.mrf.mxu1 }
 0x86c   :  { %5616 = vmatprep.mubr.msk.bf16.mxu1 %vm6243_vm0, %v6242_v0  ;;  %v1807_v12 = vpack.c.bf16 %v1277_v10, %v1277_v10 }
 0x86e   :  { %1572 = vrot.lane.b32.xlu1 %v6559_v62, %s6244_s2  ;;  %1681 = vrot.lane.b32.xlu0 %v1348_v7, %s6250_s6 }
 0x872   :  { %1683 = vrot.lane.b32.xlu1 %v6559_v62, %s6250_s6  ;;  %1918 = vrot.lane.b32.xlu0 %v1807_v12, %s6247_s29 }
 0x876   :  { %2029 = vrot.lane.b32.xlu0 %v1807_v12, %s6244_s2  ;;  %1920 = vrot.lane.b32.xlu1 %v6580_v13, %s6247_s29 }
 0x87a   :  { %2140 = vrot.lane.b32.xlu0 %v1807_v12, %s6250_s6  ;;  %2031 = vrot.lane.b32.xlu1 %v6580_v13, %s6244_s2 }
 0x87e   :  { %2142 = vrot.lane.b32.xlu1 %v6580_v13, %s6250_s6 }
 0x8c2   :  { %v1462_v14 = vpop.permute.xlu0 %1461 }
 0x8c3   :  { %v1467_v15 = vsel %vm176_vm3, %v1462_v14, 0 }
 0x8c4   :  { %5615 = vmatpush3.bf16.xpose.msra.mxu1 %v1467_v15 }
 0x8c5   :  { %5626 = vmatprep.subr.bf16.mxu1 %v6242_v0 }
 0x8dc   :  { %v1460_v17 = vpop.permute.xlu1 %1459  ;;  %v1571_v18 = vpop.permute.xlu0 %1570 }
 0x8dd   :  { %5617 = vmatmul.mubr.msk.bf16.vlgmr.msra.gmra.mxu1 %vm176_vm3, %v1460_v17 }
 0x8de   :  { %5628 = vmatprep.mubr.msk.bf16.mxu1 %vm6243_vm0, %v6242_v0 }
 0x8e0   :  { %v1573_v16 = vpop.permute.xlu1 %1572  ;;  %v1682_v21 = vpop.permute.xlu0 %1681 }
 0x8e1   :  { %v1578_v25 = vsel %vm176_vm3, %v1573_v16, 0 }
 0x8e2   :  { %5627 = vmatpush3.bf16.xpose.msra.mxu1 %v1578_v25 }
 0x8e3   :  { %5638 = vmatprep.subr.bf16.mxu1 %v6242_v0 }
 0x8e4   :  { %v1684_v19 = vpop.permute.xlu1 %1683  ;;  %v1919_v27 = vpop.permute.xlu0 %1918 }
 0x8e5   :  { %v1689_v20 = vsel %vm176_vm3, %v1684_v19, 0 }
 0x8e8   :  { %v1921_v23 = vpop.permute.xlu1 %1920  ;;  %v2030_v31 = vpop.permute.xlu0 %2029 }
 0x8e9   :  { %5629 = vmatmul.mubr.msk.bf16.vlgmr.msra.gmra.mxu1 %vm176_vm3, %v1571_v18  ;;  %v1926_v24 = vsel %vm176_vm3, %v1921_v23, 0 }
 0x8ea   :  { %5639 = vmatpush3.bf16.xpose.msra.mxu1 %v1689_v20  ;;  %5640 = vmatprep.mubr.msk.bf16.mxu1 %vm6243_vm0, %v6242_v0 }
 0x8eb   :  { %5650 = vmatprep.subr.bf16.mxu1 %v6242_v0 }
 0x8ec   :  { %v2032_v26 = vpop.permute.xlu1 %2031  ;;  %v2141_v32 = vpop.permute.xlu0 %2140 }
 0x8ed   :  { %v2037_v28 = vsel %vm176_vm3, %v2032_v26, 0 }
 0x8f0   :  { %v2143_v30 = vpop.permute.xlu1 %2142 }
 0x8f1   :  { %5641 = vmatmul.mubr.msk.bf16.vlgmr.msra.gmra.mxu1 %vm176_vm3, %v1682_v21  ;;  %v2148_v29 = vsel %vm176_vm3, %v2143_v30, 0 }
 0x8f2   :  { %5651 = vmatpush3.bf16.xpose.msra.mxu1 %v1813_v22  ;;  %5652 = vmatprep.mubr.msk.bf16.mxu1 %vm6243_vm0, %v6242_v0 }
 0x8f3   :  { %5662 = vmatprep.subr.bf16.mxu1 %v6242_v0 }
 0x8f9   :  { %5653 = vmatmul.mubr.msk.bf16.vlgmr.msra.gmra.mxu1 %vm176_vm3, %v1807_v12 }
 0x8fa   :  { %5663 = vmatpush3.bf16.xpose.msra.mxu1 %v1926_v24  ;;  %5664 = vmatprep.mubr.msk.bf16.mxu1 %vm6243_vm0, %v6242_v0 }
 0x8fb   :  { %5674 = vmatprep.subr.bf16.mxu1 %v6242_v0 }
 0x901   :  { %5665 = vmatmul.mubr.msk.bf16.vlgmr.msra.gmra.mxu1 %vm176_vm3, %v1919_v27 }
 0x902   :  { %5675 = vmatpush3.bf16.xpose.msra.mxu1 %v2037_v28  ;;  %5676 = vmatprep.mubr.msk.bf16.mxu1 %vm6243_vm0, %v6242_v0 }
 0x903   :  { %5686 = vmatprep.subr.bf16.mxu1 %v6242_v0 }
 0x909   :  { %5677 = vmatmul.mubr.msk.bf16.vlgmr.msra.gmra.mxu1 %vm176_vm3, %v2030_v31 }
 0x90a   :  { %5687 = vmatpush3.bf16.xpose.msra.mxu1 %v2148_v29  ;;  %5688 = vmatprep.mubr.msk.bf16.mxu1 %vm6243_vm0, %v6242_v0 }
 0x90b   :  { %5698 = vmatprep.subr.bf16.mxu1 %v6242_v0 }
 0x911   :  { %5689 = vmatmul.mubr.msk.bf16.vlgmr.msra.gmra.mxu1 %vm176_vm3, %v2141_v32 }
 0x912   :  { %5702 = vmatprep.mubr.msk.bf16.mxu1 %vm6243_vm0, %v6242_v0 }
 0x92b   :  { %v1390_v33 = vpop.f32.mrf.mxu1 }
 0x92c   :  { %v1396_v34 = vmul.f32 0.35355338, %v1390_v33 }
 0x92d   :  { %v5606_v35 = vpop.f32.mrf.mxu1 }
 0x92e   :  { %v1397_v36 = vsel %vm176_vm3, %v1396_v34, -inf }
 0x92f   :  { %v1393_v37 = vpop.f32.mrf.mxu1  ;;  %1398 = vmax.xlane.f32.xlu1 %v1397_v36 }
 0x931   :  { %v5607_v38 = vpop.f32.mrf.mxu1 }
 0x99d   :  { %v1503_v39 = vpop.f32.mrf.mxu1 }
 0x99e   :  { %v1509_v40 = vmul.f32 0.35355338, %v1503_v39 }
 0x99f   :  { %v5618_v41 = vpop.f32.mrf.mxu1 }
 0x9a0   :  { %v1510_v43 = vsel %vm176_vm3, %v1509_v40, -inf }
 0x9a1   :  { %1511 = vmax.xlane.f32.xlu0 %v1510_v43  ;;  %v1506_v44 = vpop.f32.mrf.mxu1 }
 0x9a3   :  { %v5619_v45 = vpop.f32.mrf.mxu1 }
 0x9a9   :  { %v1614_v46 = vpop.f32.mrf.mxu1 }
 0x9aa   :  { %v1620_v47 = vmul.f32 0.35355338, %v1614_v46 }
 0x9ab   :  { %v5630_v48 = vpop.f32.mrf.mxu1 }
 0x9ac   :  { %v1621_v49 = vsel %vm176_vm3, %v1620_v47, -inf }
 0x9ad   :  { %1622 = vmax.xlane.f32.xlu0 %v1621_v49  ;;  %v1617_v50 = vpop.f32.mrf.mxu1 }
 0x9af   :  { %v5631_v51 = vpop.f32.mrf.mxu1 }
 0x9b1   :  { %v1725_v52 = vpop.f32.mrf.mxu1 }
 0x9b2   :  { %v1731_v54 = vmul.f32 0.35355338, %v1725_v52 }
 0x9b3   :  { %v5642_v55 = vpop.f32.mrf.mxu1 }
 0x9b4   :  { %v1732_v57 = vsel %vm176_vm3, %v1731_v54, -inf }
 0x9b5   :  { %v1728_v58 = vpop.f32.mrf.mxu1  ;;  %1733 = vmax.xlane.f32.xlu1 %v1732_v57 }
 0x9b7   :  { %v5643_v59 = vpop.f32.mrf.mxu1 }
 0x9b8   :  { %v1399_v20 = vpop.xlane.xlu1 %1398 }
 0x9b9   :  { %v1849_v60 = vpop.f32.mrf.mxu1  ;;  %v1400_v21 = vsub.f32 %v1396_v34, %v1399_v20 }
 0x9ba   :  { %v1855_v61 = vmul.f32 0.35355338, %v1849_v60 }
 0x9bb   :  { %v5654_v63 = vpop.f32.mrf.mxu1  ;;  %v1401_v22 = vmul.f32 1.442695, %v1400_v21 }
 0x9bc   :  { %v1856_v1 = vsel %vm176_vm3, %v1855_v61, -inf }
 0x9bd   :  { %1857 = vmax.xlane.f32.xlu0 %v1856_v1  ;;  %v1852_v2 = vpop.f32.mrf.mxu1  ;;  %6101 = vpow2.f32 %v1401_v22 }
 0x9bf   :  { %v5655_v3 = vpop.f32.mrf.mxu1 }
 0x9c1   :  { %v1962_v4 = vpop.f32.mrf.mxu1 }
 0x9c2   :  { %v6631_v5 = vmul.f32 0.35355338, %v1962_v4 }
 0x9c3   :  { %v5666_v6 = vpop.f32.mrf.mxu1 }
 0x9c4   :  { %v1969_v7 = vsel %vm176_vm3, %v6631_v5, -inf }
 0x9c5   :  { %1970 = vmax.xlane.f32.xlu1 %v1969_v7  ;;  %v1965_v8 = vpop.f32.mrf.mxu1 }
 0x9c7   :  { %v5667_v9 = vpop.f32.mrf.mxu1 }
 0x9c9   :  { %v2073_v10 = vpop.f32.mrf.mxu1 }
 0x9ca   :  { %v2079_v11 = vmul.f32 0.35355338, %v2073_v10  ;;  %v6641_v26 = vpop.eup %6101 }
 0x9cb   :  { %v5678_v12 = vpop.f32.mrf.mxu1  ;;  %v1403_v27 = vsel %vm176_vm3, %v6641_v26, 0.0 }
 0x9cc   :  { %v2080_v14 = vsel %vm176_vm3, %v2079_v11, -inf }
 0x9cd   :  { %2081 = vmax.xlane.f32.xlu0 %v2080_v14  ;;  %v2076_v15 = vpop.f32.mrf.mxu1 }
 0x9cf   :  { %v5679_v17 = vpop.f32.mrf.mxu1 }
 0x9d1   :  { %v2184_v16 = vpop.f32.mrf.mxu1 }
 0x9d2   :  { %v2190_v23 = vmul.f32 0.35355338, %v2184_v16 }
 0x9d3   :  { %v5690_v25 = vpop.f32.mrf.mxu1 }
 0x9d4   :  { %v2191_v24 = vsel %vm176_vm3, %v2190_v23, -inf }
 0x9d5   :  { %v2187_v19 = vpop.f32.mrf.mxu1 }
 0x9d6   :  { %1522 = vrot.lane.b32.xlu1 %v6559_v62, %s6245_s27 }
 0x9d7   :  { %v5691_v18 = vpop.f32.mrf.mxu1 }
 0x9e3   :  { %1410 = vrot.lane.b32.xlu0 %v6559_v62, %s6246_s28 }
 0x9fa   :  { %2192 = vmax.xlane.f32.xlu1 %v2191_v24 }
 0xa02   :  { %1404 = vadd.xlane.f32.xlu0 %v1403_v27 }
 0xa0b   :  { %1633 = vrot.lane.b32.xlu1 %v6559_v62, %s6248_s30 }
 0xa2a   :  { %v1512_v28 = vpop.xlane.xlu0 %1511 }
 0xa2b   :  { %v1513_v30 = vsub.f32 %v1509_v40, %v1512_v28 }
 0xa2d   :  { %v1514_v31 = vmul.f32 1.442695, %v1513_v30 }
 0xa2f   :  { %6103 = vpow2.f32 %v1514_v31 }
 0xa36   :  { %v1623_v29 = vpop.xlane.xlu0 %1622 }
 0xa37   :  { %v1624_v32 = vsub.f32 %v1620_v47, %v1623_v29 }
 0xa39   :  { %v1625_v33 = vmul.f32 1.442695, %v1624_v32 }
 0xa3b   :  { %6105 = vpow2.f32 %v1625_v33 }
 0xa3c   :  { %v6647_v34 = vpop.eup %6103 }
 0xa3d   :  { %v1516_v35 = vsel %vm176_vm3, %v6647_v34, 0.0 }
 0xa3e   :  { %v1734_v36 = vpop.xlane.xlu1 %1733  ;;  %1517 = vadd.xlane.f32.xlu1 %v1516_v35 }
 0xa3f   :  { %v1735_v37 = vsub.f32 %v1731_v54, %v1734_v36 }
 0xa41   :  { %v1736_v38 = vmul.f32 1.442695, %v1735_v37 }
 0xa43   :  { %6107 = vpow2.f32 %v1736_v38 }
 0xa46   :  { %v1858_v39 = vpop.xlane.xlu0 %1857 }
 0xa47   :  { %v1859_v41 = vsub.f32 %v1855_v61, %v1858_v39 }
 0xa48   :  { %v6651_v43 = vpop.eup %6105 }
 0xa49   :  { %v1860_v40 = vmul.f32 1.442695, %v1859_v41  ;;  %v1627_v44 = vsel %vm176_vm3, %v6651_v43, 0.0 }
 0xa4a   :  { %1628 = vadd.xlane.f32.xlu0 %v1627_v44 }
 0xa4b   :  { %6109 = vpow2.f32 %v1860_v40 }
 0xa4e   :  { %v1971_v55 = vpop.xlane.xlu1 %1970 }
 0xa4f   :  { %v1972_v57 = vsub.f32 %v6631_v5, %v1971_v55 }
 0xa50   :  { %v6655_v45 = vpop.eup %6107 }
 0xa51   :  { %v1738_v46 = vsel %vm176_vm3, %v6655_v45, 0.0  ;;  %v1973_v60 = vmul.f32 1.442695, %v1972_v57 }
 0xa52   :  { %1739 = vadd.xlane.f32.xlu1 %v1738_v46  ;;  %v1523_v1 = vpop.permute.xlu1 %1522 }
 0xa53   :  { %v1528_v10 = vsel %vm241_vm4, %v1523_v1, 0 }
 0xa56   :  { %v2082_v47 = vpop.xlane.xlu0 %2081 }
 0xa57   :  { %v2083_v48 = vsub.f32 %v2079_v11, %v2082_v47 }
 0xa58   :  { %v6659_v49 = vpop.eup %6109 }
 0xa59   :  { %v2084_v50 = vmul.f32 1.442695, %v2083_v48  ;;  %v1862_v51 = vsel %vm176_vm3, %v6659_v49, 0.0 }
 0xa5a   :  { %v1411_v52 = vpop.permute.xlu0 %1410  ;;  %1863 = vadd.xlane.f32.xlu1 %v1862_v51 }
 0xa5b   :  { %6111 = vpow2.f32 %v2084_v50  ;;  %v1416_v54 = vsel %vm241_vm4, %v1411_v52, 0 }
 0xa5c   :  { %5609 = vmatpush3.bf16.msra.mxu0 %v1416_v54  ;;  %6113 = vpow2.f32 %v1973_v60 }
 0xa5d   :  { %5620 = vmatprep.subr.bf16.mxu0 %v6242_v0 }
 0xa60   :  { %1744 = vrot.lane.b32.xlu0 %v6559_v62, %s6249_s5 }
 0xa68   :  { %v6668_v58 = vpop.eup %6111 }
 0xa69   :  { %v2086_v59 = vsel %vm176_vm3, %v6668_v58, 0.0  ;;  %v6672_v61 = vpop.eup %6113 }
 0xa6a   :  { %2087 = vadd.xlane.f32.xlu1 %v2086_v59  ;;  %v1975_v63 = vsel %vm176_vm3, %v6672_v61, 0.0 }
 0xa7f   :  { %1976 = vadd.xlane.f32.xlu0 %v1975_v63 }
 0xa83   :  { %v2193_v2 = vpop.xlane.xlu1 %2192 }
 0xa84   :  { %v2194_v62 = vsub.f32 %v2190_v23, %v2193_v2 }
 0xa86   :  { %v2195_v3 = vmul.f32 1.442695, %v2194_v62 }
 0xa87   :  { %v1634_v11 = vpop.permute.xlu1 %1633 }
 0xa88   :  { %6115 = vpow2.f32 %v2195_v3  ;;  %v1639_v25 = vsel %vm241_vm4, %v1634_v11, 0 }
 0xa8b   :  { %v1405_v4 = vpop.xlane.xlu0 %1404 }
 0xa8c   :  { %6117 = vrcp.f32 %v1405_v4 }
 0xa95   :  { %v6676_v5 = vpop.eup %6115  ;;  %1981 = vrot.lane.b32.xlu0 %v6580_v13, %s6245_s27 }
 0xa96   :  { %v2197_v6 = vsel %vm176_vm3, %v6676_v5, 0.0 }
 0xa97   :  { %2198 = vadd.xlane.f32.xlu1 %v2197_v6 }
 0xa99   :  { %v6118_v7 = vpop.eup %6117  ;;  %2092 = vrot.lane.b32.xlu0 %v6580_v13, %s6248_s30 }
 0xa9a   :  { %v1407_v8 = vmul.f32 %v6118_v7, %v6641_v26 }
 0xa9c   :  { %v1408_v9 = vpack.c.bf16 %v1407_v8, %v1407_v8 }
 0xa9d   :  { %2203 = vrot.lane.b32.xlu0 %v6580_v13, %s6249_s5 }
 0xa9e   :  { %5611 = vmatmul.mubr.msk.bf16.vlgmr.msra.gmra.mxu0 %vm176_vm3, %v1408_v9 }
 0xa9f   :  { %5621 = vmatpush3.bf16.msra.mxu0 %v1528_v10  ;;  %5622 = vmatprep.mubr.msk.bf16.mxu0 %vm6243_vm0, %v6242_v0 }
 0xaa0   :  { %5632 = vmatprep.subr.bf16.mxu0 %v6242_v0 }
 0xaa8   :  { %1869 = vrot.lane.b32.xlu1 %v6580_v13, %s6246_s28 }
 0xac7   :  { %v1518_v12 = vpop.xlane.xlu1 %1517 }
 0xac8   :  { %6119 = vrcp.f32 %v1518_v12  ;;  %v2269_v12 = vld [vmem:[#allocation2 + $0x94] sm:$0xf] }
 0xad3   :  { %v1629_v14 = vpop.xlane.xlu0 %1628 }
 0xad4   :  { %6121 = vrcp.f32 %v1629_v14  ;;  %v2270_v14 = vld [vmem:[#allocation2 + $0xd4] sm:$0xf] }
 0xad5   :  { %v6120_v15 = vpop.eup %6119 }
 0xad6   :  { %v1520_v17 = vmul.f32 %v6120_v15, %v6647_v34 }
 0xad7   :  { %v1745_v20 = vpop.permute.xlu0 %1744 }
 0xad8   :  { %v1521_v16 = vpack.c.bf16 %v1520_v17, %v1520_v17  ;;  %v1750_v22 = vsel %vm241_vm4, %v1745_v20, 0  ;;  %v5201_v17 = vcombine.low %v2269_v12, %v2270_v14 }
 0xada   :  { %5623 = vmatmul.mubr.msk.bf16.vlgmr.msra.gmra.mxu0 %vm176_vm3, %v1521_v16  ;;  %5699 = vmatpush3.bf16.msra.mxu1 %v5201_v17 }
 0xadb   :  { %5633 = vmatpush3.bf16.msra.mxu0 %v1639_v25  ;;  %v1740_v19 = vpop.xlane.xlu1 %1739  ;;  %5634 = vmatprep.mubr.msk.bf16.mxu0 %vm6243_vm0, %v6242_v0 }
 0xadc   :  { %6123 = vrcp.f32 %v1740_v19  ;;  %5644 = vmatprep.subr.bf16.mxu0 %v6242_v0  ;;  %5700 = vmatprep.subr.bf16.mxu1 %v6242_v0 }
 0xae1   :  { %v6122_v13 = vpop.eup %6121 }
 0xae2   :  { %v1631_v18 = vmul.f32 %v6122_v13, %v6651_v43  ;;  %v2267_v13 = vld [vmem:[#allocation2 + $0x14] sm:$0xf] }
 0xae3   :  { %v1864_v27 = vpop.xlane.xlu1 %1863 }
 0xae4   :  { %v1632_v21 = vpack.c.bf16 %v1631_v18, %v1631_v18  ;;  %6125 = vrcp.f32 %v1864_v27  ;;  %v2268_v18 = vld [vmem:[#allocation2 + $0x54] sm:$0xf] }
 0xae5   :  { %v5200_v20 = vcombine.low %v2267_v13, %v2268_v18 }
 0xae6   :  { %5635 = vmatmul.mubr.msk.bf16.vlgmr.msra.gmra.mxu0 %vm176_vm3, %v1632_v21 }
 0xae7   :  { %5645 = vmatpush3.bf16.msra.mxu0 %v1750_v22  ;;  %5646 = vmatprep.mubr.msk.bf16.mxu0 %vm6243_vm0, %v6242_v0 }
 0xae8   :  { %5656 = vmatprep.subr.bf16.mxu0 %v6242_v0  ;;  %5701 = vmatpush3.bf16.msra.mxu1 %v5200_v20 }
 0xae9   :  { %v6124_v23 = vpop.eup %6123  ;;  %5714 = vmatprep.subr.bf16.mxu1 %v6242_v0 }
 0xaea   :  { %v1742_v24 = vmul.f32 %v6124_v23, %v6655_v45 }
 0xaec   :  { %v1743_v26 = vpack.c.bf16 %v1742_v24, %v1742_v24 }
 0xaee   :  { %5647 = vmatmul.mubr.msk.bf16.vlgmr.msra.gmra.mxu0 %vm176_vm3, %v1743_v26 }
 0xaef   :  { %5658 = vmatprep.mubr.msk.bf16.mxu0 %vm6243_vm0, %v6242_v0 }
 0xaf1   :  { %v6126_v31 = vpop.eup %6125 }
 0xaf2   :  { %v1866_v32 = vmul.f32 %v6126_v31, %v6659_v49 }
 0xaf3   :  { %v2088_v30 = vpop.xlane.xlu1 %2087 }
 0xaf4   :  { %v1867_v36 = vpack.c.bf16 %v1866_v32, %v1866_v32 }
 0xb08   :  { %v1977_v28 = vpop.xlane.xlu0 %1976 }
 0xb09   :  { %6127 = vrcp.f32 %v1977_v28 }
 0xb0a   :  { %6129 = vrcp.f32 %v2088_v30 }
 0xb0c   :  { %v1982_v35 = vpop.permute.xlu0 %1981 }
 0xb0d   :  { %v1987_v38 = vsel %vm241_vm4, %v1982_v35, 0 }
 0xb10   :  { %v2093_v41 = vpop.permute.xlu0 %2092 }
 0xb11   :  { %v2098_v44 = vsel %vm241_vm4, %v2093_v41, 0 }
 0xb14   :  { %v2204_v46 = vpop.permute.xlu0 %2203 }
 0xb15   :  { %v2209_v49 = vsel %vm241_vm4, %v2204_v46, 0 }
 0xb16   :  { %v6128_v37 = vpop.eup %6127 }
 0xb17   :  { %v1979_v39 = vmul.f32 %v6128_v37, %v6672_v61  ;;  %v6130_v40 = vpop.eup %6129 }
 0xb18   :  { %v2090_v45 = vmul.f32 %v6130_v40, %v6668_v58 }
 0xb19   :  { %v1980_v43 = vpack.c.bf16 %v1979_v39, %v1979_v39 }
 0xb1a   :  { %v2091_v47 = vpack.c.bf16 %v2090_v45, %v2090_v45 }
 0xb20   :  { %v2199_v29 = vpop.xlane.xlu1 %2198 }
 0xb21   :  { %6131 = vrcp.f32 %v2199_v29 }
 0xb24   :  { %v1870_v33 = vpop.permute.xlu1 %1869 }
 0xb25   :  { %v1875_v34 = vsel %vm241_vm4, %v1870_v33, 0 }
 0xb26   :  { %5657 = vmatpush3.bf16.msra.mxu0 %v1875_v34 }
 0xb27   :  { %5668 = vmatprep.subr.bf16.mxu0 %v6242_v0 }
 0xb29   :  { %5659 = vmatmul.mubr.msk.bf16.vlgmr.msra.gmra.mxu0 %vm176_vm3, %v1867_v36 }
 0xb2a   :  { %5669 = vmatpush3.bf16.msra.mxu0 %v1987_v38  ;;  %5670 = vmatprep.mubr.msk.bf16.mxu0 %vm6243_vm0, %v6242_v0 }
 0xb2b   :  { %5680 = vmatprep.subr.bf16.mxu0 %v6242_v0 }
 0xb2e   :  { %v6132_v48 = vpop.eup %6131 }
 0xb2f   :  { %v2201_v50 = vmul.f32 %v6132_v48, %v6676_v5 }
 0xb31   :  { %5671 = vmatmul.mubr.msk.bf16.vlgmr.msra.gmra.mxu0 %vm176_vm3, %v1980_v43  ;;  %v2202_v51 = vpack.c.bf16 %v2201_v50, %v2201_v50 }
 0xb32   :  { %5681 = vmatpush3.bf16.msra.mxu0 %v2098_v44  ;;  %5682 = vmatprep.mubr.msk.bf16.mxu0 %vm6243_vm0, %v6242_v0 }
 0xb33   :  { %5692 = vmatprep.subr.bf16.mxu0 %v6242_v0 }
 0xb39   :  { %5683 = vmatmul.mubr.msk.bf16.vlgmr.msra.gmra.mxu0 %vm176_vm3, %v2091_v47 }
 0xb3a   :  { %5693 = vmatpush3.bf16.msra.mxu0 %v2209_v49  ;;  %5694 = vmatprep.mubr.msk.bf16.mxu0 %vm6243_vm0, %v6242_v0  ;;  %v5199_v49 = vld [vmem:[%s7276_s3 + $0x5] ss:$0 sm:$0xff] }
 0xb3b   :  { %5706 = vmatprep.subr.bf16.mxu0 %v6242_v0 }
 0xb41   :  { %5695 = vmatmul.mubr.msk.bf16.vlgmr.msra.gmra.mxu0 %vm176_vm3, %v2202_v51 }
 0xb42   :  { %5710 = vmatprep.mubr.msk.bf16.mxu0 %vm6243_vm0, %v6242_v0 }
 0xb5e   :  { %v1452_v52 = vpop.f32.mrf.mxu0 }
 0xb60   :  { %v5612_v54 = vpop.f32.mrf.mxu0 }
 0xb62   :  { %v1455_v55 = vpop.f32.mrf.mxu0 }
 0xb64   :  { %v5613_v57 = vpop.f32.mrf.mxu0 }
 0xb9a   :  { %v1564_v58 = vpop.f32.mrf.mxu0 }
 0xb9c   :  { %v5624_v59 = vpop.f32.mrf.mxu0 }
 0xb9e   :  { %v1567_v60 = vpop.f32.mrf.mxu0 }
 0xba0   :  { %v5625_v61 = vpop.f32.mrf.mxu0 }
 0xba6   :  { %v1675_v63 = vpop.f32.mrf.mxu0 }
 0xba8   :  { %v5636_v1 = vpop.f32.mrf.mxu0 }
 0xbaa   :  { %v1678_v2 = vpop.f32.mrf.mxu0 }
 0xbac   :  { %v5637_v62 = vpop.f32.mrf.mxu0 }
 0xbae   :  { %v1786_v3 = vpop.f32.mrf.mxu0 }
 0xbb0   :  { %v5648_v4 = vpop.f32.mrf.mxu0 }
 0xbb2   :  { %v1789_v5 = vpop.f32.mrf.mxu0 }
 0xbb3   :  { %v2385_v5 = vld [vmem:[#allocation2 + $0x18] sm:$0xf] }
 0xbb4   :  { %v5649_v6 = vpop.f32.mrf.mxu0 }
 0xbb5   :  { %v2386_v6 = vld [vmem:[#allocation2 + $0x58] sm:$0xf] }
 0xbe9   :  { %v1911_v7 = vpop.f32.mrf.mxu0 }
 0xbeb   :  { %v5660_v8 = vpop.f32.mrf.mxu0 }
 0xbec   :  { %v2462_v8 = vld [vmem:[#allocation2 + $0x1dc] sm:$0xf] }
 0xbed   :  { %v1914_v9 = vpop.f32.mrf.mxu0 }
 0xbef   :  { %v5661_v10 = vpop.f32.mrf.mxu0 }
 0xbf1   :  { %v2023_v11 = vpop.f32.mrf.mxu0 }
 0xbf2   :  { %v6020_v15 = vpack.i.bf16 %v2023_v11, %v1564_v58 }
 0xbf3   :  { %v5672_v16 = vpop.f32.mrf.mxu0 }
 0xbf4   :  { %6021 = vrot.lane.b32.xlu1 %v6020_v15, %s6254_s10 }
 0xbf5   :  { %v2026_v25 = vpop.f32.mrf.mxu0 }
 0xbf7   :  { %v5673_v19 = vpop.f32.mrf.mxu0 }
 0xbf9   :  { %v2134_v21 = vpop.f32.mrf.mxu0 }
 0xbfa   :  { %v6025_v22 = vpack.i.bf16 %v2134_v21, %v1675_v63 }
 0xbfb   :  { %v5684_v23 = vpop.f32.mrf.mxu0 }
 0xbfc   :  { %6026 = vrot.lane.b32.xlu0 %v6025_v22, %s6255_s11 }
 0xbfd   :  { %v2137_v24 = vpop.f32.mrf.mxu0 }
 0xbff   :  { %v5685_v26 = vpop.f32.mrf.mxu0 }
 0xc01   :  { %v2245_v27 = vpop.f32.mrf.mxu0 }
 0xc02   :  { %v6030_v28 = vpack.i.bf16 %v2245_v27, %v1786_v3  ;;  %v2388_v3 = vld [vmem:[#allocation2 + $0xd8] sm:$0xf]  ;;  %v5203_v27 = vld [vmem:[%s7276_s3 + $0xa] ss:$0 sm:$0xff] }
 0xc03   :  { %v5696_v30 = vpop.f32.mrf.mxu0 }
 0xc04   :  { %6031 = vrot.lane.b32.xlu1 %v6030_v28, %s6256_s12 }
 0xc05   :  { %v2248_v31 = vpop.f32.mrf.mxu0 }
 0xc07   :  { %v5697_v29 = vpop.f32.mrf.mxu0 }
 0xc66   :  { %v6022_v32 = vpop.permute.xlu1 %6021 }
 0xc67   :  { %v6024_v34 = vunpack.i.h.bf16 %v6022_v32  ;;  %v6023_v35 = vunpack.i.l.bf16 %v6022_v32  ;;  %v5204_v32 = vld [vmem:[%s7276_s3 + $0xb] ss:$0 sm:$0xff] }
 0xc69   :  { %v2263_v39 = vsel %vm176_vm3, %v1911_v7, %v6024_v34  ;;  %v1804_v41 = vsel %vm176_vm3, %v1452_v52, %v6023_v35  ;;  %v5206_v7 = vcombine.low %v2385_v5, %v2386_v6 }
 0xc6e   :  { %v6027_v33 = vpop.permute.xlu0 %6026 }
 0xc6f   :  { %v6029_v36 = vunpack.i.h.bf16 %v6027_v33  ;;  %v6028_v37 = vunpack.i.l.bf16 %v6027_v33 }
 0xc71   :  { %v2264_v44 = vsel %vm58_vm1, %v2263_v39, %v6029_v36  ;;  %v1805_v45 = vsel %vm58_vm1, %v1804_v41, %v6028_v37  ;;  %v2459_v37 = vld [vmem:[#allocation2 + $0x11c] sm:$0xf] }
 0xc72   :  { %v2457_v41 = vld [vmem:[#allocation2 + $0x9c] sm:$0xf] }
 0xc76   :  { %v6032_v38 = vpop.permute.xlu1 %6031 }
 0xc77   :  { %v6034_v43 = vunpack.i.h.bf16 %v6032_v38  ;;  %v6033_v40 = vunpack.i.l.bf16 %v6032_v38  ;;  %v2460_v38 = vld [vmem:[#allocation2 + $0x15c] sm:$0xf] }
 0xc78   :  { %v5212_v39 = vcombine.low %v2459_v37, %v2460_v38  ;;  %v5216_v37 = vld [vmem:[%s7276_s3 + $0xd] ss:$0 sm:$0xff] }
 0xc79   :  { %v2265_v46 = vsel %vm632_vm5, %v2264_v44, %v6034_v43  ;;  %v1806_v47 = vsel %vm632_vm5, %v1805_v45, %v6033_v40  ;;  %v2458_v43 = vld [vmem:[#allocation2 + $0xdc] sm:$0xf] }
 0xc7a   :  { %v2266_v48 = vpack.c.bf16 %v2265_v46, %v1806_v47  ;;  %v5211_v40 = vcombine.low %v2457_v41, %v2458_v43  ;;  %v2455_v44 = vld [vmem:[#allocation2 + $0x1c] sm:$0xf]  ;;  %v5205_v47 = vld [vmem:[%s7276_s3 + $0x6] ss:$0 sm:$0xff] }
 0xc7b   :  { %v2456_v45 = vld [vmem:[#allocation2 + $0x5c] sm:$0xf] }
 0xc7c   :  { %5703 = vmatmul.mubr.msk.bf16.vlgmr.msra.gmra.mxu1 %vm127_vm2, %v2266_v48  ;;  %v5210_v46 = vcombine.low %v2455_v44, %v2456_v45 }
 0xc7d   :  { %5722 = vmatprep.mubr.msk.bf16.mxu1 %vm6243_vm0, %v6242_v0 }
 0xd3c   :  { %v2327_v50 = vpop.f32.mrf.mxu1 }
 0xd3d   :  { %v2328_v51 = vadd.f32 %v5199_v49, %v2327_v50 }
 0xd3e   :  { %v5704_v52 = vpop.f32.mrf.mxu1 }
 0xd3f   :  { %v2334_v54 = vadd.f32 %v2328_v51, %v6547_v53  ;;  %v2387_v53 = vld [vmem:[#allocation2 + $0x98] sm:$0xf] }
 0xd40   :  { %v2330_v55 = vpop.f32.mrf.mxu1  ;;  %v5207_v4 = vcombine.low %v2387_v53, %v2388_v3 }
 0xd41   :  { %v2331_v57 = vadd.f32 %v5199_v49, %v2330_v55  ;;  %v2336_v58 = vsel %vm127_vm2, %v2334_v54, 0.0  ;;  %v2344_v59 = vmul.f32 %v2334_v54, %v2334_v54 }
 0xd42   :  { %2337 = vadd.xlane.f32.xlu0 %v2336_v58  ;;  %v5705_v60 = vpop.f32.mrf.mxu1  ;;  %5707 = vmatpush3.bf16.msra.mxu0 %v5207_v4 }
 0xd43   :  { %v2335_v61 = vadd.f32 %v2331_v57, %v6549_v56  ;;  %v2346_v63 = vsel %vm127_vm2, %v2344_v59, 0.0  ;;  %5708 = vmatprep.subr.bf16.mxu0 %v6242_v0  ;;  %v2461_v56 = vld [vmem:[#allocation2 + $0x19c] sm:$0xf]  ;;  %v5209_v59 = vld [vmem:[%s7276_s3 + $0x7] ss:$0 sm:$0xff] }
 0xd44   :  { %v5213_v9 = vcombine.low %v2461_v56, %v2462_v8 }
 0xd45   :  { %v2339_v1 = vsel %vm127_vm2, %v2335_v61, 0.0  ;;  %v2345_v2 = vmul.f32 %v2335_v61, %v2335_v61 }
 0xd46   :  { %2347 = vadd.xlane.f32.xlu0 %v2346_v63  ;;  %2340 = vadd.xlane.f32.xlu1 %v2339_v1 }
 0xd47   :  { %v2349_v62 = vsel %vm127_vm2, %v2345_v2, 0.0  ;;  %5709 = vmatpush3.bf16.msra.mxu0 %v5206_v7  ;;  %5715 = vmatpush3.bf16.msra.mxu1 %v5213_v9  ;;  %v2592_v9 = vld [vmem:[#allocation2 + $0xa0] sm:$0xf] }
 0xd48   :  { %5726 = vmatprep.subr.bf16.mxu0 %v6242_v0  ;;  %5716 = vmatprep.subr.bf16.mxu1 %v6242_v0 }
 0xd4a   :  { %2350 = vadd.xlane.f32.xlu0 %v2349_v62 }
 0xd4b   :  { %5717 = vmatpush3.bf16.msra.mxu1 %v5212_v39 }
 0xd4c   :  { %5718 = vmatprep.subr.bf16.mxu1 %v6242_v0 }
 0xd4f   :  { %5719 = vmatpush3.bf16.msra.mxu1 %v5211_v40  ;;  %v5217_v40 = vld [vmem:[%s7276_s3 + $0xe] ss:$0 sm:$0xff] }
 0xd50   :  { %5720 = vmatprep.subr.bf16.mxu1 %v6242_v0 }
 0xd53   :  { %5721 = vmatpush3.bf16.msra.mxu1 %v5210_v46 }
 0xd54   :  { %5740 = vmatprep.subr.bf16.mxu1 %v6242_v0 }
 0xdcb   :  { %v2338_v10 = vpop.xlane.xlu0 %2337 }
 0xdcc   :  { %v2342_v11 = vmul.f32 0.03125, %v2338_v10  ;;  %v2593_v10 = vld [vmem:[#allocation2 + $0xe0] sm:$0xf] }
 0xdce   :  { %v2354_v15 = vmul.f32 %v2342_v11, %v2342_v11  ;;  %v2358_v23 = vsub.f32 %v2334_v54, %v2342_v11  ;;  %v5219_v11 = vcombine.low %v2592_v9, %v2593_v10 }
 0xdcf   :  { %v2348_v12 = vpop.xlane.xlu0 %2347  ;;  %v2341_v14 = vpop.xlane.xlu1 %2340 }
 0xdd0   :  { %v2352_v17 = vmul.f32 0.03125, %v2348_v12  ;;  %v2343_v16 = vmul.f32 0.03125, %v2341_v14  ;;  %v2590_v12 = vld [vmem:[#allocation2 + $0x20] sm:$0xf] }
 0xdd1   :  { %v2591_v14 = vld [vmem:[#allocation2 + $0x60] sm:$0xf] }
 0xdd2   :  { %v2356_v25 = vsub.f32 %v2352_v17, %v2354_v15  ;;  %v2355_v18 = vmul.f32 %v2343_v16, %v2343_v16  ;;  %v2359_v28 = vsub.f32 %v2335_v61, %v2343_v16  ;;  %v5218_v15 = vcombine.low %v2590_v12, %v2591_v14 }
 0xdd3   :  { %v2351_v19 = vpop.xlane.xlu0 %2350 }
 0xdd4   :  { %v2360_v13 = vadd.f32 1e-05, %v2356_v25  ;;  %v2353_v20 = vmul.f32 0.03125, %v2351_v19 }
 0xdd6   :  { %6133 = vrsqrt.f32 %v2360_v13  ;;  %v2357_v21 = vsub.f32 %v2353_v20, %v2355_v18 }
 0xdd8   :  { %v2361_v22 = vadd.f32 1e-05, %v2357_v21 }
 0xdda   :  { %6135 = vrsqrt.f32 %v2361_v22 }
 0xde3   :  { %v6134_v24 = vpop.eup %6133 }
 0xde4   :  { %v2364_v26 = vmul.f32 %v6134_v24, %v2358_v23 }
 0xde6   :  { %v2373_v29 = vmul.f32 %v5203_v27, %v2364_v26 }
 0xde7   :  { %v6136_v30 = vpop.eup %6135 }
 0xde8   :  { %v2365_v31 = vmul.f32 %v6136_v30, %v2359_v28  ;;  %v2382_v34 = vadd.f32 %v5204_v32, %v2373_v29 }
 0xdea   :  { %v2374_v33 = vmul.f32 %v5203_v27, %v2365_v31 }
 0xdec   :  { %v2383_v35 = vadd.f32 %v5204_v32, %v2374_v33  ;;  %v5215_v32 = vld [vmem:[%s7276_s3 + $0xc] ss:$0 sm:$0xff] }
 0xdee   :  { %v2384_v36 = vpack.c.bf16 %v2383_v35, %v2382_v34 }
 0xdf0   :  { %5711 = vmatmul.mubr.msk.bf16.vlgmr.msra.gmra.mxu0 %vm127_vm2, %v2384_v36 }
 0xdf1   :  { %5730 = vmatprep.mubr.msk.bf16.mxu0 %vm6243_vm0, %v6242_v0  ;;  %5727 = vmatpush3.bf16.msra.mxu0 %v5219_v11 }
 0xdf2   :  { %5728 = vmatprep.subr.bf16.mxu0 %v6242_v0 }
 0xdf5   :  { %5729 = vmatpush3.bf16.msra.mxu0 %v5218_v15 }
 0xdf6   :  { %5734 = vmatprep.subr.bf16.mxu0 %v6242_v0 }
 0xeb0   :  { %v2445_v48 = vpop.f32.mrf.mxu0 }
 0xeb1   :  { %v2446_v50 = vadd.f32 %v5205_v47, %v2445_v48 }
 0xeb2   :  { %v5712_v49 = vpop.f32.mrf.mxu0 }
 0xeb3   :  { %v2452_v55 = vmax.f32 %v2446_v50, 0.0 }
 0xeb4   :  { %v2448_v51 = vpop.f32.mrf.mxu0 }
 0xeb5   :  { %v2449_v52 = vadd.f32 %v5205_v47, %v2448_v51 }
 0xeb6   :  { %v5713_v54 = vpop.f32.mrf.mxu0 }
 0xeb7   :  { %v2453_v57 = vmax.f32 %v2449_v52, 0.0 }
 0xeb9   :  { %v2454_v58 = vpack.c.bf16 %v2453_v57, %v2452_v55 }
 0xebb   :  { %5723 = vmatmul.mubr.msk.bf16.vlgmr.msra.gmra.mxu1 %vm2494_vm6, %v2454_v58 }
 0xebc   :  { %5742 = vmatprep.mubr.msk.bf16.mxu1 %vm6243_vm0, %v6242_v0 }
 0xf7b   :  { %v2532_v60 = vpop.f32.mrf.mxu1 }
 0xf7c   :  { %v2533_v61 = vadd.f32 %v5209_v59, %v2532_v60 }
 0xf7d   :  { %v5724_v63 = vpop.f32.mrf.mxu1 }
 0xf7e   :  { %v2539_v1 = vadd.f32 %v2533_v61, %v2382_v34 }
 0xf7f   :  { %v2535_v2 = vpop.f32.mrf.mxu1 }
 0xf80   :  { %v2536_v62 = vadd.f32 %v5209_v59, %v2535_v2  ;;  %v2541_v53 = vsel %vm127_vm2, %v2539_v1, 0.0  ;;  %v2549_v3 = vmul.f32 %v2539_v1, %v2539_v1 }
 0xf81   :  { %2542 = vadd.xlane.f32.xlu1 %v2541_v53  ;;  %v5725_v4 = vpop.f32.mrf.mxu1 }
 0xf82   :  { %v2540_v5 = vadd.f32 %v2536_v62, %v2383_v35  ;;  %v2551_v6 = vsel %vm127_vm2, %v2549_v3, 0.0 }
 0xf84   :  { %v2544_v7 = vsel %vm127_vm2, %v2540_v5, 0.0  ;;  %v2550_v56 = vmul.f32 %v2540_v5, %v2540_v5 }
 0xf85   :  { %2552 = vadd.xlane.f32.xlu1 %v2551_v6  ;;  %2545 = vadd.xlane.f32.xlu0 %v2544_v7 }
 0xf86   :  { %v2554_v8 = vsel %vm127_vm2, %v2550_v56, 0.0 }
 0xf89   :  { %2555 = vadd.xlane.f32.xlu0 %v2554_v8 }
0x100a   :  { %v2543_v17 = vpop.xlane.xlu1 %2542 }
0x100b   :  { %v2547_v16 = vmul.f32 0.03125, %v2543_v17 }
0x100d   :  { %v2559_v13 = vmul.f32 %v2547_v16, %v2547_v16  ;;  %v2563_v30 = vsub.f32 %v2539_v1, %v2547_v16 }
0x100e   :  { %v2553_v25 = vpop.xlane.xlu1 %2552  ;;  %v2546_v19 = vpop.xlane.xlu0 %2545 }
0x100f   :  { %v2557_v18 = vmul.f32 0.03125, %v2553_v25  ;;  %v2548_v20 = vmul.f32 0.03125, %v2546_v19 }
0x1011   :  { %v2561_v21 = vsub.f32 %v2557_v18, %v2559_v13  ;;  %v2560_v24 = vmul.f32 %v2548_v20, %v2548_v20  ;;  %v2564_v33 = vsub.f32 %v2540_v5, %v2548_v20 }
0x1012   :  { %v2556_v22 = vpop.xlane.xlu0 %2555 }
0x1013   :  { %v2565_v23 = vadd.f32 1e-05, %v2561_v21  ;;  %v2558_v26 = vmul.f32 0.03125, %v2556_v22 }
0x1015   :  { %6137 = vrsqrt.f32 %v2565_v23  ;;  %v2562_v27 = vsub.f32 %v2558_v26, %v2560_v24 }
0x1017   :  { %v2566_v28 = vadd.f32 1e-05, %v2562_v27 }
0x1019   :  { %6139 = vrsqrt.f32 %v2566_v28 }
0x1022   :  { %v6138_v31 = vpop.eup %6137 }
0x1023   :  { %v2569_v29 = vmul.f32 %v6138_v31, %v2563_v30 }
0x1025   :  { %v2578_v36 = vmul.f32 %v5215_v32, %v2569_v29 }
0x1026   :  { %v6140_v34 = vpop.eup %6139 }
0x1027   :  { %v2570_v35 = vmul.f32 %v6140_v34, %v2564_v33  ;;  %v6793_v39 = vadd.f32 %v5216_v37, %v2578_v36 }
0x1029   :  { %v2579_v38 = vmul.f32 %v5215_v32, %v2570_v35 }
0x102b   :  { %v6795_v41 = vadd.f32 %v5216_v37, %v2579_v38 }
0x102d   :  { %v2589_v43 = vpack.c.bf16 %v6795_v41, %v6793_v39 }
0x102f   :  { %5731 = vmatmul.mubr.msk.bf16.vlgmr.msra.gmra.mxu0 %vm127_vm2, %v2589_v43 }
0x1030   :  { %5736 = vmatprep.mubr.msk.bf16.mxu0 %vm6243_vm0, %v6242_v0 }
0x10ef   :  { %v2650_v44 = vpop.f32.mrf.mxu0 }
0x10f0   :  { %v2651_v45 = vadd.f32 %v5217_v40, %v2650_v44 }
0x10f1   :  { %v5732_v46 = vpop.f32.mrf.mxu0 }
0x10f2   :  { %v6805_v47 = vpack.c.bf16 %v2651_v45, %v2651_v45 }
0x10f3   :  { %v2653_v48 = vpop.f32.mrf.mxu0 }
0x10f4   :  { %2770 = vrot.lane.b32.xlu0 %v6805_v47, %s6245_s27  ;;  %2659 = vrot.lane.b32.xlu1 %v6805_v47, %s6246_s28  ;;  %v2654_v50 = vadd.f32 %v5217_v40, %v2653_v48 }
0x10f5   :  { %v5733_v49 = vpop.f32.mrf.mxu0 }
0x10f6   :  { %v6819_v51 = vpack.c.bf16 %v2654_v50, %v2654_v50 }
0x10f8   :  { %2879 = vrot.lane.b32.xlu0 %v6805_v47, %s6244_s2  ;;  %2768 = vrot.lane.b32.xlu1 %v6805_v47, %s6247_s29 }
0x10fc   :  { %2990 = vrot.lane.b32.xlu0 %v6805_v47, %s6250_s6  ;;  %2881 = vrot.lane.b32.xlu1 %v6805_v47, %s6248_s30 }
0x1100   :  { %2992 = vrot.lane.b32.xlu1 %v6805_v47, %s6249_s5  ;;  %3229 = vrot.lane.b32.xlu0 %v6819_v51, %s6245_s27 }
0x1104   :  { %3340 = vrot.lane.b32.xlu0 %v6819_v51, %s6248_s30  ;;  %3118 = vrot.lane.b32.xlu1 %v6819_v51, %s6246_s28 }
0x1108   :  { %3451 = vrot.lane.b32.xlu0 %v6819_v51, %s6249_s5  ;;  %3227 = vrot.lane.b32.xlu1 %v6819_v51, %s6247_s29 }
0x110c   :  { %3338 = vrot.lane.b32.xlu1 %v6819_v51, %s6244_s2 }
0x1110   :  { %3449 = vrot.lane.b32.xlu1 %v6819_v51, %s6250_s6 }
0x1166   :  { %v2660_v52 = vpop.permute.xlu1 %2659  ;;  %v2771_v55 = vpop.permute.xlu0 %2770 }
0x1167   :  { %v2665_v54 = vsel %vm176_vm3, %v2660_v52, 0  ;;  %v2776_v58 = vsel %vm176_vm3, %v2771_v55, 0 }
0x1168   :  { %5735 = vmatpush3.bf16.xpose.msra.mxu0 %v2665_v54 }
0x1169   :  { %5746 = vmatprep.subr.bf16.mxu0 %v6242_v0 }
0x116a   :  { %v2769_v57 = vpop.permute.xlu1 %2768  ;;  %v2880_v63 = vpop.permute.xlu0 %2879 }
0x116e   :  { %v2882_v59 = vpop.permute.xlu1 %2881  ;;  %v2991_v62 = vpop.permute.xlu0 %2990 }
0x116f   :  { %5737 = vmatmul.mubr.msk.bf16.vlgmr.msra.gmra.mxu0 %vm176_vm3, %v6805_v47  ;;  %v2887_v60 = vsel %vm176_vm3, %v2882_v59, 0 }
0x1170   :  { %5747 = vmatpush3.bf16.xpose.msra.mxu0 %v2776_v58  ;;  %5748 = vmatprep.mubr.msk.bf16.mxu0 %vm6243_vm0, %v6242_v0 }
0x1171   :  { %5758 = vmatprep.subr.bf16.mxu0 %v6242_v0 }
0x1172   :  { %v2993_v61 = vpop.permute.xlu1 %2992  ;;  %v3230_v3 = vpop.permute.xlu0 %3229 }
0x1173   :  { %v2998_v1 = vsel %vm176_vm3, %v2993_v61, 0  ;;  %v3235_v4 = vsel %vm176_vm3, %v3230_v3, 0 }
0x1176   :  { %v3119_v2 = vpop.permute.xlu1 %3118  ;;  %v3341_v5 = vpop.permute.xlu0 %3340 }
0x1177   :  { %5749 = vmatmul.mubr.msk.bf16.vlgmr.msra.gmra.mxu0 %vm176_vm3, %v2769_v57  ;;  %v3124_v53 = vsel %vm176_vm3, %v3119_v2, 0  ;;  %v3346_v7 = vsel %vm176_vm3, %v3341_v5, 0 }
0x1178   :  { %5759 = vmatpush3.bf16.xpose.msra.mxu0 %v2887_v60  ;;  %5760 = vmatprep.mubr.msk.bf16.mxu0 %vm6243_vm0, %v6242_v0 }
0x1179   :  { %5770 = vmatprep.subr.bf16.mxu0 %v6242_v0 }
0x117a   :  { %v3228_v6 = vpop.permute.xlu1 %3227  ;;  %v3452_v56 = vpop.permute.xlu0 %3451 }
0x117b   :  { %v3457_v9 = vsel %vm176_vm3, %v3452_v56, 0 }
0x117e   :  { %v3339_v8 = vpop.permute.xlu1 %3338 }
0x117f   :  { %5761 = vmatmul.mubr.msk.bf16.vlgmr.msra.gmra.mxu0 %vm176_vm3, %v2880_v63 }
0x1180   :  { %5771 = vmatpush3.bf16.xpose.msra.mxu0 %v2998_v1  ;;  %5772 = vmatprep.mubr.msk.bf16.mxu0 %vm6243_vm0, %v6242_v0 }
0x1181   :  { %5782 = vmatprep.subr.bf16.mxu0 %v6242_v0 }
0x1182   :  { %v3450_v10 = vpop.permute.xlu1 %3449 }
0x1187   :  { %5773 = vmatmul.mubr.msk.bf16.vlgmr.msra.gmra.mxu0 %vm176_vm3, %v2991_v62 }
0x1188   :  { %5783 = vmatpush3.bf16.xpose.msra.mxu0 %v3124_v53  ;;  %5784 = vmatprep.mubr.msk.bf16.mxu0 %vm6243_vm0, %v6242_v0 }
0x1189   :  { %5794 = vmatprep.subr.bf16.mxu0 %v6242_v0 }
0x118f   :  { %5785 = vmatmul.mubr.msk.bf16.vlgmr.msra.gmra.mxu0 %vm176_vm3, %v6819_v51 }
0x1190   :  { %5795 = vmatpush3.bf16.xpose.msra.mxu0 %v3235_v4  ;;  %5796 = vmatprep.mubr.msk.bf16.mxu0 %vm6243_vm0, %v6242_v0 }
0x1191   :  { %5806 = vmatprep.subr.bf16.mxu0 %v6242_v0 }
0x1197   :  { %5797 = vmatmul.mubr.msk.bf16.vlgmr.msra.gmra.mxu0 %vm176_vm3, %v3228_v6 }
0x1198   :  { %5807 = vmatpush3.bf16.xpose.msra.mxu0 %v3346_v7  ;;  %5808 = vmatprep.mubr.msk.bf16.mxu0 %vm6243_vm0, %v6242_v0 }
0x1199   :  { %5818 = vmatprep.subr.bf16.mxu0 %v6242_v0 }
0x119f   :  { %5809 = vmatmul.mubr.msk.bf16.vlgmr.msra.gmra.mxu0 %vm176_vm3, %v3339_v8 }
0x11a0   :  { %5819 = vmatpush3.bf16.xpose.msra.mxu0 %v3457_v9  ;;  %5820 = vmatprep.mubr.msk.bf16.mxu0 %vm6243_vm0, %v6242_v0 }
0x11a1   :  { %5830 = vmatprep.subr.bf16.mxu0 %v6242_v0 }
0x11a7   :  { %5821 = vmatmul.mubr.msk.bf16.vlgmr.msra.gmra.mxu0 %vm176_vm3, %v3450_v10 }
0x11a8   :  { %5834 = vmatprep.mubr.msk.bf16.mxu0 %vm6243_vm0, %v6242_v0 }
0x122f   :  { %v2701_v11 = vpop.f32.mrf.mxu0 }
0x1230   :  { %v2707_v12 = vmul.f32 0.35355338, %v2701_v11 }
0x1231   :  { %v5738_v14 = vpop.f32.mrf.mxu0 }
0x1232   :  { %v2708_v15 = vsel %vm176_vm3, %v2707_v12, -inf }
0x1233   :  { %2709 = vmax.xlane.f32.xlu0 %v2708_v15  ;;  %v2704_v17 = vpop.f32.mrf.mxu0 }
0x1235   :  { %v5739_v16 = vpop.f32.mrf.mxu0 }
0x1237   :  { %v2812_v25 = vpop.f32.mrf.mxu0 }
0x1238   :  { %v2818_v19 = vmul.f32 0.35355338, %v2812_v25 }
0x1239   :  { %v5750_v13 = vpop.f32.mrf.mxu0 }
0x123a   :  { %v2819_v18 = vsel %vm176_vm3, %v2818_v19, -inf }
0x123b   :  { %2820 = vmax.xlane.f32.xlu1 %v2819_v18  ;;  %v2815_v20 = vpop.f32.mrf.mxu0 }
0x123d   :  { %v5751_v21 = vpop.f32.mrf.mxu0 }
0x123f   :  { %v2923_v22 = vpop.f32.mrf.mxu0 }
0x1240   :  { %v2929_v23 = vmul.f32 0.35355338, %v2923_v22 }
0x1241   :  { %v5762_v24 = vpop.f32.mrf.mxu0 }
0x1242   :  { %v2930_v26 = vsel %vm176_vm3, %v2929_v23, -inf }
0x1243   :  { %2931 = vmax.xlane.f32.xlu0 %v2930_v26  ;;  %v2926_v27 = vpop.f32.mrf.mxu0 }
0x1245   :  { %v5763_v28 = vpop.f32.mrf.mxu0 }
0x1247   :  { %v3034_v30 = vpop.f32.mrf.mxu0 }
0x1248   :  { %v6882_v31 = vmul.f32 0.35355338, %v3034_v30 }
0x1249   :  { %v5774_v29 = vpop.f32.mrf.mxu0 }
0x124a   :  { %v3041_v32 = vsel %vm176_vm3, %v6882_v31, -inf }
0x124b   :  { %3042 = vmax.xlane.f32.xlu0 %v3041_v32  ;;  %v3037_v33 = vpop.f32.mrf.mxu0 }
0x124d   :  { %v5775_v34 = vpop.f32.mrf.mxu0 }
0x124f   :  { %v3160_v35 = vpop.f32.mrf.mxu0 }
0x1250   :  { %v6886_v36 = vmul.f32 0.35355338, %v3160_v35 }
0x1251   :  { %v5786_v37 = vpop.f32.mrf.mxu0 }
0x1252   :  { %v3167_v38 = vsel %vm176_vm3, %v6886_v36, -inf }
0x1253   :  { %3168 = vmax.xlane.f32.xlu1 %v3167_v38  ;;  %v3163_v43 = vpop.f32.mrf.mxu0 }
0x1255   :  { %v5787_v40 = vpop.f32.mrf.mxu0 }
0x1257   :  { %v3271_v44 = vpop.f32.mrf.mxu0 }
0x1258   :  { %v3277_v45 = vmul.f32 0.35355338, %v3271_v44 }
0x1259   :  { %v5798_v46 = vpop.f32.mrf.mxu0 }
0x125a   :  { %v3278_v48 = vsel %vm176_vm3, %v3277_v45, -inf }
0x125b   :  { %3279 = vmax.xlane.f32.xlu0 %v3278_v48  ;;  %v3274_v49 = vpop.f32.mrf.mxu0 }
0x125d   :  { %v5799_v50 = vpop.f32.mrf.mxu0 }
0x125f   :  { %v3382_v52 = vpop.f32.mrf.mxu0 }
0x1260   :  { %v3388_v54 = vmul.f32 0.35355338, %v3382_v52 }
0x1261   :  { %v5810_v55 = vpop.f32.mrf.mxu0 }
0x1262   :  { %v3389_v57 = vsel %vm176_vm3, %v3388_v54, -inf }
0x1263   :  { %3390 = vmax.xlane.f32.xlu1 %v3389_v57  ;;  %v3385_v58 = vpop.f32.mrf.mxu0 }
0x1265   :  { %v5811_v59 = vpop.f32.mrf.mxu0 }
0x1267   :  { %v3493_v60 = vpop.f32.mrf.mxu0 }
0x1268   :  { %v3499_v2 = vmul.f32 0.35355338, %v3493_v60 }
0x1269   :  { %v5822_v61 = vpop.f32.mrf.mxu0 }
0x126a   :  { %v3500_v62 = vsel %vm176_vm3, %v3499_v2, -inf }
0x126b   :  { %v3496_v63 = vpop.f32.mrf.mxu0 }
0x126d   :  { %v5823_v1 = vpop.f32.mrf.mxu0 }
0x1271   :  { %2831 = vrot.lane.b32.xlu0 %v6805_v47, %s6251_s7 }
0x1274   :  { %2720 = vrot.lane.b32.xlu1 %v6805_v47, %s6241_s19 }
0x1290   :  { %3501 = vmax.xlane.f32.xlu0 %v3500_v62 }
0x12bc   :  { %v2710_v53 = vpop.xlane.xlu0 %2709 }
0x12bd   :  { %v2711_v3 = vsub.f32 %v2707_v12, %v2710_v53 }
0x12bf   :  { %v2712_v4 = vmul.f32 1.442695, %v2711_v3 }
0x12c1   :  { %6141 = vpow2.f32 %v2712_v4 }
0x12c4   :  { %v2821_v5 = vpop.xlane.xlu1 %2820 }
0x12c5   :  { %v2822_v6 = vsub.f32 %v2818_v19, %v2821_v5 }
0x12c7   :  { %v2823_v7 = vmul.f32 1.442695, %v2822_v6 }
0x12c9   :  { %6143 = vpow2.f32 %v2823_v7 }
0x12cc   :  { %v2932_v56 = vpop.xlane.xlu0 %2931 }
0x12cd   :  { %v2933_v8 = vsub.f32 %v2929_v23, %v2932_v56 }
0x12ce   :  { %v6142_v9 = vpop.eup %6141 }
0x12cf   :  { %v2934_v10 = vmul.f32 1.442695, %v2933_v8  ;;  %v2714_v11 = vsel %vm176_vm3, %v6142_v9, 0.0 }
0x12d0   :  { %2715 = vadd.xlane.f32.xlu1 %v2714_v11 }
0x12d1   :  { %6145 = vpow2.f32 %v2934_v10 }
0x12d4   :  { %v3043_v13 = vpop.xlane.xlu0 %3042 }
0x12d5   :  { %v3044_v20 = vsub.f32 %v6882_v31, %v3043_v13 }
0x12d6   :  { %v6898_v14 = vpop.eup %6143 }
0x12d7   :  { %v2825_v15 = vsel %vm176_vm3, %v6898_v14, 0.0  ;;  %v3045_v21 = vmul.f32 1.442695, %v3044_v20 }
0x12d8   :  { %2826 = vadd.xlane.f32.xlu0 %v2825_v15 }
0x12d9   :  { %6147 = vpow2.f32 %v3045_v21 }
0x12dc   :  { %v3169_v16 = vpop.xlane.xlu1 %3168 }
0x12dd   :  { %v3170_v22 = vsub.f32 %v6886_v36, %v3169_v16 }
0x12de   :  { %v6902_v12 = vpop.eup %6145 }
0x12df   :  { %v2936_v17 = vsel %vm176_vm3, %v6902_v12, 0.0  ;;  %v3171_v26 = vmul.f32 1.442695, %v3170_v22 }
0x12e0   :  { %2937 = vadd.xlane.f32.xlu1 %v2936_v17 }
0x12e1   :  { %6149 = vpow2.f32 %v3171_v26 }
0x12e4   :  { %v3280_v23 = vpop.xlane.xlu0 %3279 }
0x12e5   :  { %v3281_v24 = vsub.f32 %v3277_v45, %v3280_v23 }
0x12e6   :  { %v6148_v29 = vpop.eup %6147 }
0x12e7   :  { %v3282_v28 = vmul.f32 1.442695, %v3281_v24 }
0x12e8   :  { %v2832_v37 = vpop.permute.xlu0 %2831 }
0x12e9   :  { %6151 = vpow2.f32 %v3282_v28  ;;  %v2837_v55 = vsel %vm241_vm4, %v2832_v37, 0 }
0x12ec   :  { %v3391_v25 = vpop.xlane.xlu1 %3390 }
0x12ed   :  { %v3392_v27 = vsub.f32 %v3388_v54, %v3391_v25 }
0x12ee   :  { %2942 = vrot.lane.b32.xlu0 %v6805_v47, %s6252_s8  ;;  %v6915_v32 = vpop.eup %6149 }
0x12ef   :  { %v3393_v30 = vmul.f32 1.442695, %v3392_v27  ;;  %v3173_v33 = vsel %vm176_vm3, %v6915_v32, 0.0 }
0x12f0   :  { %v2721_v19 = vpop.permute.xlu1 %2720 }
0x12f1   :  { %v2726_v18 = vsel %vm241_vm4, %v2721_v19, 0  ;;  %3053 = vrot.lane.b32.xlu1 %v6805_v47, %s6253_s9  ;;  %6153 = vpow2.f32 %v3393_v30  ;;  %v3047_v47 = vsel %vm176_vm3, %v6148_v29, 0.0 }
0x12f2   :  { %5741 = vmatpush3.bf16.msra.mxu1 %v2726_v18 }
0x12f3   :  { %5752 = vmatprep.subr.bf16.mxu1 %v6242_v0 }
0x12f6   :  { %v6917_v31 = vpop.eup %6151 }
0x12f7   :  { %v3284_v35 = vsel %vm176_vm3, %v6917_v31, 0.0 }
0x12fe   :  { %v6921_v34 = vpop.eup %6153 }
0x12ff   :  { %v3395_v36 = vsel %vm176_vm3, %v6921_v34, 0.0 }
0x130d   :  { %3048 = vadd.xlane.f32.xlu0 %v3047_v47 }
0x1311   :  { %3174 = vadd.xlane.f32.xlu0 %v3173_v33 }
0x1315   :  { %3285 = vadd.xlane.f32.xlu1 %v3284_v35  ;;  %3396 = vadd.xlane.f32.xlu0 %v3395_v36 }
0x1319   :  { %v3502_v38 = vpop.xlane.xlu0 %3501 }
0x131a   :  { %v3503_v43 = vsub.f32 %v3499_v2, %v3502_v38 }
0x131c   :  { %v3504_v40 = vmul.f32 1.442695, %v3503_v43 }
0x131e   :  { %6155 = vpow2.f32 %v3504_v40 }
0x1326   :  { %3290 = vrot.lane.b32.xlu1 %v6819_v51, %s6251_s7 }
0x132a   :  { %3401 = vrot.lane.b32.xlu1 %v6819_v51, %s6252_s8 }
0x132b   :  { %v6931_v44 = vpop.eup %6155 }
0x132c   :  { %v3506_v45 = vsel %vm176_vm3, %v6931_v44, 0.0 }
0x132d   :  { %3507 = vadd.xlane.f32.xlu0 %v3506_v45 }
0x132e   :  { %3512 = vrot.lane.b32.xlu1 %v6819_v51, %s6253_s9 }
0x1343   :  { %3179 = vrot.lane.b32.xlu0 %v6819_v51, %s6241_s19 }
0x1359   :  { %v2716_v46 = vpop.xlane.xlu1 %2715 }
0x135a   :  { %6157 = vrcp.f32 %v2716_v46 }
0x1361   :  { %v2827_v48 = vpop.xlane.xlu0 %2826 }
0x1362   :  { %6159 = vrcp.f32 %v2827_v48 }
0x1365   :  { %v2943_v58 = vpop.permute.xlu0 %2942 }
0x1366   :  { %v2948_v60 = vsel %vm241_vm4, %v2943_v58, 0 }
0x1367   :  { %v6158_v49 = vpop.eup %6157 }
0x1368   :  { %v2718_v50 = vmul.f32 %v6158_v49, %v6142_v9 }
0x1369   :  { %v2938_v52 = vpop.xlane.xlu1 %2937 }
0x136a   :  { %6161 = vrcp.f32 %v2938_v52  ;;  %v2719_v54 = vpack.c.bf16 %v2718_v50, %v2718_v50 }
0x136c   :  { %5743 = vmatmul.mubr.msk.bf16.vlgmr.msra.gmra.mxu1 %vm176_vm3, %v2719_v54 }
0x136d   :  { %5753 = vmatpush3.bf16.msra.mxu1 %v2837_v55  ;;  %5754 = vmatprep.mubr.msk.bf16.mxu1 %vm6243_vm0, %v6242_v0  ;;  %v3054_v1 = vpop.permute.xlu1 %3053  ;;  %v3578_v55 = vld [vmem:[#allocation2 + $0xa4] sm:$0xf] }
0x136e   :  { %5764 = vmatprep.subr.bf16.mxu1 %v6242_v0  ;;  %v3059_v62 = vsel %vm241_vm4, %v3054_v1, 0  ;;  %v3577_v1 = vld [vmem:[#allocation2 + $0x64] sm:$0xf] }
0x136f   :  { %v6160_v51 = vpop.eup %6159 }
0x1370   :  { %v2829_v57 = vmul.f32 %v6160_v51, %v6898_v14  ;;  %v3579_v51 = vld [vmem:[#allocation2 + $0xe4] sm:$0xf] }
0x1371   :  { %v5239_v58 = vcombine.low %v3578_v55, %v3579_v51 }
0x1372   :  { %v2830_v59 = vpack.c.bf16 %v2829_v57, %v2829_v57 }
0x1373   :  { %5831 = vmatpush3.bf16.msra.mxu0 %v5239_v58  ;;  %v3697_v58 = vld [vmem:[#allocation2 + $0xe8] sm:$0xf] }
0x1374   :  { %5755 = vmatmul.mubr.msk.bf16.vlgmr.msra.gmra.mxu1 %vm176_vm3, %v2830_v59  ;;  %5832 = vmatprep.subr.bf16.mxu0 %v6242_v0 }
0x1375   :  { %5765 = vmatpush3.bf16.msra.mxu1 %v2948_v60  ;;  %5766 = vmatprep.mubr.msk.bf16.mxu1 %vm6243_vm0, %v6242_v0 }
0x1376   :  { %5776 = vmatprep.subr.bf16.mxu1 %v6242_v0 }
0x1377   :  { %v6162_v61 = vpop.eup %6161 }
0x1378   :  { %v2940_v63 = vmul.f32 %v6162_v61, %v6902_v12 }
0x137a   :  { %v2941_v2 = vpack.c.bf16 %v2940_v63, %v2940_v63  ;;  %v3576_v63 = vld [vmem:[#allocation2 + $0x24] sm:$0xf] }
0x137c   :  { %5767 = vmatmul.mubr.msk.bf16.vlgmr.msra.gmra.mxu1 %vm176_vm3, %v2941_v2  ;;  %v5238_v2 = vcombine.low %v3576_v63, %v3577_v1 }
0x137d   :  { %5777 = vmatpush3.bf16.msra.mxu1 %v3059_v62  ;;  %5778 = vmatprep.mubr.msk.bf16.mxu1 %vm6243_vm0, %v6242_v0 }
0x137e   :  { %5788 = vmatprep.subr.bf16.mxu1 %v6242_v0  ;;  %5833 = vmatpush3.bf16.msra.mxu0 %v5238_v2 }
0x137f   :  { %5846 = vmatprep.subr.bf16.mxu0 %v6242_v0 }
0x1396   :  { %v3049_v53 = vpop.xlane.xlu0 %3048 }
0x1397   :  { %6163 = vrcp.f32 %v3049_v53 }
0x139a   :  { %v3175_v5 = vpop.xlane.xlu0 %3174 }
0x139b   :  { %6165 = vrcp.f32 %v3175_v5 }
0x139e   :  { %v3286_v7 = vpop.xlane.xlu1 %3285  ;;  %v3397_v56 = vpop.xlane.xlu0 %3396 }
0x139f   :  { %6167 = vrcp.f32 %v3286_v7 }
0x13a0   :  { %6169 = vrcp.f32 %v3397_v56 }
0x13a2   :  { %v3291_v15 = vpop.permute.xlu1 %3290 }
0x13a3   :  { %v3296_v16 = vsel %vm241_vm4, %v3291_v15, 0 }
0x13a4   :  { %v6164_v3 = vpop.eup %6163 }
0x13a5   :  { %v3051_v4 = vmul.f32 %v6164_v3, %v6148_v29 }
0x13a6   :  { %v3402_v19 = vpop.permute.xlu1 %3401 }
0x13a7   :  { %v3052_v6 = vpack.c.bf16 %v3051_v4, %v3051_v4  ;;  %v3407_v20 = vsel %vm241_vm4, %v3402_v19, 0  ;;  %v3764_v19 = vld [vmem:[#allocation2 + $0xec] sm:$0xf] }
0x13a8   :  { %v6166_v8 = vpop.eup %6165 }
0x13a9   :  { %5779 = vmatmul.mubr.msk.bf16.vlgmr.msra.gmra.mxu1 %vm176_vm3, %v3052_v6  ;;  %v3177_v10 = vmul.f32 %v6166_v8, %v6915_v32 }
0x13aa   :  { %5790 = vmatprep.mubr.msk.bf16.mxu1 %vm6243_vm0, %v6242_v0  ;;  %v3513_v22 = vpop.permute.xlu1 %3512 }
0x13ab   :  { %v3178_v12 = vpack.c.bf16 %v3177_v10, %v3177_v10  ;;  %v3518_v26 = vsel %vm241_vm4, %v3513_v22, 0 }
0x13ac   :  { %v6168_v17 = vpop.eup %6167 }
0x13ad   :  { %v3288_v25 = vmul.f32 %v6168_v17, %v6917_v31  ;;  %v6170_v18 = vpop.eup %6169 }
0x13ae   :  { %v3399_v21 = vmul.f32 %v6170_v18, %v6921_v34 }
0x13af   :  { %v3289_v13 = vpack.c.bf16 %v3288_v25, %v3288_v25  ;;  %v3763_v25 = vld [vmem:[#allocation2 + $0xac] sm:$0xf] }
0x13b0   :  { %v3400_v23 = vpack.c.bf16 %v3399_v21, %v3399_v21 }
0x13b6   :  { %v3508_v9 = vpop.xlane.xlu0 %3507 }
0x13b7   :  { %6171 = vrcp.f32 %v3508_v9 }
0x13ba   :  { %v3180_v11 = vpop.permute.xlu0 %3179 }
0x13bb   :  { %v3185_v14 = vsel %vm241_vm4, %v3180_v11, 0 }
0x13bc   :  { %5789 = vmatpush3.bf16.msra.mxu1 %v3185_v14 }
0x13bd   :  { %5800 = vmatprep.subr.bf16.mxu1 %v6242_v0 }
0x13bf   :  { %5791 = vmatmul.mubr.msk.bf16.vlgmr.msra.gmra.mxu1 %vm176_vm3, %v3178_v12 }
0x13c0   :  { %5801 = vmatpush3.bf16.msra.mxu1 %v3296_v16  ;;  %5802 = vmatprep.mubr.msk.bf16.mxu1 %vm6243_vm0, %v6242_v0 }
0x13c1   :  { %5812 = vmatprep.subr.bf16.mxu1 %v6242_v0 }
0x13c4   :  { %v6172_v24 = vpop.eup %6171 }
0x13c5   :  { %v3510_v27 = vmul.f32 %v6172_v24, %v6931_v44 }
0x13c7   :  { %5803 = vmatmul.mubr.msk.bf16.vlgmr.msra.gmra.mxu1 %vm176_vm3, %v3289_v13  ;;  %v3511_v28 = vpack.c.bf16 %v3510_v27, %v3510_v27  ;;  %v5249_v27 = vcombine.low %v3763_v25, %v3764_v19 }
0x13c8   :  { %5813 = vmatpush3.bf16.msra.mxu1 %v3407_v20  ;;  %5814 = vmatprep.mubr.msk.bf16.mxu1 %vm6243_vm0, %v6242_v0 }
0x13c9   :  { %5824 = vmatprep.subr.bf16.mxu1 %v6242_v0 }
0x13cf   :  { %5815 = vmatmul.mubr.msk.bf16.vlgmr.msra.gmra.mxu1 %vm176_vm3, %v3400_v23 }
0x13d0   :  { %5825 = vmatpush3.bf16.msra.mxu1 %v3518_v26  ;;  %5826 = vmatprep.mubr.msk.bf16.mxu1 %vm6243_vm0, %v6242_v0 }
0x13d1   :  { %5838 = vmatprep.subr.bf16.mxu1 %v6242_v0 }
0x13d7   :  { %5827 = vmatmul.mubr.msk.bf16.vlgmr.msra.gmra.mxu1 %vm176_vm3, %v3511_v28 }
0x13d8   :  { %5842 = vmatprep.mubr.msk.bf16.mxu1 %vm6243_vm0, %v6242_v0 }
0x142c   :  { %v2762_v30 = vpop.f32.mrf.mxu1 }
0x142e   :  { %v5744_v29 = vpop.f32.mrf.mxu1 }
0x142f   :  { %v3761_v29 = vld [vmem:[#allocation2 + $0x2c] sm:$0xf] }
0x1430   :  { %v2765_v47 = vpop.f32.mrf.mxu1 }
0x1431   :  { %v3762_v47 = vld [vmem:[#allocation2 + $0x6c] sm:$0xf] }
0x1432   :  { %v5745_v32 = vpop.f32.mrf.mxu1 }
0x1433   :  { %v5248_v32 = vcombine.low %v3761_v29, %v3762_v47 }
0x1434   :  { %v2873_v31 = vpop.f32.mrf.mxu1 }
0x1436   :  { %v5756_v33 = vpop.f32.mrf.mxu1 }
0x1438   :  { %v2876_v34 = vpop.f32.mrf.mxu1 }
0x143a   :  { %v5757_v35 = vpop.f32.mrf.mxu1 }
0x143c   :  { %v2984_v36 = vpop.f32.mrf.mxu1 }
0x143e   :  { %v5768_v37 = vpop.f32.mrf.mxu1 }
0x1440   :  { %v2987_v38 = vpop.f32.mrf.mxu1 }
0x1442   :  { %v5769_v43 = vpop.f32.mrf.mxu1 }
0x1469   :  { %v3095_v40 = vpop.f32.mrf.mxu1 }
0x146b   :  { %v5780_v44 = vpop.f32.mrf.mxu1 }
0x146d   :  { %v3098_v45 = vpop.f32.mrf.mxu1 }
0x146f   :  { %v5781_v46 = vpop.f32.mrf.mxu1 }
0x147f   :  { %v3221_v48 = vpop.f32.mrf.mxu1 }
0x1481   :  { %v5792_v49 = vpop.f32.mrf.mxu1 }
0x1483   :  { %v3224_v50 = vpop.f32.mrf.mxu1 }
0x1485   :  { %v5793_v52 = vpop.f32.mrf.mxu1 }
0x1487   :  { %v3332_v54 = vpop.f32.mrf.mxu1 }
0x1488   :  { %v6035_v57 = vpack.i.bf16 %v3332_v54, %v2873_v31 }
0x1489   :  { %v5804_v59 = vpop.f32.mrf.mxu1 }
0x148a   :  { %6036 = vrot.lane.b32.xlu1 %v6035_v57, %s6254_s10  ;;  %v3696_v57 = vld [vmem:[#allocation2 + $0xa8] sm:$0xf] }
0x148b   :  { %v3335_v60 = vpop.f32.mrf.mxu1  ;;  %v5245_v59 = vcombine.low %v3696_v57, %v3697_v58 }
0x148c   :  { %v3694_v60 = vld [vmem:[#allocation2 + $0x28] sm:$0xf] }
0x148d   :  { %v5805_v61 = vpop.f32.mrf.mxu1  ;;  %5839 = vmatpush3.bf16.msra.mxu1 %v5245_v59 }
0x148e   :  { %5840 = vmatprep.subr.bf16.mxu1 %v6242_v0  ;;  %v3695_v61 = vld [vmem:[#allocation2 + $0x68] sm:$0xf] }
0x148f   :  { %v3443_v62 = vpop.f32.mrf.mxu1  ;;  %v5244_v63 = vcombine.low %v3694_v60, %v3695_v61 }
0x1490   :  { %v6040_v53 = vpack.i.bf16 %v3443_v62, %v2984_v36 }
0x1491   :  { %v5816_v3 = vpop.f32.mrf.mxu1  ;;  %5841 = vmatpush3.bf16.msra.mxu1 %v5244_v63 }
0x1492   :  { %6041 = vrot.lane.b32.xlu1 %v6040_v53, %s6255_s11  ;;  %5854 = vmatprep.subr.bf16.mxu1 %v6242_v0 }
0x1493   :  { %v3446_v4 = vpop.f32.mrf.mxu1 }
0x1495   :  { %v5817_v5 = vpop.f32.mrf.mxu1 }
0x1497   :  { %v3554_v6 = vpop.f32.mrf.mxu1 }
0x1498   :  { %v6045_v7 = vpack.i.bf16 %v3554_v6, %v3095_v40 }
0x1499   :  { %v5828_v56 = vpop.f32.mrf.mxu1 }
0x149a   :  { %6046 = vrot.lane.b32.xlu0 %v6045_v7, %s6256_s12 }
0x149b   :  { %v3557_v8 = vpop.f32.mrf.mxu1 }
0x149d   :  { %v5829_v9 = vpop.f32.mrf.mxu1 }
0x14fc   :  { %v6037_v10 = vpop.permute.xlu1 %6036 }
0x14fd   :  { %v6039_v14 = vunpack.i.h.bf16 %v6037_v10  ;;  %v6038_v15 = vunpack.i.l.bf16 %v6037_v10 }
0x14ff   :  { %v3572_v13 = vsel %vm176_vm3, %v3221_v48, %v6039_v14  ;;  %v3113_v18 = vsel %vm176_vm3, %v2762_v30, %v6038_v15  ;;  %v5237_v30 = vld [vmem:[%s7276_s3 + $0xf] ss:$0 sm:$0xff] }
0x1504   :  { %v6042_v11 = vpop.permute.xlu1 %6041 }
0x1505   :  { %v6044_v12 = vunpack.i.h.bf16 %v6042_v11  ;;  %v6043_v17 = vunpack.i.l.bf16 %v6042_v11 }
0x1507   :  { %v3573_v22 = vsel %vm58_vm1, %v3572_v13, %v6044_v12  ;;  %v3114_v23 = vsel %vm58_vm1, %v3113_v18, %v6043_v17  ;;  %v5241_v12 = vld [vmem:[%s7276_s3 + $0x15] ss:$0 sm:$0xff]  ;;  %v5242_v18 = vld [vmem:[%s7276_s3 + $0x16] ss:$0 sm:$0xff] }
0x150c   :  { %v6047_v16 = vpop.permute.xlu0 %6046 }
0x150d   :  { %v6049_v20 = vunpack.i.h.bf16 %v6047_v16  ;;  %v6048_v21 = vunpack.i.l.bf16 %v6047_v16 }
0x150f   :  { %v3574_v24 = vsel %vm632_vm5, %v3573_v22, %v6049_v20  ;;  %v3115_v26 = vsel %vm632_vm5, %v3114_v23, %v6048_v21 }
0x1510   :  { %v3575_v28 = vpack.c.bf16 %v3574_v24, %v3115_v26  ;;  %v5243_v26 = vld [vmem:[%s7276_s3 + $0x10] ss:$0 sm:$0xff] }
0x1512   :  { %5835 = vmatmul.mubr.msk.bf16.vlgmr.msra.gmra.mxu0 %vm127_vm2, %v3575_v28 }
0x1513   :  { %5847 = vmatpush3.bf16.msra.mxu0 %v5249_v27  ;;  %5850 = vmatprep.mubr.msk.bf16.mxu0 %vm6243_vm0, %v6242_v0 }
0x1514   :  { %5848 = vmatprep.subr.bf16.mxu0 %v6242_v0 }
0x1517   :  { %5849 = vmatpush3.bf16.msra.mxu0 %v5248_v32 }
0x1518   :  { %5860 = vmatprep.subr.bf16.mxu0 %v6242_v0 }
0x151a   :  { %5851 = vmatmul.mubr.msk.bf16.vlgmr.msra.gmra.mxu0 %vm127_vm2, %v6535_v42 }
0x151b   :  { %5862 = vmatprep.mubr.msk.bf16.mxu0 %vm6243_vm0, %v6242_v0 }
0x15d2   :  { %v3636_v31 = vpop.f32.mrf.mxu0 }
0x15d3   :  { %v3637_v33 = vadd.f32 %v5237_v30, %v3636_v31 }
0x15d4   :  { %v5836_v34 = vpop.f32.mrf.mxu0 }
0x15d5   :  { %v3643_v35 = vadd.f32 %v3637_v33, %v6793_v39  ;;  %v5247_v39 = vld [vmem:[%s7276_s3 + $0x11] ss:$0 sm:$0xff] }
0x15d6   :  { %v3639_v36 = vpop.f32.mrf.mxu0 }
0x15d7   :  { %v3640_v37 = vadd.f32 %v5237_v30, %v3639_v36  ;;  %v3645_v38 = vsel %vm127_vm2, %v3643_v35, 0.0  ;;  %v3653_v46 = vmul.f32 %v3643_v35, %v3643_v35 }
0x15d8   :  { %3646 = vadd.xlane.f32.xlu1 %v3645_v38  ;;  %v5837_v43 = vpop.f32.mrf.mxu0 }
0x15d9   :  { %v3644_v42 = vadd.f32 %v3640_v37, %v6795_v41  ;;  %v3655_v54 = vsel %vm127_vm2, %v3653_v46, 0.0 }
0x15da   :  { %v3818_v40 = vpop.f32.mrf.mxu0 }
0x15db   :  { %v3648_v44 = vsel %vm127_vm2, %v3644_v42, 0.0  ;;  %v3654_v45 = vmul.f32 %v3644_v42, %v3644_v42  ;;  %v3819_v55 = vadd.f32 %v5247_v39, %v3818_v40 }
0x15dc   :  { %3649 = vadd.xlane.f32.xlu0 %v3648_v44  ;;  %v5852_v48 = vpop.f32.mrf.mxu0 }
0x15dd   :  { %v3658_v49 = vsel %vm127_vm2, %v3654_v45, 0.0  ;;  %v7017_v51 = vpack.c.bf16 %v3819_v55, %v3819_v55 }
0x15de   :  { %3659 = vadd.xlane.f32.xlu1 %v3658_v49  ;;  %v3821_v50 = vpop.f32.mrf.mxu0 }
0x15df   :  { %v7014_v52 = vadd.f32 %v5247_v39, %v3821_v50  ;;  %v3831_v24 = vsel %vm176_vm3, %v7017_v51, 0 }
0x15e0   :  { %3656 = vadd.xlane.f32.xlu0 %v3655_v54  ;;  %v5853_v41 = vpop.f32.mrf.mxu0 }
0x15e1   :  { %v7059_v36 = vpack.c.bf16 %v7014_v52, %v7014_v52 }
0x15e3   :  { %v4290_v46 = vsel %vm176_vm3, %v7059_v36, 0 }
0x15f6   :  { %3938 = vrot.lane.b32.xlu0 %v7017_v51, %s6247_s29 }
0x1661   :  { %v3647_v1 = vpop.xlane.xlu1 %3646 }
0x1662   :  { %v3651_v62 = vmul.f32 0.03125, %v3647_v1 }
0x1664   :  { %v3663_v7 = vmul.f32 %v3651_v62, %v3651_v62  ;;  %v3667_v17 = vsub.f32 %v3643_v35, %v3651_v62 }
0x1665   :  { %v3650_v2 = vpop.xlane.xlu0 %3649 }
0x1666   :  { %v3652_v53 = vmul.f32 0.03125, %v3650_v2 }
0x1667   :  { %v3660_v3 = vpop.xlane.xlu1 %3659 }
0x1668   :  { %v3664_v4 = vmul.f32 %v3652_v53, %v3652_v53  ;;  %v3662_v5 = vmul.f32 0.03125, %v3660_v3  ;;  %v3668_v14 = vsub.f32 %v3644_v42, %v3652_v53 }
0x1669   :  { %v3657_v6 = vpop.xlane.xlu0 %3656 }
0x166a   :  { %v3666_v56 = vsub.f32 %v3662_v5, %v3664_v4  ;;  %v3661_v8 = vmul.f32 0.03125, %v3657_v6 }
0x166c   :  { %v3670_v9 = vadd.f32 1e-05, %v3666_v56  ;;  %v3665_v10 = vsub.f32 %v3661_v8, %v3663_v7 }
0x166d   :  { %v3939_v47 = vpop.permute.xlu0 %3938 }
0x166e   :  { %6173 = vrsqrt.f32 %v3670_v9  ;;  %v3669_v11 = vadd.f32 1e-05, %v3665_v10  ;;  %v3944_v31 = vsel %vm176_vm3, %v3939_v47, 0 }
0x1670   :  { %6175 = vrsqrt.f32 %v3669_v11 }
0x167b   :  { %v6174_v15 = vpop.eup %6173 }
0x167c   :  { %v3674_v16 = vmul.f32 %v6174_v15, %v3668_v14 }
0x167d   :  { %v6176_v25 = vpop.eup %6175 }
0x167e   :  { %v3683_v19 = vmul.f32 %v5241_v12, %v3674_v16  ;;  %v3673_v13 = vmul.f32 %v6176_v25, %v3667_v17 }
0x1680   :  { %v3682_v20 = vmul.f32 %v5241_v12, %v3673_v13  ;;  %v7031_v22 = vadd.f32 %v5242_v18, %v3683_v19 }
0x1682   :  { %v7029_v21 = vadd.f32 %v5242_v18, %v3682_v20 }
0x1684   :  { %v3693_v23 = vpack.c.bf16 %v7031_v22, %v7029_v21 }
0x1686   :  { %5843 = vmatmul.mubr.msk.bf16.vlgmr.msra.gmra.mxu1 %vm127_vm2, %v3693_v23 }
0x1687   :  { %5855 = vmatpush3.bf16.xpose.msra.mxu1 %v3831_v24  ;;  %5856 = vmatprep.mubr.msk.bf16.mxu1 %vm6243_vm0, %v6242_v0 }
0x1688   :  { %5866 = vmatprep.subr.bf16.mxu1 %v6242_v0 }
0x1746   :  { %v3754_v27 = vpop.f32.mrf.mxu1 }
0x1747   :  { %v3755_v28 = vadd.f32 %v5243_v26, %v3754_v27 }
0x1748   :  { %v5844_v29 = vpop.f32.mrf.mxu1 }
0x1749   :  { %v3825_v32 = vpack.c.bf16 %v3755_v28, %v3755_v28 }
0x174a   :  { %v3757_v30 = vpop.f32.mrf.mxu1 }
0x174b   :  { %3936 = vrot.lane.b32.xlu1 %v3825_v32, %s6247_s29  ;;  %4047 = vrot.lane.b32.xlu0 %v3825_v32, %s6244_s2  ;;  %v3758_v34 = vadd.f32 %v5243_v26, %v3757_v30 }
0x174c   :  { %5857 = vmatmul.mubr.msk.bf16.vlgmr.msra.gmra.mxu1 %vm176_vm3, %v3825_v32  ;;  %v5845_v33 = vpop.f32.mrf.mxu1 }
0x174d   :  { %5867 = vmatpush3.bf16.xpose.msra.mxu1 %v3944_v31  ;;  %5868 = vmatprep.mubr.msk.bf16.mxu1 %vm6243_vm0, %v6242_v0  ;;  %v4284_v35 = vpack.c.bf16 %v3758_v34, %v3758_v34 }
0x174e   :  { %5878 = vmatprep.subr.bf16.mxu1 %v6242_v0 }
0x174f   :  { %4049 = vrot.lane.b32.xlu1 %v7017_v51, %s6244_s2  ;;  %4158 = vrot.lane.b32.xlu0 %v3825_v32, %s6250_s6 }
0x1753   :  { %4160 = vrot.lane.b32.xlu1 %v7017_v51, %s6250_s6  ;;  %4395 = vrot.lane.b32.xlu0 %v4284_v35, %s6247_s29 }
0x1757   :  { %4506 = vrot.lane.b32.xlu0 %v4284_v35, %s6244_s2  ;;  %4397 = vrot.lane.b32.xlu1 %v7059_v36, %s6247_s29 }
0x175b   :  { %4617 = vrot.lane.b32.xlu0 %v4284_v35, %s6250_s6  ;;  %4508 = vrot.lane.b32.xlu1 %v7059_v36, %s6244_s2 }
0x175f   :  { %4619 = vrot.lane.b32.xlu1 %v7059_v36, %s6250_s6 }
0x17bd   :  { %v3937_v37 = vpop.permute.xlu1 %3936  ;;  %v4048_v40 = vpop.permute.xlu0 %4047 }
0x17be   :  { %5869 = vmatmul.mubr.msk.bf16.vlgmr.msra.gmra.mxu1 %vm176_vm3, %v3937_v37 }
0x17bf   :  { %5880 = vmatprep.mubr.msk.bf16.mxu1 %vm6243_vm0, %v6242_v0 }
0x17c1   :  { %v4050_v38 = vpop.permute.xlu1 %4049  ;;  %v4159_v45 = vpop.permute.xlu0 %4158 }
0x17c2   :  { %v4055_v43 = vsel %vm176_vm3, %v4050_v38, 0 }
0x17c3   :  { %5879 = vmatpush3.bf16.xpose.msra.mxu1 %v4055_v43 }
0x17c4   :  { %5890 = vmatprep.subr.bf16.mxu1 %v6242_v0 }
0x17c5   :  { %v4161_v42 = vpop.permute.xlu1 %4160  ;;  %v4396_v50 = vpop.permute.xlu0 %4395 }
0x17c6   :  { %v4166_v44 = vsel %vm176_vm3, %v4161_v42, 0 }
0x17c9   :  { %v4398_v48 = vpop.permute.xlu1 %4397  ;;  %v4507_v41 = vpop.permute.xlu0 %4506 }
0x17ca   :  { %5881 = vmatmul.mubr.msk.bf16.vlgmr.msra.gmra.mxu1 %vm176_vm3, %v4048_v40  ;;  %v4403_v49 = vsel %vm176_vm3, %v4398_v48, 0 }
0x17cb   :  { %5891 = vmatpush3.bf16.xpose.msra.mxu1 %v4166_v44  ;;  %5892 = vmatprep.mubr.msk.bf16.mxu1 %vm6243_vm0, %v6242_v0 }
0x17cc   :  { %5902 = vmatprep.subr.bf16.mxu1 %v6242_v0 }
0x17cd   :  { %v4509_v39 = vpop.permute.xlu1 %4508  ;;  %v4618_v57 = vpop.permute.xlu0 %4617 }
0x17ce   :  { %v4514_v52 = vsel %vm176_vm3, %v4509_v39, 0 }
0x17d1   :  { %v4620_v54 = vpop.permute.xlu1 %4619 }
0x17d2   :  { %5893 = vmatmul.mubr.msk.bf16.vlgmr.msra.gmra.mxu1 %vm176_vm3, %v4159_v45  ;;  %v4625_v55 = vsel %vm176_vm3, %v4620_v54, 0 }
0x17d3   :  { %5903 = vmatpush3.bf16.xpose.msra.mxu1 %v4290_v46  ;;  %5904 = vmatprep.mubr.msk.bf16.mxu1 %vm6243_vm0, %v6242_v0 }
0x17d4   :  { %5914 = vmatprep.subr.bf16.mxu1 %v6242_v0 }
0x17da   :  { %5905 = vmatmul.mubr.msk.bf16.vlgmr.msra.gmra.mxu1 %vm176_vm3, %v4284_v35 }
0x17db   :  { %5915 = vmatpush3.bf16.xpose.msra.mxu1 %v4403_v49  ;;  %5916 = vmatprep.mubr.msk.bf16.mxu1 %vm6243_vm0, %v6242_v0 }
0x17dc   :  { %5926 = vmatprep.subr.bf16.mxu1 %v6242_v0 }
0x17e2   :  { %5917 = vmatmul.mubr.msk.bf16.vlgmr.msra.gmra.mxu1 %vm176_vm3, %v4396_v50 }
0x17e3   :  { %5927 = vmatpush3.bf16.xpose.msra.mxu1 %v4514_v52  ;;  %5928 = vmatprep.mubr.msk.bf16.mxu1 %vm6243_vm0, %v6242_v0 }
0x17e4   :  { %5938 = vmatprep.subr.bf16.mxu1 %v6242_v0 }
0x17ea   :  { %5929 = vmatmul.mubr.msk.bf16.vlgmr.msra.gmra.mxu1 %vm176_vm3, %v4507_v41 }
0x17eb   :  { %5939 = vmatpush3.bf16.xpose.msra.mxu1 %v4625_v55  ;;  %5940 = vmatprep.mubr.msk.bf16.mxu1 %vm6243_vm0, %v6242_v0 }
0x17ec   :  { %5950 = vmatprep.subr.bf16.mxu1 %v6242_v0 }
0x17f2   :  { %5941 = vmatmul.mubr.msk.bf16.vlgmr.msra.gmra.mxu1 %vm176_vm3, %v4618_v57 }
0x17f3   :  { %5954 = vmatprep.mubr.msk.bf16.mxu1 %vm6243_vm0, %v6242_v0 }
0x180c   :  { %v3867_v58 = vpop.f32.mrf.mxu1 }
0x180d   :  { %v3873_v59 = vmul.f32 0.35355338, %v3867_v58 }
0x180e   :  { %v5858_v60 = vpop.f32.mrf.mxu1 }
0x180f   :  { %v3874_v61 = vsel %vm176_vm3, %v3873_v59, -inf }
0x1810   :  { %v3870_v63 = vpop.f32.mrf.mxu1  ;;  %3875 = vmax.xlane.f32.xlu1 %v3874_v61 }
0x1812   :  { %v5859_v1 = vpop.f32.mrf.mxu1 }
0x187e   :  { %v3980_v2 = vpop.f32.mrf.mxu1 }
0x187f   :  { %v3986_v62 = vmul.f32 0.35355338, %v3980_v2 }
0x1880   :  { %v5870_v53 = vpop.f32.mrf.mxu1 }
0x1881   :  { %v3987_v3 = vsel %vm176_vm3, %v3986_v62, -inf }
0x1882   :  { %3988 = vmax.xlane.f32.xlu0 %v3987_v3  ;;  %v3983_v4 = vpop.f32.mrf.mxu1 }
0x1884   :  { %v5871_v5 = vpop.f32.mrf.mxu1 }
0x188a   :  { %v4091_v6 = vpop.f32.mrf.mxu1 }
0x188b   :  { %v4097_v7 = vmul.f32 0.35355338, %v4091_v6 }
0x188c   :  { %v5882_v56 = vpop.f32.mrf.mxu1 }
0x188d   :  { %v4098_v8 = vsel %vm176_vm3, %v4097_v7, -inf }
0x188e   :  { %4099 = vmax.xlane.f32.xlu0 %v4098_v8  ;;  %v4094_v9 = vpop.f32.mrf.mxu1 }
0x1890   :  { %v5883_v10 = vpop.f32.mrf.mxu1 }
0x1892   :  { %v4202_v11 = vpop.f32.mrf.mxu1 }
0x1893   :  { %v4208_v14 = vmul.f32 0.35355338, %v4202_v11 }
0x1894   :  { %v5894_v15 = vpop.f32.mrf.mxu1 }
0x1895   :  { %v4209_v12 = vsel %vm176_vm3, %v4208_v14, -inf }
0x1896   :  { %v4205_v17 = vpop.f32.mrf.mxu1  ;;  %4210 = vmax.xlane.f32.xlu1 %v4209_v12 }
0x1898   :  { %v5895_v16 = vpop.f32.mrf.mxu1 }
0x1899   :  { %v3876_v40 = vpop.xlane.xlu1 %3875 }
0x189a   :  { %v4326_v25 = vpop.f32.mrf.mxu1  ;;  %v3877_v44 = vsub.f32 %v3873_v59, %v3876_v40 }
0x189b   :  { %v4332_v19 = vmul.f32 0.35355338, %v4326_v25 }
0x189c   :  { %v5906_v13 = vpop.f32.mrf.mxu1  ;;  %v3878_v45 = vmul.f32 1.442695, %v3877_v44 }
0x189d   :  { %v4333_v18 = vsel %vm176_vm3, %v4332_v19, -inf }
0x189e   :  { %4334 = vmax.xlane.f32.xlu0 %v4333_v18  ;;  %v4329_v20 = vpop.f32.mrf.mxu1  ;;  %6177 = vpow2.f32 %v3878_v45 }
0x18a0   :  { %v5907_v23 = vpop.f32.mrf.mxu1 }
0x18a2   :  { %v4439_v24 = vpop.f32.mrf.mxu1 }
0x18a3   :  { %v7108_v26 = vmul.f32 0.35355338, %v4439_v24 }
0x18a4   :  { %v5918_v27 = vpop.f32.mrf.mxu1 }
0x18a5   :  { %v4446_v28 = vsel %vm176_vm3, %v7108_v26, -inf }
0x18a6   :  { %4447 = vmax.xlane.f32.xlu1 %v4446_v28  ;;  %v4442_v29 = vpop.f32.mrf.mxu1 }
0x18a8   :  { %v5919_v47 = vpop.f32.mrf.mxu1 }
0x18aa   :  { %v4550_v32 = vpop.f32.mrf.mxu1 }
0x18ab   :  { %v4556_v30 = vmul.f32 0.35355338, %v4550_v32  ;;  %v7118_v49 = vpop.eup %6177 }
0x18ac   :  { %v5930_v31 = vpop.f32.mrf.mxu1  ;;  %v3880_v39 = vsel %vm176_vm3, %v7118_v49, 0.0 }
0x18ad   :  { %v4557_v33 = vsel %vm176_vm3, %v4556_v30, -inf }
0x18ae   :  { %4558 = vmax.xlane.f32.xlu0 %v4557_v33  ;;  %v4553_v34 = vpop.f32.mrf.mxu1 }
0x18b0   :  { %v5931_v35 = vpop.f32.mrf.mxu1 }
0x18b2   :  { %v4661_v37 = vpop.f32.mrf.mxu1 }
0x18b3   :  { %v4667_v46 = vmul.f32 0.35355338, %v4661_v37 }
0x18b4   :  { %v5942_v38 = vpop.f32.mrf.mxu1 }
0x18b5   :  { %v4668_v48 = vsel %vm176_vm3, %v4667_v46, -inf }
0x18b6   :  { %v4664_v43 = vpop.f32.mrf.mxu1 }
0x18b7   :  { %3999 = vrot.lane.b32.xlu1 %v7017_v51, %s6245_s27 }
0x18b8   :  { %v5943_v42 = vpop.f32.mrf.mxu1 }
0x18c4   :  { %3887 = vrot.lane.b32.xlu0 %v7017_v51, %s6246_s28 }
0x18db   :  { %4669 = vmax.xlane.f32.xlu1 %v4668_v48 }
0x18e3   :  { %3881 = vadd.xlane.f32.xlu0 %v3880_v39 }
0x18ec   :  { %4110 = vrot.lane.b32.xlu1 %v7017_v51, %s6248_s30 }
0x190b   :  { %v3989_v50 = vpop.xlane.xlu0 %3988 }
0x190c   :  { %v3990_v52 = vsub.f32 %v3986_v62, %v3989_v50 }
0x190e   :  { %v3991_v54 = vmul.f32 1.442695, %v3990_v52 }
0x1910   :  { %6179 = vpow2.f32 %v3991_v54 }
0x1917   :  { %v4100_v41 = vpop.xlane.xlu0 %4099 }
0x1918   :  { %v4101_v55 = vsub.f32 %v4097_v7, %v4100_v41 }
0x191a   :  { %v4102_v57 = vmul.f32 1.442695, %v4101_v55 }
0x191c   :  { %6181 = vpow2.f32 %v4102_v57 }
0x191d   :  { %v7124_v58 = vpop.eup %6179 }
0x191e   :  { %v3993_v59 = vsel %vm176_vm3, %v7124_v58, 0.0 }
0x191f   :  { %v4211_v60 = vpop.xlane.xlu1 %4210  ;;  %3994 = vadd.xlane.f32.xlu1 %v3993_v59 }
0x1920   :  { %v4212_v61 = vsub.f32 %v4208_v14, %v4211_v60 }
0x1922   :  { %v4213_v63 = vmul.f32 1.442695, %v4212_v61 }
0x1924   :  { %6183 = vpow2.f32 %v4213_v63 }
0x1927   :  { %v4335_v1 = vpop.xlane.xlu0 %4334 }
0x1928   :  { %v4336_v2 = vsub.f32 %v4332_v19, %v4335_v1 }
0x1929   :  { %v7128_v53 = vpop.eup %6181 }
0x192a   :  { %v4337_v62 = vmul.f32 1.442695, %v4336_v2  ;;  %v4104_v3 = vsel %vm176_vm3, %v7128_v53, 0.0 }
0x192b   :  { %4105 = vadd.xlane.f32.xlu0 %v4104_v3 }
0x192c   :  { %6185 = vpow2.f32 %v4337_v62 }
0x192f   :  { %v4448_v14 = vpop.xlane.xlu1 %4447 }
0x1930   :  { %v4449_v15 = vsub.f32 %v7108_v26, %v4448_v14 }
0x1931   :  { %v7132_v4 = vpop.eup %6183 }
0x1932   :  { %v4215_v5 = vsel %vm176_vm3, %v7132_v4, 0.0  ;;  %v4450_v16 = vmul.f32 1.442695, %v4449_v15 }
0x1933   :  { %4216 = vadd.xlane.f32.xlu1 %v4215_v5  ;;  %v4000_v13 = vpop.permute.xlu1 %3999 }
0x1934   :  { %v4005_v47 = vsel %vm241_vm4, %v4000_v13, 0 }
0x1937   :  { %v4559_v6 = vpop.xlane.xlu0 %4558 }
0x1938   :  { %v4560_v7 = vsub.f32 %v4556_v30, %v4559_v6 }
0x1939   :  { %v7136_v56 = vpop.eup %6185 }
0x193a   :  { %v4561_v8 = vmul.f32 1.442695, %v4560_v7  ;;  %v4339_v9 = vsel %vm176_vm3, %v7136_v56, 0.0 }
0x193b   :  { %v3888_v10 = vpop.permute.xlu0 %3887  ;;  %4340 = vadd.xlane.f32.xlu1 %v4339_v9 }
0x193c   :  { %6187 = vpow2.f32 %v4561_v8  ;;  %v3893_v11 = vsel %vm241_vm4, %v3888_v10, 0 }
0x193d   :  { %5861 = vmatpush3.bf16.msra.mxu0 %v3893_v11  ;;  %6189 = vpow2.f32 %v4450_v16 }
0x193e   :  { %5872 = vmatprep.subr.bf16.mxu0 %v6242_v0 }
0x1941   :  { %4221 = vrot.lane.b32.xlu0 %v7017_v51, %s6249_s5 }
0x1949   :  { %v7145_v12 = vpop.eup %6187 }
0x194a   :  { %v4563_v17 = vsel %vm176_vm3, %v7145_v12, 0.0  ;;  %v7149_v25 = vpop.eup %6189 }
0x194b   :  { %4564 = vadd.xlane.f32.xlu1 %v4563_v17  ;;  %v4452_v19 = vsel %vm176_vm3, %v7149_v25, 0.0 }
0x1960   :  { %4453 = vadd.xlane.f32.xlu0 %v4452_v19 }
0x1964   :  { %v4670_v18 = vpop.xlane.xlu1 %4669 }
0x1965   :  { %v4671_v51 = vsub.f32 %v4667_v46, %v4670_v18 }
0x1967   :  { %v4672_v20 = vmul.f32 1.442695, %v4671_v51 }
0x1968   :  { %v4111_v32 = vpop.permute.xlu1 %4110 }
0x1969   :  { %6191 = vpow2.f32 %v4672_v20  ;;  %v4116_v37 = vsel %vm241_vm4, %v4111_v32, 0  ;;  %v4746_v32 = vld [vmem:[#allocation2 + $0xb0] sm:$0xf] }
0x196c   :  { %v3882_v23 = vpop.xlane.xlu0 %3881 }
0x196d   :  { %6193 = vrcp.f32 %v3882_v23 }
0x1976   :  { %v7153_v24 = vpop.eup %6191  ;;  %4458 = vrot.lane.b32.xlu0 %v7059_v36, %s6245_s27 }
0x1977   :  { %v4674_v26 = vsel %vm176_vm3, %v7153_v24, 0.0 }
0x1978   :  { %4675 = vadd.xlane.f32.xlu1 %v4674_v26 }
0x197a   :  { %v6194_v27 = vpop.eup %6193  ;;  %4569 = vrot.lane.b32.xlu0 %v7059_v36, %s6248_s30 }
0x197b   :  { %v3884_v28 = vmul.f32 %v6194_v27, %v7118_v49 }
0x197d   :  { %v3885_v29 = vpack.c.bf16 %v3884_v28, %v3884_v28 }
0x197e   :  { %4680 = vrot.lane.b32.xlu0 %v7059_v36, %s6249_s5 }
0x197f   :  { %5863 = vmatmul.mubr.msk.bf16.vlgmr.msra.gmra.mxu0 %vm176_vm3, %v3885_v29 }
0x1980   :  { %5873 = vmatpush3.bf16.msra.mxu0 %v4005_v47  ;;  %5874 = vmatprep.mubr.msk.bf16.mxu0 %vm6243_vm0, %v6242_v0 }
0x1981   :  { %5884 = vmatprep.subr.bf16.mxu0 %v6242_v0 }
0x1989   :  { %4346 = vrot.lane.b32.xlu1 %v7059_v36, %s6246_s28 }
0x19a8   :  { %v3995_v30 = vpop.xlane.xlu1 %3994 }
0x19a9   :  { %6195 = vrcp.f32 %v3995_v30  ;;  %v4747_v30 = vld [vmem:[#allocation2 + $0xf0] sm:$0xf] }
0x19b4   :  { %v4106_v31 = vpop.xlane.xlu0 %4105 }
0x19b5   :  { %6197 = vrcp.f32 %v4106_v31 }
0x19b6   :  { %v6196_v33 = vpop.eup %6195 }
0x19b7   :  { %v3997_v34 = vmul.f32 %v6196_v33, %v7124_v58  ;;  %v5269_v33 = vcombine.low %v4746_v32, %v4747_v30 }
0x19b8   :  { %v4222_v42 = vpop.permute.xlu0 %4221 }
0x19b9   :  { %v3998_v35 = vpack.c.bf16 %v3997_v34, %v3997_v34  ;;  %v4227_v44 = vsel %vm241_vm4, %v4222_v42, 0  ;;  %5951 = vmatpush3.bf16.msra.mxu1 %v5269_v33 }
0x19ba   :  { %5952 = vmatprep.subr.bf16.mxu1 %v6242_v0 }
0x19bb   :  { %5875 = vmatmul.mubr.msk.bf16.vlgmr.msra.gmra.mxu0 %vm176_vm3, %v3998_v35 }
0x19bc   :  { %5885 = vmatpush3.bf16.msra.mxu0 %v4116_v37  ;;  %v4217_v38 = vpop.xlane.xlu1 %4216  ;;  %5886 = vmatprep.mubr.msk.bf16.mxu0 %vm6243_vm0, %v6242_v0 }
0x19bd   :  { %6199 = vrcp.f32 %v4217_v38  ;;  %5896 = vmatprep.subr.bf16.mxu0 %v6242_v0  ;;  %v4744_v38 = vld [vmem:[#allocation2 + $0x30] sm:$0xf] }
0x19c2   :  { %v6198_v36 = vpop.eup %6197 }
0x19c3   :  { %v4108_v43 = vmul.f32 %v6198_v36, %v7128_v53  ;;  %v4745_v36 = vld [vmem:[#allocation2 + $0x70] sm:$0xf] }
0x19c4   :  { %v4341_v49 = vpop.xlane.xlu1 %4340  ;;  %v5268_v42 = vcombine.low %v4744_v38, %v4745_v36 }
0x19c5   :  { %v4109_v40 = vpack.c.bf16 %v4108_v43, %v4108_v43  ;;  %6201 = vrcp.f32 %v4341_v49 }
0x19c6   :  { %5953 = vmatpush3.bf16.msra.mxu1 %v5268_v42 }
0x19c7   :  { %5887 = vmatmul.mubr.msk.bf16.vlgmr.msra.gmra.mxu0 %vm176_vm3, %v4109_v40  ;;  %5966 = vmatprep.subr.bf16.mxu1 %v6242_v0 }
0x19c8   :  { %5897 = vmatpush3.bf16.msra.mxu0 %v4227_v44  ;;  %5898 = vmatprep.mubr.msk.bf16.mxu0 %vm6243_vm0, %v6242_v0 }
0x19c9   :  { %5908 = vmatprep.subr.bf16.mxu0 %v6242_v0 }
0x19ca   :  { %v6200_v45 = vpop.eup %6199 }
0x19cb   :  { %v4219_v46 = vmul.f32 %v6200_v45, %v7132_v4 }
0x19cd   :  { %v4220_v48 = vpack.c.bf16 %v4219_v46, %v4219_v46 }
0x19cf   :  { %5899 = vmatmul.mubr.msk.bf16.vlgmr.msra.gmra.mxu0 %vm176_vm3, %v4220_v48 }
0x19d0   :  { %5910 = vmatprep.mubr.msk.bf16.mxu0 %vm6243_vm0, %v6242_v0 }
0x19d2   :  { %v6202_v52 = vpop.eup %6201 }
0x19d3   :  { %v4343_v41 = vmul.f32 %v6202_v52, %v7136_v56 }
0x19d4   :  { %v4565_v50 = vpop.xlane.xlu1 %4564 }
0x19d5   :  { %v4344_v59 = vpack.c.bf16 %v4343_v41, %v4343_v41 }
0x19e9   :  { %v4454_v39 = vpop.xlane.xlu0 %4453 }
0x19ea   :  { %6203 = vrcp.f32 %v4454_v39 }
0x19eb   :  { %6205 = vrcp.f32 %v4565_v50 }
0x19ed   :  { %v4459_v58 = vpop.permute.xlu0 %4458 }
0x19ee   :  { %v4464_v61 = vsel %vm241_vm4, %v4459_v58, 0 }
0x19f1   :  { %v4570_v1 = vpop.permute.xlu0 %4569 }
0x19f2   :  { %v4575_v62 = vsel %vm241_vm4, %v4570_v1, 0 }
0x19f5   :  { %v4681_v4 = vpop.permute.xlu0 %4680 }
0x19f6   :  { %v4686_v7 = vsel %vm241_vm4, %v4681_v4, 0 }
0x19f7   :  { %v6204_v60 = vpop.eup %6203 }
0x19f8   :  { %v4456_v63 = vmul.f32 %v6204_v60, %v7149_v25  ;;  %v6206_v53 = vpop.eup %6205 }
0x19f9   :  { %v4567_v3 = vmul.f32 %v6206_v53, %v7145_v12 }
0x19fa   :  { %v4457_v2 = vpack.c.bf16 %v4456_v63, %v4456_v63 }
0x19fb   :  { %v4568_v5 = vpack.c.bf16 %v4567_v3, %v4567_v3 }
0x1a01   :  { %v4676_v54 = vpop.xlane.xlu1 %4675 }
0x1a02   :  { %6207 = vrcp.f32 %v4676_v54 }
0x1a05   :  { %v4347_v55 = vpop.permute.xlu1 %4346 }
0x1a06   :  { %v4352_v57 = vsel %vm241_vm4, %v4347_v55, 0 }
0x1a07   :  { %5909 = vmatpush3.bf16.msra.mxu0 %v4352_v57 }
0x1a08   :  { %5920 = vmatprep.subr.bf16.mxu0 %v6242_v0 }
0x1a0a   :  { %5911 = vmatmul.mubr.msk.bf16.vlgmr.msra.gmra.mxu0 %vm176_vm3, %v4344_v59 }
0x1a0b   :  { %5921 = vmatpush3.bf16.msra.mxu0 %v4464_v61  ;;  %5922 = vmatprep.mubr.msk.bf16.mxu0 %vm6243_vm0, %v6242_v0 }
0x1a0c   :  { %5932 = vmatprep.subr.bf16.mxu0 %v6242_v0 }
0x1a0f   :  { %v6208_v6 = vpop.eup %6207 }
0x1a10   :  { %v4678_v56 = vmul.f32 %v6208_v6, %v7153_v24  ;;  %v5267_v6 = vld [vmem:[%s7276_s3 + $0x12] ss:$0 sm:$0xff] }
0x1a12   :  { %5923 = vmatmul.mubr.msk.bf16.vlgmr.msra.gmra.mxu0 %vm176_vm3, %v4457_v2  ;;  %v4679_v8 = vpack.c.bf16 %v4678_v56, %v4678_v56 }
0x1a13   :  { %5933 = vmatpush3.bf16.msra.mxu0 %v4575_v62  ;;  %5934 = vmatprep.mubr.msk.bf16.mxu0 %vm6243_vm0, %v6242_v0 }
0x1a14   :  { %5944 = vmatprep.subr.bf16.mxu0 %v6242_v0 }
0x1a1a   :  { %5935 = vmatmul.mubr.msk.bf16.vlgmr.msra.gmra.mxu0 %vm176_vm3, %v4568_v5 }
0x1a1b   :  { %5945 = vmatpush3.bf16.msra.mxu0 %v4686_v7  ;;  %5946 = vmatprep.mubr.msk.bf16.mxu0 %vm6243_vm0, %v6242_v0 }
0x1a1c   :  { %5958 = vmatprep.subr.bf16.mxu0 %v6242_v0 }
0x1a22   :  { %5947 = vmatmul.mubr.msk.bf16.vlgmr.msra.gmra.mxu0 %vm176_vm3, %v4679_v8 }
0x1a23   :  { %5962 = vmatprep.mubr.msk.bf16.mxu0 %vm6243_vm0, %v6242_v0 }
0x1a3f   :  { %v3929_v9 = vpop.f32.mrf.mxu0 }
0x1a41   :  { %v5864_v10 = vpop.f32.mrf.mxu0 }
0x1a43   :  { %v3932_v11 = vpop.f32.mrf.mxu0 }
0x1a45   :  { %v5865_v14 = vpop.f32.mrf.mxu0 }
0x1a7b   :  { %v4041_v15 = vpop.f32.mrf.mxu0 }
0x1a7d   :  { %v5876_v12 = vpop.f32.mrf.mxu0 }
0x1a7f   :  { %v4044_v17 = vpop.f32.mrf.mxu0 }
0x1a81   :  { %v5877_v16 = vpop.f32.mrf.mxu0 }
0x1a87   :  { %v4152_v25 = vpop.f32.mrf.mxu0 }
0x1a89   :  { %v5888_v19 = vpop.f32.mrf.mxu0 }
0x1a8b   :  { %v4155_v13 = vpop.f32.mrf.mxu0 }
0x1a8d   :  { %v5889_v18 = vpop.f32.mrf.mxu0 }
0x1a8e   :  { %v4865_v18 = vld [vmem:[#allocation2 + $0xf4] sm:$0xf] }
0x1a8f   :  { %v4263_v51 = vpop.f32.mrf.mxu0 }
0x1a91   :  { %v5900_v20 = vpop.f32.mrf.mxu0 }
0x1a92   :  { %v4862_v20 = vld [vmem:[#allocation2 + $0x34] sm:$0xf] }
0x1a93   :  { %v4266_v23 = vpop.f32.mrf.mxu0 }
0x1a94   :  { %v4863_v23 = vld [vmem:[#allocation2 + $0x74] sm:$0xf] }
0x1a95   :  { %v5901_v24 = vpop.f32.mrf.mxu0 }
0x1a96   :  { %v5274_v24 = vcombine.low %v4862_v20, %v4863_v23 }
0x1aca   :  { %v4388_v26 = vpop.f32.mrf.mxu0 }
0x1acc   :  { %v5912_v27 = vpop.f32.mrf.mxu0 }
0x1ace   :  { %v4391_v28 = vpop.f32.mrf.mxu0 }
0x1ad0   :  { %v5913_v29 = vpop.f32.mrf.mxu0 }
0x1ad2   :  { %v4500_v47 = vpop.f32.mrf.mxu0 }
0x1ad3   :  { %v6050_v31 = vpack.i.bf16 %v4500_v47, %v4041_v15 }
0x1ad4   :  { %v5924_v34 = vpop.f32.mrf.mxu0 }
0x1ad5   :  { %6051 = vrot.lane.b32.xlu1 %v6050_v31, %s6254_s10 }
0x1ad6   :  { %v4503_v35 = vpop.f32.mrf.mxu0 }
0x1ad8   :  { %v5925_v37 = vpop.f32.mrf.mxu0 }
0x1ada   :  { %v4611_v43 = vpop.f32.mrf.mxu0 }
0x1adb   :  { %v6055_v40 = vpack.i.bf16 %v4611_v43, %v4152_v25 }
0x1adc   :  { %v5936_v44 = vpop.f32.mrf.mxu0 }
0x1add   :  { %6056 = vrot.lane.b32.xlu0 %v6055_v40, %s6255_s11 }
0x1ade   :  { %v4614_v45 = vpop.f32.mrf.mxu0 }
0x1ae0   :  { %v5937_v46 = vpop.f32.mrf.mxu0 }
0x1ae1   :  { %v5271_v46 = vld [vmem:[%s7276_s3 + $0x17] ss:$0 sm:$0xff] }
0x1ae2   :  { %v4722_v48 = vpop.f32.mrf.mxu0 }
0x1ae3   :  { %v6060_v49 = vpack.i.bf16 %v4722_v48, %v4263_v51 }
0x1ae4   :  { %v5948_v39 = vpop.f32.mrf.mxu0 }
0x1ae5   :  { %6061 = vrot.lane.b32.xlu1 %v6060_v49, %s6256_s12 }
0x1ae6   :  { %v4725_v50 = vpop.f32.mrf.mxu0 }
0x1ae8   :  { %v5949_v52 = vpop.f32.mrf.mxu0 }
0x1ae9   :  { %v5272_v52 = vld [vmem:[%s7276_s3 + $0x18] ss:$0 sm:$0xff] }
0x1b47   :  { %v6052_v54 = vpop.permute.xlu1 %6051 }
0x1b48   :  { %v6054_v55 = vunpack.i.h.bf16 %v6052_v54  ;;  %v6053_v57 = vunpack.i.l.bf16 %v6052_v54 }
0x1b4a   :  { %v4740_v61 = vsel %vm176_vm3, %v4388_v26, %v6054_v55  ;;  %v4281_v63 = vsel %vm176_vm3, %v3929_v9, %v6053_v57  ;;  %v4939_v26 = vld [vmem:[#allocation2 + $0x1f8] sm:$0xf] }
0x1b4f   :  { %v6057_v41 = vpop.permute.xlu0 %6056 }
0x1b50   :  { %v6059_v58 = vunpack.i.h.bf16 %v6057_v41  ;;  %v6058_v59 = vunpack.i.l.bf16 %v6057_v41 }
0x1b52   :  { %v4741_v53 = vsel %vm58_vm1, %v4740_v61, %v6059_v58  ;;  %v4282_v62 = vsel %vm58_vm1, %v4281_v63, %v6058_v59  ;;  %v4936_v58 = vld [vmem:[#allocation2 + $0x138] sm:$0xf] }
0x1b53   :  { %v4937_v59 = vld [vmem:[#allocation2 + $0x178] sm:$0xf] }
0x1b54   :  { %v4934_v61 = vld [vmem:[#allocation2 + $0xb8] sm:$0xf] }
0x1b55   :  { %v4935_v63 = vld [vmem:[#allocation2 + $0xf8] sm:$0xf] }
0x1b57   :  { %v6062_v60 = vpop.permute.xlu1 %6061 }
0x1b58   :  { %v6064_v1 = vunpack.i.h.bf16 %v6062_v60  ;;  %v6063_v2 = vunpack.i.l.bf16 %v6062_v60  ;;  %v5280_v60 = vcombine.low %v4936_v58, %v4937_v59 }
0x1b5a   :  { %v4742_v3 = vsel %vm632_vm5, %v4741_v53, %v6064_v1  ;;  %v4283_v4 = vsel %vm632_vm5, %v4282_v62, %v6063_v2  ;;  %v5279_v1 = vcombine.low %v4934_v61, %v4935_v63  ;;  %v4932_v2 = vld [vmem:[#allocation2 + $0x38] sm:$0xf] }
0x1b5b   :  { %v4743_v5 = vpack.c.bf16 %v4742_v3, %v4283_v4  ;;  %v4933_v53 = vld [vmem:[#allocation2 + $0x78] sm:$0xf]  ;;  %v5273_v3 = vld [vmem:[%s7276_s3 + $0x13] ss:$0 sm:$0xff] }
0x1b5c   :  { %v5278_v62 = vcombine.low %v4932_v2, %v4933_v53  ;;  %v5285_v61 = vld [vmem:[%s7276_s3 + $0x1b] ss:$0 sm:$0xff] }
0x1b5d   :  { %5955 = vmatmul.mubr.msk.bf16.vlgmr.msra.gmra.mxu1 %vm127_vm2, %v4743_v5 }
0x1b5e   :  { %5974 = vmatprep.mubr.msk.bf16.mxu1 %vm6243_vm0, %v6242_v0 }
0x1c1d   :  { %v4804_v7 = vpop.f32.mrf.mxu1 }
0x1c1e   :  { %v4805_v56 = vadd.f32 %v5267_v6, %v4804_v7 }
0x1c1f   :  { %v5956_v8 = vpop.f32.mrf.mxu1 }
0x1c20   :  { %v4811_v9 = vadd.f32 %v4805_v56, %v7029_v21  ;;  %v4864_v21 = vld [vmem:[#allocation2 + $0xb4] sm:$0xf] }
0x1c21   :  { %v4807_v10 = vpop.f32.mrf.mxu1  ;;  %v5275_v51 = vcombine.low %v4864_v21, %v4865_v18 }
0x1c22   :  { %v4808_v11 = vadd.f32 %v5267_v6, %v4807_v10  ;;  %v4813_v14 = vsel %vm127_vm2, %v4811_v9, 0.0  ;;  %v4821_v15 = vmul.f32 %v4811_v9, %v4811_v9 }
0x1c23   :  { %4814 = vadd.xlane.f32.xlu0 %v4813_v14  ;;  %v5957_v12 = vpop.f32.mrf.mxu1  ;;  %5959 = vmatpush3.bf16.msra.mxu0 %v5275_v51  ;;  %v5277_v14 = vld [vmem:[%s7276_s3 + $0x14] ss:$0 sm:$0xff] }
0x1c24   :  { %v4812_v17 = vadd.f32 %v4808_v11, %v7031_v22  ;;  %v4823_v16 = vsel %vm127_vm2, %v4821_v15, 0.0  ;;  %5960 = vmatprep.subr.bf16.mxu0 %v6242_v0  ;;  %v4938_v22 = vld [vmem:[#allocation2 + $0x1b8] sm:$0xf] }
0x1c25   :  { %v5281_v27 = vcombine.low %v4938_v22, %v4939_v26  ;;  %v5068_v26 = vld [vmem:[#allocation2 + $0xbc] sm:$0xf] }
0x1c26   :  { %v4816_v25 = vsel %vm127_vm2, %v4812_v17, 0.0  ;;  %v4822_v19 = vmul.f32 %v4812_v17, %v4812_v17 }
0x1c27   :  { %4824 = vadd.xlane.f32.xlu0 %v4823_v16  ;;  %4817 = vadd.xlane.f32.xlu1 %v4816_v25 }
0x1c28   :  { %v4826_v13 = vsel %vm127_vm2, %v4822_v19, 0.0  ;;  %5961 = vmatpush3.bf16.msra.mxu0 %v5274_v24  ;;  %5967 = vmatpush3.bf16.msra.mxu1 %v5281_v27  ;;  %v5069_v27 = vld [vmem:[#allocation2 + $0xfc] sm:$0xf] }
0x1c29   :  { %5978 = vmatprep.subr.bf16.mxu0 %v6242_v0  ;;  %5968 = vmatprep.subr.bf16.mxu1 %v6242_v0 }
0x1c2b   :  { %4827 = vadd.xlane.f32.xlu0 %v4826_v13 }
0x1c2c   :  { %5969 = vmatpush3.bf16.msra.mxu1 %v5280_v60 }
0x1c2d   :  { %5970 = vmatprep.subr.bf16.mxu1 %v6242_v0 }
0x1c30   :  { %5971 = vmatpush3.bf16.msra.mxu1 %v5279_v1 }
0x1c31   :  { %5972 = vmatprep.subr.bf16.mxu1 %v6242_v0 }
0x1c34   :  { %5973 = vmatpush3.bf16.msra.mxu1 %v5278_v62 }
0x1cac   :  { %v4815_v28 = vpop.xlane.xlu0 %4814 }
0x1cad   :  { %v4819_v29 = vmul.f32 0.03125, %v4815_v28  ;;  %v5287_v28 = vcombine.low %v5068_v26, %v5069_v27 }
0x1caf   :  { %v4831_v30 = vmul.f32 %v4819_v29, %v4819_v29  ;;  %v4835_v40 = vsub.f32 %v4811_v9, %v4819_v29  ;;  %v5066_v29 = vld [vmem:[#allocation2 + $0x3c] sm:$0xf] }
0x1cb0   :  { %v4825_v47 = vpop.xlane.xlu0 %4824  ;;  %v4818_v32 = vpop.xlane.xlu1 %4817 }
0x1cb1   :  { %v4829_v31 = vmul.f32 0.03125, %v4825_v47  ;;  %v4820_v33 = vmul.f32 0.03125, %v4818_v32  ;;  %v5067_v47 = vld [vmem:[#allocation2 + $0x7c] sm:$0xf] }
0x1cb2   :  { %v5286_v32 = vcombine.low %v5066_v29, %v5067_v47 }
0x1cb3   :  { %v4833_v34 = vsub.f32 %v4829_v31, %v4831_v30  ;;  %v4832_v38 = vmul.f32 %v4820_v33, %v4820_v33  ;;  %v4836_v48 = vsub.f32 %v4812_v17, %v4820_v33 }
0x1cb4   :  { %v4828_v35 = vpop.xlane.xlu0 %4827 }
0x1cb5   :  { %v4837_v37 = vadd.f32 1e-05, %v4833_v34  ;;  %v4830_v36 = vmul.f32 0.03125, %v4828_v35 }
0x1cb7   :  { %6209 = vrsqrt.f32 %v4837_v37  ;;  %v4834_v43 = vsub.f32 %v4830_v36, %v4832_v38 }
0x1cb9   :  { %v4838_v42 = vadd.f32 1e-05, %v4834_v43 }
0x1cbb   :  { %6211 = vrsqrt.f32 %v4838_v42 }
0x1cc4   :  { %v6210_v44 = vpop.eup %6209 }
0x1cc5   :  { %v4841_v45 = vmul.f32 %v6210_v44, %v4835_v40 }
0x1cc7   :  { %v4850_v39 = vmul.f32 %v5271_v46, %v4841_v45 }
0x1cc8   :  { %v6212_v49 = vpop.eup %6211 }
0x1cc9   :  { %v4842_v50 = vmul.f32 %v6212_v49, %v4836_v48  ;;  %v4859_v41 = vadd.f32 %v5272_v52, %v4850_v39  ;;  %v5283_v39 = vld [vmem:[%s7276_s3 + $0x19] ss:$0 sm:$0xff] }
0x1ccb   :  { %v4851_v54 = vmul.f32 %v5271_v46, %v4842_v50 }
0x1ccd   :  { %v4860_v55 = vadd.f32 %v5272_v52, %v4851_v54 }
0x1ccf   :  { %v4861_v57 = vpack.c.bf16 %v4860_v55, %v4859_v41 }
0x1cd1   :  { %5963 = vmatmul.mubr.msk.bf16.vlgmr.msra.gmra.mxu0 %vm127_vm2, %v4861_v57 }
0x1cd2   :  { %5982 = vmatprep.mubr.msk.bf16.mxu0 %vm6243_vm0, %v6242_v0  ;;  %5979 = vmatpush3.bf16.msra.mxu0 %v5287_v28 }
0x1cd3   :  { %5980 = vmatprep.subr.bf16.mxu0 %v6242_v0 }
0x1cd6   :  { %5981 = vmatpush3.bf16.msra.mxu0 %v5286_v32 }
0x1d91   :  { %v4922_v4 = vpop.f32.mrf.mxu0 }
0x1d92   :  { %v4923_v6 = vadd.f32 %v5273_v3, %v4922_v4 }
0x1d93   :  { %v5964_v5 = vpop.f32.mrf.mxu0 }
0x1d94   :  { %v4929_v9 = vmax.f32 %v4923_v6, 0.0 }
0x1d95   :  { %v4925_v7 = vpop.f32.mrf.mxu0 }
0x1d96   :  { %v4926_v56 = vadd.f32 %v5273_v3, %v4925_v7 }
0x1d97   :  { %v5965_v8 = vpop.f32.mrf.mxu0 }
0x1d98   :  { %v4930_v10 = vmax.f32 %v4926_v56, 0.0 }
0x1d9a   :  { %v4931_v11 = vpack.c.bf16 %v4930_v10, %v4929_v9 }
0x1d9c   :  { %5975 = vmatmul.mubr.msk.bf16.vlgmr.msra.gmra.mxu1 %vm2494_vm6, %v4931_v11 }
0x1e5c   :  { %v5008_v15 = vpop.f32.mrf.mxu1 }
0x1e5d   :  { %v5009_v12 = vadd.f32 %v5277_v14, %v5008_v15 }
0x1e5e   :  { %v5976_v17 = vpop.f32.mrf.mxu1 }
0x1e5f   :  { %v5015_v16 = vadd.f32 %v5009_v12, %v4859_v41 }
0x1e60   :  { %v5011_v25 = vpop.f32.mrf.mxu1 }
0x1e61   :  { %v5012_v19 = vadd.f32 %v5277_v14, %v5011_v25  ;;  %v5017_v13 = vsel %vm127_vm2, %v5015_v16, 0.0  ;;  %v5025_v21 = vmul.f32 %v5015_v16, %v5015_v16 }
0x1e62   :  { %5018 = vadd.xlane.f32.xlu1 %v5017_v13  ;;  %v5977_v18 = vpop.f32.mrf.mxu1 }
0x1e63   :  { %v5016_v51 = vadd.f32 %v5012_v19, %v4860_v55  ;;  %v5027_v20 = vsel %vm127_vm2, %v5025_v21, 0.0  ;;  %v5284_v55 = vld [vmem:[%s7276_s3 + $0x1a] ss:$0 sm:$0xff] }
0x1e65   :  { %v5020_v23 = vsel %vm127_vm2, %v5016_v51, 0.0  ;;  %v5026_v24 = vmul.f32 %v5016_v51, %v5016_v51 }
0x1e66   :  { %5028 = vadd.xlane.f32.xlu1 %v5027_v20  ;;  %5021 = vadd.xlane.f32.xlu0 %v5020_v23 }
0x1e67   :  { %v5030_v22 = vsel %vm127_vm2, %v5026_v24, 0.0 }
0x1e6a   :  { %5031 = vadd.xlane.f32.xlu0 %v5030_v22 }
0x1eeb   :  { %v5019_v30 = vpop.xlane.xlu1 %5018 }
0x1eec   :  { %v5023_v31 = vmul.f32 0.03125, %v5019_v30 }
0x1eee   :  { %v5035_v35 = vmul.f32 %v5023_v31, %v5023_v31  ;;  %v5039_v48 = vsub.f32 %v5015_v16, %v5023_v31 }
0x1eef   :  { %v5029_v33 = vpop.xlane.xlu1 %5028  ;;  %v5022_v34 = vpop.xlane.xlu0 %5021 }
0x1ef0   :  { %v5033_v37 = vmul.f32 0.03125, %v5029_v33  ;;  %v5024_v38 = vmul.f32 0.03125, %v5022_v34 }
0x1ef2   :  { %v5037_v36 = vsub.f32 %v5033_v37, %v5035_v35  ;;  %v5036_v40 = vmul.f32 %v5024_v38, %v5024_v38  ;;  %v5040_v50 = vsub.f32 %v5016_v51, %v5024_v38 }
0x1ef3   :  { %v5032_v43 = vpop.xlane.xlu0 %5031 }
0x1ef4   :  { %v5041_v42 = vadd.f32 1e-05, %v5037_v36  ;;  %v5034_v44 = vmul.f32 0.03125, %v5032_v43 }
0x1ef6   :  { %6213 = vrsqrt.f32 %v5041_v42  ;;  %v5038_v45 = vsub.f32 %v5034_v44, %v5036_v40 }
0x1ef8   :  { %v5042_v46 = vadd.f32 1e-05, %v5038_v45 }
0x1efa   :  { %6215 = vrsqrt.f32 %v5042_v46 }
0x1f03   :  { %v6214_v49 = vpop.eup %6213 }
0x1f04   :  { %v5045_v0 = vmul.f32 %v6214_v49, %v5039_v48 }
0x1f06   :  { %v5054_v54 = vmul.f32 %v5283_v39, %v5045_v0 }
0x1f07   :  { %v6216_v52 = vpop.eup %6215 }
0x1f08   :  { %v5046_v41 = vmul.f32 %v6216_v52, %v5040_v50  ;;  %v5063_v58 = vadd.f32 %v5284_v55, %v5054_v54 }
0x1f0a   :  { %v5055_v57 = vmul.f32 %v5283_v39, %v5046_v41 }
0x1f0c   :  { %v5064_v59 = vadd.f32 %v5284_v55, %v5055_v57 }
0x1f0e   :  { %v5065_v60 = vpack.c.bf16 %v5064_v59, %v5063_v58 }
0x1f10   :  { %5983 = vmatmul.mubr.msk.bf16.vlgmr.msra.gmra.mxu0 %vm127_vm2, %v5065_v60 }
0x1fd0   :  { %v5126_v63 = vpop.f32.mrf.mxu0 }
0x1fd1   :  { %v5127_v1 = vadd.f32 %v5285_v61, %v5126_v63 }
0x1fd2   :  { %v5984_v2 = vpop.f32.mrf.mxu0 }
0x1fd4   :  { %v5129_v53 = vpop.f32.mrf.mxu0 }
0x1fd5   :  { %v5130_v62 = vadd.f32 %v5285_v61, %v5129_v53 }
0x1fd6   :  { %v5985_v3 = vpop.f32.mrf.mxu0 }
0x1fd7   :  { %5134 = vrot.lane.b32.xlu1 %v5130_v62, %s6257_s23 }
0x2049   :  { %v5135_v4 = vpop.permute.xlu1 %5134 }
0x204a   :  { %v5138_v5 = vsel %vm5137_vm7, %v5127_v1, %v5135_v4 }
0x204b   :  { %5140 = vst.msk [vmem:[%s7277_s4] sm:$0xff] %vm5139_vm8, %v5138_v5 }
0x204c   :  { %5145 = vsyncpa [#allocation3], 1 }

</bundles_post_ra>
